<compile_context>
chip_gen: v7x
topology: tpu7x:2x2x1
jax: 0.10.0
libtpu: 0.0.40
codegen_flags: <defaults>
</compile_context>

<pallas_src>
import functools
import math

import jax
import jax.numpy as jnp
from jax.experimental import pallas as pl
from jax.experimental.pallas import tpu as pltpu

NEG_INF = -1e30        # additive attention bias for masked / padded keys
LN_EPS = 1e-12         # espnet LayerNorm eps


# ------------------------------- small helpers ------------------------------ #

def _round_up(x, m):
    return (x + m - 1) // m * m


def _fit(dim, target):
    """Pick (tile, padded_extent) for one dimension.

    dim <= target  -> full-dim block (always layout-legal).
    dim  > target  -> `target`-sized tiles (targets are (8,128)-aligned), pad up.
    """
    if dim <= target:
        return dim, dim
    return target, _round_up(dim, target)


# ------------------------------ generic linear ------------------------------ #
# grid = (M tiles, N tiles, K tiles); K innermost reduction with f32 accumulator.
# Optional epilogues: ReLU (conv layers) and "* sqrt(d) + pe" (embedding+posenc).

def _linear_kernel(x_ref, w_ref, b_ref, *rest, relu, scale, has_pe):
    if has_pe:
        pe_ref, o_ref, acc_ref = rest
    else:
        o_ref, acc_ref = rest

    k = pl.program_id(2)

    @pl.when(k == 0)
    def _():
        acc_ref[...] = jnp.zeros_like(acc_ref)

    acc_ref[...] += jnp.dot(x_ref[...].astype(jnp.bfloat16),
                            w_ref[...].astype(jnp.bfloat16),
                            preferred_element_type=jnp.float32)

    @pl.when(k == pl.num_programs(2) - 1)
    def _():
        y = acc_ref[...] + b_ref[...]
        if scale != 1.0:
            y = y * scale
        if has_pe:
            y = y + pe_ref[...]
        if relu:
            y = jnp.maximum(y, 0.0)
        o_ref[...] = y.astype(o_ref.dtype)


def pallas_linear(x, w, b, *, relu=False, scale=1.0, pe=None,
                  out_dtype=jnp.bfloat16, tm=256, tn=512, tk=512):
    M, K = x.shape
    _, N = w.shape
    tm_, Mp = _fit(M, tm)
    tk_, Kp = _fit(K, tk)
    tn_, Np = _fit(N, tn)

    if (Mp, Kp) != (M, K):
        x = jnp.pad(x, ((0, Mp - M), (0, Kp - K)))
    if (Kp, Np) != (K, N):
        w = jnp.pad(w, ((0, Kp - K), (0, Np - N)))
    b2 = b.reshape(1, N).astype(jnp.float32)
    if Np != N:
        b2 = jnp.pad(b2, ((0, 0), (0, Np - N)))

    inputs = [x, w, b2]
    in_specs = [
        pl.BlockSpec((tm_, tk_), lambda i, j, k: (i, k)),
        pl.BlockSpec((tk_, tn_), lambda i, j, k: (k, j)),
        pl.BlockSpec((1, tn_), lambda i, j, k: (0, j)),
    ]
    has_pe = pe is not None
    if has_pe:
        pe2 = pe.astype(jnp.float32)
        if pe2.shape != (Mp, Np):
            pe2 = jnp.pad(pe2, ((0, Mp - M), (0, Np - N)))
        inputs.append(pe2)
        in_specs.append(pl.BlockSpec((tm_, tn_), lambda i, j, k: (i, j)))

    out = pl.pallas_call(
        functools.partial(_linear_kernel, relu=relu, scale=scale, has_pe=has_pe),
        grid_spec=pltpu.PrefetchScalarGridSpec(
            num_scalar_prefetch=0,
            grid=(Mp // tm_, Np // tn_, Kp // tk_),
            in_specs=in_specs,
            out_specs=pl.BlockSpec((tm_, tn_), lambda i, j, k: (i, j)),
            scratch_shapes=[pltpu.VMEM((tm_, tn_), jnp.float32)]),
        out_shape=jax.ShapeDtypeStruct((Mp, Np), out_dtype),
        compiler_params=pltpu.CompilerParams(
            dimension_semantics=("parallel", "parallel", "arbitrary")),
    )(*inputs)
    if (Mp, Np) != (M, N):
        out = out[:M, :N]
    return out


# ------------------------- fused LayerNorm + QKV proj ------------------------ #

def _ln_qkv_kernel(x_ref, g_ref, bln_ref, w_ref, b_ref, q_ref, k_ref, v_ref, *, d_model):
    x = x_ref[...].astype(jnp.float32)
    mu = jnp.mean(x, axis=-1, keepdims=True)
    var = jnp.mean(jnp.square(x - mu), axis=-1, keepdims=True)
    xn = (x - mu) * jax.lax.rsqrt(var + LN_EPS) * g_ref[...] + bln_ref[...]
    y = jnp.dot(xn.astype(jnp.bfloat16), w_ref[...],
                preferred_element_type=jnp.float32) + b_ref[...]
    q_ref[...] = y[:, :d_model].astype(q_ref.dtype)
    k_ref[...] = y[:, d_model:2 * d_model].astype(k_ref.dtype)
    v_ref[...] = y[:, 2 * d_model:].astype(v_ref.dtype)


def pallas_ln_qkv(x, g, b_ln, w_qkv, b_qkv, *, tm=256):
    M, D = x.shape
    tm_, Mp = _fit(M, tm)
    if Mp != M:
        x = jnp.pad(x, ((0, Mp - M), (0, 0)))
    out = pl.pallas_call(
        functools.partial(_ln_qkv_kernel, d_model=D),
        grid_spec=pltpu.PrefetchScalarGridSpec(
            num_scalar_prefetch=0,
            grid=(Mp // tm_,),
            in_specs=[
                pl.BlockSpec((tm_, D), lambda i: (i, 0)),
                pl.BlockSpec((1, D), lambda i: (0, 0)),
                pl.BlockSpec((1, D), lambda i: (0, 0)),
                pl.BlockSpec((D, 3 * D), lambda i: (0, 0)),
                pl.BlockSpec((1, 3 * D), lambda i: (0, 0)),
            ],
            out_specs=[pl.BlockSpec((tm_, D), lambda i: (i, 0)) for _ in range(3)]),
        out_shape=[jax.ShapeDtypeStruct((Mp, D), jnp.bfloat16) for _ in range(3)],
        compiler_params=pltpu.CompilerParams(dimension_semantics=("parallel",)),
    )(x, g.reshape(1, D), b_ln.reshape(1, D), w_qkv, b_qkv.reshape(1, 3 * D))
    q, k, v = out
    if Mp != M:
        q, k, v = q[:M], k[:M], v[:M]
    return q, k, v


# ------------- flash attention (+ output projection + residual) -------------- #
# grid = (B, q tiles, kv tiles); kv is the innermost "arbitrary" reduction axis.
# Heads stay inside the kernel (static unrolled loop); mask is a per-batch
# additive bias (0 / -1e30); final 1/l uses the EUP approximate reciprocal.

def _flash_attn_kernel(q_ref, k_ref, v_ref, bias_ref, res_ref, wo_ref, bo_ref,
                       o_ref, acc_ref, m_ref, l_ref, *, heads, d_k, scale):
    ki = pl.program_id(2)

    @pl.when(ki == 0)
    def _():
        m_ref[...] = jnp.full_like(m_ref, NEG_INF)
        l_ref[...] = jnp.zeros_like(l_ref)
        acc_ref[...] = jnp.zeros_like(acc_ref)

    q = q_ref[0]                  # (tq, D) bf16
    k = k_ref[0]                  # (tk, D) bf16
    v = v_ref[0]                  # (tk, D) bf16
    bias = bias_ref[0]            # (1, tk) f32: 0 for valid keys, -1e30 for masked

    for h in range(heads):
        sl = slice(h * d_k, (h + 1) * d_k)
        s = jax.lax.dot_general(q[:, sl], k[:, sl], (((1,), (1,)), ((), ())),
                                preferred_element_type=jnp.float32)
        s = s * scale + bias                               # (tq, tk)
        m_prev = m_ref[h]                                  # (tq, 1)
        m_new = jnp.maximum(m_prev, jnp.max(s, axis=-1, keepdims=True))
        alpha = jnp.exp(m_prev - m_new)
        p = jnp.exp(s - m_new)
        pv = jax.lax.dot_general(p.astype(v.dtype), v[:, sl],
                                 (((1,), (0,)), ((), ())),
                                 preferred_element_type=jnp.float32)
        acc_ref[h] = alpha * acc_ref[h] + pv
        l_ref[h] = alpha * l_ref[h] + jnp.sum(p, axis=-1, keepdims=True)
        m_ref[h] = m_new

    @pl.when(ki == pl.num_programs(2) - 1)
    def _():
        ctx = jnp.concatenate(
            [acc_ref[h] * pl.reciprocal(l_ref[h], approx=True) for h in range(heads)],
            axis=-1)                                       # (tq, D) f32, lane-dense
        out = jax.lax.dot_general(ctx.astype(jnp.bfloat16), wo_ref[...],
                                  (((1,), (0,)), ((), ())),
                                  preferred_element_type=jnp.float32)
        out = out + bo_ref[...] + res_ref[0].astype(jnp.float32)
        o_ref[0] = out.astype(o_ref.dtype)


def pallas_attention(q, k, v, x_res, bias, wo, bo, *, heads, t_tile):
    B, T, D = q.shape
    d_k = D // heads
    nt = T // t_tile
    scale = 1.0 / math.sqrt(d_k)
    return pl.pallas_call(
        functools.partial(_flash_attn_kernel, heads=heads, d_k=d_k, scale=scale),
        grid_spec=pltpu.PrefetchScalarGridSpec(
            num_scalar_prefetch=0,
            grid=(B, nt, nt),
            in_specs=[
                pl.BlockSpec((1, t_tile, D), lambda b, qi, ki: (b, qi, 0)),   # q
                pl.BlockSpec((1, t_tile, D), lambda b, qi, ki: (b, ki, 0)),   # k
                pl.BlockSpec((1, t_tile, D), lambda b, qi, ki: (b, ki, 0)),   # v
                pl.BlockSpec((1, 1, t_tile), lambda b, qi, ki: (b, 0, ki)),   # mask bias
                pl.BlockSpec((1, t_tile, D), lambda b, qi, ki: (b, qi, 0)),   # residual
                pl.BlockSpec((D, D), lambda b, qi, ki: (0, 0)),               # W_out
                pl.BlockSpec((1, D), lambda b, qi, ki: (0, 0)),               # b_out
            ],
            out_specs=pl.BlockSpec((1, t_tile, D), lambda b, qi, ki: (b, qi, 0)),
            scratch_shapes=[pltpu.VMEM((heads, t_tile, d_k), jnp.float32),
                            pltpu.VMEM((heads, t_tile, 1), jnp.float32),
                            pltpu.VMEM((heads, t_tile, 1), jnp.float32)]),
        out_shape=jax.ShapeDtypeStruct((B, T, D), jnp.bfloat16),
        compiler_params=pltpu.CompilerParams(
            dimension_semantics=("parallel", "parallel", "arbitrary")),
    )(q, k, v, bias, x_res, wo, bo.reshape(1, D).astype(jnp.float32))


# -------------------- fused LayerNorm + FFN (+ residual) --------------------- #

def _ln_ffn_kernel(x_ref, g_ref, bln_ref, w1_ref, b1_ref, w2_ref, b2_ref, o_ref):
    x = x_ref[...].astype(jnp.float32)
    mu = jnp.mean(x, axis=-1, keepdims=True)
    var = jnp.mean(jnp.square(x - mu), axis=-1, keepdims=True)
    xn = (x - mu) * jax.lax.rsqrt(var + LN_EPS) * g_ref[...] + bln_ref[...]
    h = jnp.dot(xn.astype(jnp.bfloat16), w1_ref[...],
                preferred_element_type=jnp.float32) + b1_ref[...]
    h = jnp.maximum(h, 0.0)                    # (tm, d_ff) stays in VMEM
    y = jnp.dot(h.astype(jnp.bfloat16), w2_ref[...],
                preferred_element_type=jnp.float32) + b2_ref[...]
    o_ref[...] = (x + y).astype(o_ref.dtype)   # residual add in f32


def pallas_ln_ffn(x, g, b_ln, w1, b1, w2, b2, *, tm=256):
    M, D = x.shape
    d_ff = w1.shape[1]
    tm_, Mp = _fit(M, tm)
    if Mp != M:
        x = jnp.pad(x, ((0, Mp - M), (0, 0)))
    out = pl.pallas_call(
        _ln_ffn_kernel,
        grid_spec=pltpu.PrefetchScalarGridSpec(
            num_scalar_prefetch=0,
            grid=(Mp // tm_,),
            in_specs=[
                pl.BlockSpec((tm_, D), lambda i: (i, 0)),
                pl.BlockSpec((1, D), lambda i: (0, 0)),
                pl.BlockSpec((1, D), lambda i: (0, 0)),
                pl.BlockSpec((D, d_ff), lambda i: (0, 0)),
                pl.BlockSpec((1, d_ff), lambda i: (0, 0)),
                pl.BlockSpec((d_ff, D), lambda i: (0, 0)),
                pl.BlockSpec((1, D), lambda i: (0, 0)),
            ],
            out_specs=pl.BlockSpec((tm_, D), lambda i: (i, 0))),
        out_shape=jax.ShapeDtypeStruct((Mp, D), jnp.bfloat16),
        compiler_params=pltpu.CompilerParams(dimension_semantics=("parallel",)),
    )(x, g.reshape(1, D), b_ln.reshape(1, D), w1, b1.reshape(1, d_ff),
      w2, b2.reshape(1, D))
    return out[:M] if Mp != M else out


# ------------------------------ plain LayerNorm ------------------------------ #

def _ln_kernel(x_ref, g_ref, b_ref, o_ref):
    x = x_ref[...].astype(jnp.float32)
    mu = jnp.mean(x, axis=-1, keepdims=True)
    var = jnp.mean(jnp.square(x - mu), axis=-1, keepdims=True)
    o_ref[...] = ((x - mu) * jax.lax.rsqrt(var + LN_EPS) * g_ref[...]
                  + b_ref[...]).astype(o_ref.dtype)


def pallas_layernorm(x, g, b, *, out_dtype=jnp.float32, tm=256):
    M, D = x.shape
    tm_, Mp = _fit(M, tm)
    if Mp != M:
        x = jnp.pad(x, ((0, Mp - M), (0, 0)))
    out = pl.pallas_call(
        _ln_kernel,
        grid_spec=pltpu.PrefetchScalarGridSpec(
            num_scalar_prefetch=0,
            grid=(Mp // tm_,),
            in_specs=[pl.BlockSpec((tm_, D), lambda i: (i, 0)),
                      pl.BlockSpec((1, D), lambda i: (0, 0)),
                      pl.BlockSpec((1, D), lambda i: (0, 0))],
            out_specs=pl.BlockSpec((tm_, D), lambda i: (i, 0))),
        out_shape=jax.ShapeDtypeStruct((Mp, D), out_dtype),
        compiler_params=pltpu.CompilerParams(dimension_semantics=("parallel",)),
    )(x, g.reshape(1, D), b.reshape(1, D))
    return out[:M] if Mp != M else out


# -------------------------------- glue (JAX) --------------------------------- #

def im2col_3x3_s2(x):
    """x: (B, T, F, C) -> patches (B, To, Fo, C*9); feature index = c*9 + kh*3 + kw
    (matches torch Conv2d weight.view(out_ch, in_ch*3*3))."""
    B, T, F, C = x.shape
    To = (T - 3) // 2 + 1
    Fo = (F - 3) // 2 + 1
    parts = []
    for di in range(3):
        for dj in range(3):
            parts.append(x[:, di:di + 2 * To:2, dj:dj + 2 * Fo:2, :])
    p = jnp.stack(parts, axis=-1)               # (B, To, Fo, C, 9)
    return p.reshape(B, To, Fo, C * 9), To, Fo


def sinusoidal_pe(T, D):
    pos = jnp.arange(T, dtype=jnp.float32)[:, None]
    div = jnp.exp(jnp.arange(0, D, 2, dtype=jnp.float32) * (-math.log(10000.0) / D))
    pe = jnp.zeros((T, D), dtype=jnp.float32)
    pe = pe.at[:, 0::2].set(jnp.sin(pos * div))
    pe = pe.at[:, 1::2].set(jnp.cos(pos * div))
    return pe


# ------------------------------ parameter init ------------------------------- #

def init_params(key, idim, d_model, heads, d_ff, num_blocks):
    f_sub = ((idim - 1) // 2 - 1) // 2            # freq dim after two stride-2 convs
    lin_in = d_model * f_sub
    ks = jax.random.split(key, 4 + num_blocks)

    def w(k, shape, scale=0.02):
        return (scale * jax.random.normal(k, shape)).astype(jnp.bfloat16)

    def zeros(n):
        return jnp.zeros((n,), jnp.float32)

    p = {
        # Conv2dSubsampling: Conv2d(1, d, 3, 2) -> ReLU -> Conv2d(d, d, 3, 2) -> ReLU
        "conv1_w": w(ks[0], (9, d_model)),
        "conv1_b": zeros(d_model),
        "conv2_w": w(ks[1], (d_model * 9, d_model)),
        "conv2_b": zeros(d_model),
        # Linear(d_model * f_sub, d_model)
        "emb_w": w(ks[2], (lin_in, d_model)),
        "emb_b": zeros(d_model),
        # final LayerNorm (normalize_before=True)
        "after_g": jnp.ones((d_model,), jnp.float32),
        "after_b": zeros(d_model),
        "layers": [],
    }
    for ln in range(num_blocks):
        lk = jax.random.split(ks[4 + ln], 4)
        p["layers"].append({
            "ln1_g": jnp.ones((d_model,), jnp.float32), "ln1_b": zeros(d_model),
            "ln2_g": jnp.ones((d_model,), jnp.float32), "ln2_b": zeros(d_model),
            "w_qkv": w(lk[0], (d_model, 3 * d_model)), "b_qkv": zeros(3 * d_model),
            "wo": w(lk[1], (d_model, d_model)), "bo": zeros(d_model),
            "w1": w(lk[2], (d_model, d_ff)), "b1": zeros(d_ff),
            "w2": w(lk[3], (d_ff, d_model)), "b2": zeros(d_model),
        })
    return p


# ------------------------------ encoder forward ------------------------------ #

def encoder_forward(params, xs, masks, *, d_model, heads):
    """xs: (B, T, idim) f32; masks: (B, 1, T) bool.  Returns (ys f32, masks_sub bool)."""
    B, T, idim = xs.shape

    # ---- Conv2dSubsampling: 2x (3x3 stride-2 conv + ReLU) via im2col + tiled matmul ----
    # TODO(synk): fuse the im2col patch extraction into the conv matmul kernel so the
    # 9x-expanded patches tensor never materializes in HBM.
    x = xs[:, :, :, None]                                   # (B, T, F, 1)
    p1, T1, F1 = im2col_3x3_s2(x)
    h = pallas_linear(p1.reshape(B * T1 * F1, 9),
                      params["conv1_w"], params["conv1_b"], relu=True)
    h = h.reshape(B, T1, F1, d_model)
    p2, T2, F2 = im2col_3x3_s2(h)
    h = pallas_linear(p2.reshape(B * T2 * F2, 9 * d_model),
                      params["conv2_w"], params["conv2_b"], relu=True)
    h = h.reshape(B, T2, F2, d_model)
    # torch: (b, c, t, f) -> transpose(1, 2) -> view(b, t, c*f)  (channel-major features)
    h = jnp.transpose(h, (0, 1, 3, 2)).reshape(B, T2, d_model * F2)

    # subsampled key-padding mask (returned) and its additive attention bias
    masks_sub = masks[:, :, :-2:2][:, :, :-2:2]             # (B, 1, T2) bool

    # pad the time axis ONCE so all layers run at a tile-aligned length
    t_tile = T2 if T2 <= 128 else 128
    T2p = _round_up(T2, t_tile)
    if T2p != T2:
        h = jnp.pad(h, ((0, 0), (0, T2p - T2), (0, 0)))
    M = B * T2p

    bias = jnp.where(masks_sub, 0.0, NEG_INF).astype(jnp.float32)   # (B, 1, T2)
    if T2p != T2:
        bias = jnp.pad(bias, ((0, 0), (0, 0), (0, T2p - T2)),
                       constant_values=NEG_INF)

    # embedding linear fused with positional encoding: (x @ W + b) * sqrt(d) + pe
    pe = sinusoidal_pe(T2p, d_model)
    pe_b = jnp.broadcast_to(pe[None], (B, T2p, d_model)).reshape(M, d_model)
    h = pallas_linear(h.reshape(M, d_model * F2), params["emb_w"], params["emb_b"],
                      scale=math.sqrt(d_model), pe=pe_b)            # (M, D) bf16

    # ---- EncoderLayer x N: 3 fused pallas_calls per layer ----
    x2 = h
    for lp in params["layers"]:
        q, k, v = pallas_ln_qkv(x2, lp["ln1_g"], lp["ln1_b"],
                                lp["w_qkv"], lp["b_qkv"])
        x2 = pallas_attention(q.reshape(B, T2p, d_model),
                              k.reshape(B, T2p, d_model),
                              v.reshape(B, T2p, d_model),
                              x2.reshape(B, T2p, d_model),
                              bias, lp["wo"], lp["bo"],
                              heads=heads, t_tile=t_tile).reshape(M, d_model)
        x2 = pallas_ln_ffn(x2, lp["ln2_g"], lp["ln2_b"],
                           lp["w1"], lp["b1"], lp["w2"], lp["b2"])

    # ---- final LayerNorm (normalize_before=True) ----
    y = pallas_layernorm(x2, params["after_g"], params["after_b"])  # (M, D) f32
    y = y.reshape(B, T2p, d_model)[:, :T2]
    return y, masks_sub


# ----------------------------------- main ------------------------------------ #

if __name__ == "__main__":
    B, T, idim = 2, 32, 20
    d_model, heads, d_ff, num_blocks = 32, 4, 64, 2

    key = jax.random.PRNGKey(0)
    k_x, k_p = jax.random.split(key)

    xs = jax.random.normal(k_x, (B, T, idim), dtype=jnp.float32)
    lengths = jnp.array([32, 24], dtype=jnp.int32)
    masks = (jnp.arange(T)[None, :] < lengths[:, None])[:, None, :]   # (B, 1, T) bool

    params = init_params(k_p, idim, d_model, heads, d_ff, num_blocks)

    fwd = jax.jit(functools.partial(encoder_forward, d_model=d_model, heads=heads))
    ys, masks_sub = fwd(params, xs, masks)
    ys = jax.block_until_ready(ys)
    masks_sub = jax.block_until_ready(masks_sub)

    T2 = ((T - 1) // 2 - 1) // 2
    assert ys.shape == (B, T2, d_model), ys.shape
    assert masks_sub.shape == (B, 1, T2), masks_sub.shape
    assert bool(jnp.all(jnp.isfinite(ys)))
    print("KERNEL_OK")
</pallas_src>

<mosaic_0001>
module attributes {stable_mosaic.version = 11 : i64} {
  func.func @_linear_kernel(%arg0: i32, %arg1: i32, %arg2: i32, %arg3: memref<256x9xf32, #tpu.memory_space<vmem>>, %arg4: memref<9x32xbf16, #tpu.memory_space<vmem>>, %arg5: memref<1x32xf32, #tpu.memory_space<vmem>>, %arg6: memref<256x32xbf16, #tpu.memory_space<vmem>>, %arg7: memref<256x32xf32, #tpu.memory_space<vmem>>) attributes {dimension_semantics = [#tpu.dimension_semantics<parallel>, #tpu.dimension_semantics<parallel>, #tpu.dimension_semantics<arbitrary>], iteration_bounds = array<i64: 2, 1, 1>, scalar_prefetch = 0 : i64, scratch_operands = 1 : i64, tpu.core_type = #tpu.core_type<tc>, window_params = [{transform_indices = @transform_0, window_bounds = array<i64: 256, 9>}, {transform_indices = @transform_1, window_bounds = array<i64: 9, 32>}, {transform_indices = @transform_2, window_bounds = array<i64: 1, 32>}, {transform_indices = @transform_3, window_bounds = array<i64: 256, 32>}]} {
    %c0_i32 = arith.constant 0 : i32
    %0 = arith.cmpi eq, %arg2, %c0_i32 : i32
    %1 = arith.extui %0 : i1 to i32
    %c0_i32_0 = arith.constant 0 : i32
    %2 = arith.cmpi ne, %1, %c0_i32_0 : i32
    scf.if %2 {
      %cst_10 = arith.constant 0.000000e+00 : f32
      %13 = vector.broadcast %cst_10 : f32 to vector<256x32xf32>
      %c0_11 = arith.constant 0 : index
      %c0_12 = arith.constant 0 : index
      %14 = vector.load %arg7[%c0_11, %c0_12] : memref<256x32xf32, #tpu.memory_space<vmem>>, vector<256x32xf32>
      tpu.vector_store %arg7[%c0_11, %c0_12], %13 {strides = array<i32>} : memref<256x32xf32, #tpu.memory_space<vmem>>, vector<256x32xf32>,
    } else {
    }
    %c0 = arith.constant 0 : index
    %c0_1 = arith.constant 0 : index
    %3 = vector.load %arg7[%c0, %c0_1] : memref<256x32xf32, #tpu.memory_space<vmem>>, vector<256x32xf32>
    %c0_2 = arith.constant 0 : index
    %c0_3 = arith.constant 0 : index
    %4 = vector.load %arg3[%c0_2, %c0_3] : memref<256x9xf32, #tpu.memory_space<vmem>>, vector<256x9xf32>
    %5 = arith.truncf %4 : vector<256x9xf32> to vector<256x9xbf16>
    %c0_4 = arith.constant 0 : index
    %c0_5 = arith.constant 0 : index
    %6 = vector.load %arg4[%c0_4, %c0_5] : memref<9x32xbf16, #tpu.memory_space<vmem>>, vector<9x32xbf16>
    %cst = arith.constant dense<0.000000e+00> : vector<256x32xf32>
    %7 = tpu.matmul %5, %6, %cst {dimension_numbers = #tpu.dot_dimension_numbers<[1], [0], [0], [1], [0, 0, 1, 1], [], []>} : vector<256x9xbf16>, vector<9x32xbf16>, vector<256x32xf32> -> vector<256x32xf32>
    %8 = arith.addf %3, %7 : vector<256x32xf32>
    %c0_6 = arith.constant 0 : index
    %c0_7 = arith.constant 0 : index
    %9 = vector.load %arg7[%c0_6, %c0_7] : memref<256x32xf32, #tpu.memory_space<vmem>>, vector<256x32xf32>
    tpu.vector_store %arg7[%c0_6, %c0_7], %8 {strides = array<i32>} : memref<256x32xf32, #tpu.memory_space<vmem>>, vector<256x32xf32>,
    %c0_i32_8 = arith.constant 0 : i32
    %10 = arith.cmpi eq, %arg2, %c0_i32_8 : i32
    %11 = arith.extui %10 : i1 to i32
    %c0_i32_9 = arith.constant 0 : i32
    %12 = arith.cmpi ne, %11, %c0_i32_9 : i32
    scf.if %12 {
      %c0_10 = arith.constant 0 : index
      %c0_11 = arith.constant 0 : index
      %13 = vector.load %arg7[%c0_10, %c0_11] : memref<256x32xf32, #tpu.memory_space<vmem>>, vector<256x32xf32>
      %c0_12 = arith.constant 0 : index
      %c0_13 = arith.constant 0 : index
      %14 = vector.load %arg5[%c0_12, %c0_13] : memref<1x32xf32, #tpu.memory_space<vmem>>, vector<1x32xf32>
      %15 = vector.broadcast %14 : vector<1x32xf32> to vector<256x32xf32>
      %16 = arith.addf %13, %15 : vector<256x32xf32>
      %cst_14 = arith.constant 0.000000e+00 : f32
      %17 = vector.broadcast %cst_14 : f32 to vector<256x32xf32>
      %18 = arith.maximumf %16, %17 : vector<256x32xf32>
      %19 = arith.truncf %18 : vector<256x32xf32> to vector<256x32xbf16>
      %c0_15 = arith.constant 0 : index
      %c0_16 = arith.constant 0 : index
      %20 = vector.load %arg6[%c0_15, %c0_16] : memref<256x32xbf16, #tpu.memory_space<vmem>>, vector<256x32xbf16>
      tpu.vector_store %arg6[%c0_15, %c0_16], %19 {strides = array<i32>} : memref<256x32xbf16, #tpu.memory_space<vmem>>, vector<256x32xbf16>,
    } else {
    }
    return
  }
  func.func @transform_0(%arg0: i32, %arg1: i32, %arg2: i32) -> (i32, i32) {
    %c0_i32 = arith.constant 0 : i32
    return %arg0, %arg2 : i32, i32
  }
  func.func @transform_1(%arg0: i32, %arg1: i32, %arg2: i32) -> (i32, i32) {
    %c0_i32 = arith.constant 0 : i32
    return %arg2, %arg1 : i32, i32
  }
  func.func @transform_2(%arg0: i32, %arg1: i32, %arg2: i32) -> (i32, i32) {
    %c0_i32 = arith.constant 0 : i32
    %c0_i32_0 = arith.constant 0 : i32
    return %c0_i32, %arg1 : i32, i32
  }
  func.func @transform_3(%arg0: i32, %arg1: i32, %arg2: i32) -> (i32, i32) {
    %c0_i32 = arith.constant 0 : i32
    return %arg0, %arg1 : i32, i32
  }
}

module attributes {stable_mosaic.version = 11 : i64} {
  func.func @_linear_kernel(%arg0: i32, %arg1: i32, %arg2: i32, %arg3: memref<56x288xbf16, #tpu.memory_space<vmem>>, %arg4: memref<288x32xbf16, #tpu.memory_space<vmem>>, %arg5: memref<1x32xf32, #tpu.memory_space<vmem>>, %arg6: memref<56x32xbf16, #tpu.memory_space<vmem>>, %arg7: memref<56x32xf32, #tpu.memory_space<vmem>>) attributes {dimension_semantics = [#tpu.dimension_semantics<parallel>, #tpu.dimension_semantics<parallel>, #tpu.dimension_semantics<arbitrary>], iteration_bounds = array<i64: 1, 1, 1>, scalar_prefetch = 0 : i64, scratch_operands = 1 : i64, tpu.core_type = #tpu.core_type<tc>, window_params = [{transform_indices = @transform_0, window_bounds = array<i64: 56, 288>}, {transform_indices = @transform_1, window_bounds = array<i64: 288, 32>}, {transform_indices = @transform_2, window_bounds = array<i64: 1, 32>}, {transform_indices = @transform_3, window_bounds = array<i64: 56, 32>}]} {
    %c0_i32 = arith.constant 0 : i32
    %0 = arith.cmpi eq, %arg2, %c0_i32 : i32
    %1 = arith.extui %0 : i1 to i32
    %c0_i32_0 = arith.constant 0 : i32
    %2 = arith.cmpi ne, %1, %c0_i32_0 : i32
    scf.if %2 {
      %cst_10 = arith.constant 0.000000e+00 : f32
      %12 = vector.broadcast %cst_10 : f32 to vector<56x32xf32>
      %c0_11 = arith.constant 0 : index
      %c0_12 = arith.constant 0 : index
      %13 = vector.load %arg7[%c0_11, %c0_12] : memref<56x32xf32, #tpu.memory_space<vmem>>, vector<56x32xf32>
      tpu.vector_store %arg7[%c0_11, %c0_12], %12 {strides = array<i32>} : memref<56x32xf32, #tpu.memory_space<vmem>>, vector<56x32xf32>,
    } else {
    }
    %c0 = arith.constant 0 : index
    %c0_1 = arith.constant 0 : index
    %3 = vector.load %arg7[%c0, %c0_1] : memref<56x32xf32, #tpu.memory_space<vmem>>, vector<56x32xf32>
    %c0_2 = arith.constant 0 : index
    %c0_3 = arith.constant 0 : index
    %4 = vector.load %arg3[%c0_2, %c0_3] : memref<56x288xbf16, #tpu.memory_space<vmem>>, vector<56x288xbf16>
    %c0_4 = arith.constant 0 : index
    %c0_5 = arith.constant 0 : index
    %5 = vector.load %arg4[%c0_4, %c0_5] : memref<288x32xbf16, #tpu.memory_space<vmem>>, vector<288x32xbf16>
    %cst = arith.constant dense<0.000000e+00> : vector<56x32xf32>
    %6 = tpu.matmul %4, %5, %cst {dimension_numbers = #tpu.dot_dimension_numbers<[1], [0], [0], [1], [0, 0, 1, 1], [], []>} : vector<56x288xbf16>, vector<288x32xbf16>, vector<56x32xf32> -> vector<56x32xf32>
    %7 = arith.addf %3, %6 : vector<56x32xf32>
    %c0_6 = arith.constant 0 : index
    %c0_7 = arith.constant 0 : index
    %8 = vector.load %arg7[%c0_6, %c0_7] : memref<56x32xf32, #tpu.memory_space<vmem>>, vector<56x32xf32>
    tpu.vector_store %arg7[%c0_6, %c0_7], %7 {strides = array<i32>} : memref<56x32xf32, #tpu.memory_space<vmem>>, vector<56x32xf32>,
    %c0_i32_8 = arith.constant 0 : i32
    %9 = arith.cmpi eq, %arg2, %c0_i32_8 : i32
    %10 = arith.extui %9 : i1 to i32
    %c0_i32_9 = arith.constant 0 : i32
    %11 = arith.cmpi ne, %10, %c0_i32_9 : i32
    scf.if %11 {
      %c0_10 = arith.constant 0 : index
      %c0_11 = arith.constant 0 : index
      %12 = vector.load %arg7[%c0_10, %c0_11] : memref<56x32xf32, #tpu.memory_space<vmem>>, vector<56x32xf32>
      %c0_12 = arith.constant 0 : index
      %c0_13 = arith.constant 0 : index
      %13 = vector.load %arg5[%c0_12, %c0_13] : memref<1x32xf32, #tpu.memory_space<vmem>>, vector<1x32xf32>
      %14 = vector.broadcast %13 : vector<1x32xf32> to vector<56x32xf32>
      %15 = arith.addf %12, %14 : vector<56x32xf32>
      %cst_14 = arith.constant 0.000000e+00 : f32
      %16 = vector.broadcast %cst_14 : f32 to vector<56x32xf32>
      %17 = arith.maximumf %15, %16 : vector<56x32xf32>
      %18 = arith.truncf %17 : vector<56x32xf32> to vector<56x32xbf16>
      %c0_15 = arith.constant 0 : index
      %c0_16 = arith.constant 0 : index
      %19 = vector.load %arg6[%c0_15, %c0_16] : memref<56x32xbf16, #tpu.memory_space<vmem>>, vector<56x32xbf16>
      tpu.vector_store %arg6[%c0_15, %c0_16], %18 {strides = array<i32>} : memref<56x32xbf16, #tpu.memory_space<vmem>>, vector<56x32xbf16>,
    } else {
    }
    return
  }
  func.func @transform_0(%arg0: i32, %arg1: i32, %arg2: i32) -> (i32, i32) {
    %c0_i32 = arith.constant 0 : i32
    return %arg0, %arg2 : i32, i32
  }
  func.func @transform_1(%arg0: i32, %arg1: i32, %arg2: i32) -> (i32, i32) {
    %c0_i32 = arith.constant 0 : i32
    return %arg2, %arg1 : i32, i32
  }
  func.func @transform_2(%arg0: i32, %arg1: i32, %arg2: i32) -> (i32, i32) {
    %c0_i32 = arith.constant 0 : i32
    %c0_i32_0 = arith.constant 0 : i32
    return %c0_i32, %arg1 : i32, i32
  }
  func.func @transform_3(%arg0: i32, %arg1: i32, %arg2: i32) -> (i32, i32) {
    %c0_i32 = arith.constant 0 : i32
    return %arg0, %arg1 : i32, i32
  }
}

module attributes {stable_mosaic.version = 11 : i64} {
  func.func @_ln_qkv_kernel(%arg0: i32, %arg1: memref<14x32xbf16, #tpu.memory_space<vmem>>, %arg2: memref<1x32xf32, #tpu.memory_space<vmem>>, %arg3: memref<1x32xf32, #tpu.memory_space<vmem>>, %arg4: memref<32x96xbf16, #tpu.memory_space<vmem>>, %arg5: memref<1x96xf32, #tpu.memory_space<vmem>>, %arg6: memref<14x32xbf16, #tpu.memory_space<vmem>>, %arg7: memref<14x32xbf16, #tpu.memory_space<vmem>>, %arg8: memref<14x32xbf16, #tpu.memory_space<vmem>>) attributes {dimension_semantics = [#tpu.dimension_semantics<parallel>], iteration_bounds = array<i64: 1>, scalar_prefetch = 0 : i64, scratch_operands = 0 : i64, tpu.core_type = #tpu.core_type<tc>, window_params = [{transform_indices = @transform_0, window_bounds = array<i64: 14, 32>}, {pipeline_mode = #tpu.pipeline_mode<synchronous>, transform_indices = @transform_1, window_bounds = array<i64: 1, 32>}, {pipeline_mode = #tpu.pipeline_mode<synchronous>, transform_indices = @transform_2, window_bounds = array<i64: 1, 32>}, {pipeline_mode = #tpu.pipeline_mode<synchronous>, transform_indices = @transform_3, window_bounds = array<i64: 32, 96>}, {pipeline_mode = #tpu.pipeline_mode<synchronous>, transform_indices = @transform_4, window_bounds = array<i64: 1, 96>}, {transform_indices = @transform_5, window_bounds = array<i64: 14, 32>}, {transform_indices = @transform_6, window_bounds = array<i64: 14, 32>}, {transform_indices = @transform_7, window_bounds = array<i64: 14, 32>}]} {
    %c0 = arith.constant 0 : index
    %c0_0 = arith.constant 0 : index
    %0 = vector.load %arg1[%c0, %c0_0] : memref<14x32xbf16, #tpu.memory_space<vmem>>, vector<14x32xbf16>
    %1 = arith.extf %0 : vector<14x32xbf16> to vector<14x32xf32>
    %cst = arith.constant dense<0.000000e+00> : vector<14xf32>
    %2 = vector.multi_reduction <add>, %1, %cst [1] : vector<14x32xf32> to vector<14xf32>
    %3 = vector.shape_cast %2 : vector<14xf32> to vector<14x1xf32>
    %cst_1 = arith.constant 3.200000e+01 : f32
    %4 = vector.broadcast %cst_1 : f32 to vector<14x1xf32>
    %5 = arith.divf %3, %4 : vector<14x1xf32>
    %6 = vector.broadcast %5 : vector<14x1xf32> to vector<14x32xf32>
    %7 = arith.subf %1, %6 : vector<14x32xf32>
    %8 = arith.mulf %7, %7 : vector<14x32xf32>
    %cst_2 = arith.constant dense<0.000000e+00> : vector<14xf32>
    %9 = vector.multi_reduction <add>, %8, %cst_2 [1] : vector<14x32xf32> to vector<14xf32>
    %10 = vector.shape_cast %9 : vector<14xf32> to vector<14x1xf32>
    %cst_3 = arith.constant 3.200000e+01 : f32
    %11 = vector.broadcast %cst_3 : f32 to vector<14x1xf32>
    %12 = arith.divf %10, %11 : vector<14x1xf32>
    %13 = vector.broadcast %5 : vector<14x1xf32> to vector<14x32xf32>
    %14 = arith.subf %1, %13 : vector<14x32xf32>
    %cst_4 = arith.constant 9.99999996E-13 : f32
    %15 = vector.broadcast %cst_4 : f32 to vector<14x1xf32>
    %16 = arith.addf %12, %15 : vector<14x1xf32>
    %17 = math.rsqrt %16 : vector<14x1xf32>
    %18 = vector.broadcast %17 : vector<14x1xf32> to vector<14x32xf32>
    %19 = arith.mulf %14, %18 : vector<14x32xf32>
    %c0_5 = arith.constant 0 : index
    %c0_6 = arith.constant 0 : index
    %20 = vector.load %arg2[%c0_5, %c0_6] : memref<1x32xf32, #tpu.memory_space<vmem>>, vector<1x32xf32>
    %21 = vector.broadcast %20 : vector<1x32xf32> to vector<14x32xf32>
    %22 = arith.mulf %19, %21 : vector<14x32xf32>
    %c0_7 = arith.constant 0 : index
    %c0_8 = arith.constant 0 : index
    %23 = vector.load %arg3[%c0_7, %c0_8] : memref<1x32xf32, #tpu.memory_space<vmem>>, vector<1x32xf32>
    %24 = vector.broadcast %23 : vector<1x32xf32> to vector<14x32xf32>
    %25 = arith.addf %22, %24 : vector<14x32xf32>
    %26 = arith.truncf %25 : vector<14x32xf32> to vector<14x32xbf16>
    %c0_9 = arith.constant 0 : index
    %c0_10 = arith.constant 0 : index
    %27 = vector.load %arg4[%c0_9, %c0_10] : memref<32x96xbf16, #tpu.memory_space<vmem>>, vector<32x96xbf16>
    %cst_11 = arith.constant dense<0.000000e+00> : vector<14x96xf32>
    %28 = tpu.matmul %26, %27, %cst_11 {dimension_numbers = #tpu.dot_dimension_numbers<[1], [0], [0], [1], [0, 0, 1, 1], [], []>} : vector<14x32xbf16>, vector<32x96xbf16>, vector<14x96xf32> -> vector<14x96xf32>
    %c0_12 = arith.constant 0 : index
    %c0_13 = arith.constant 0 : index
    %29 = vector.load %arg5[%c0_12, %c0_13] : memref<1x96xf32, #tpu.memory_space<vmem>>, vector<1x96xf32>
    %30 = vector.broadcast %29 : vector<1x96xf32> to vector<14x96xf32>
    %31 = arith.addf %28, %30 : vector<14x96xf32>
    %32 = vector.extract_strided_slice %31 {offsets = [0, 0], sizes = [14, 32], strides = [1, 1]} : vector<14x96xf32> to vector<14x32xf32>
    %33 = arith.truncf %32 : vector<14x32xf32> to vector<14x32xbf16>
    %c0_14 = arith.constant 0 : index
    %c0_15 = arith.constant 0 : index
    %34 = vector.load %arg6[%c0_14, %c0_15] : memref<14x32xbf16, #tpu.memory_space<vmem>>, vector<14x32xbf16>
    tpu.vector_store %arg6[%c0_14, %c0_15], %33 {strides = array<i32>} : memref<14x32xbf16, #tpu.memory_space<vmem>>, vector<14x32xbf16>,
    %35 = vector.extract_strided_slice %31 {offsets = [0, 32], sizes = [14, 32], strides = [1, 1]} : vector<14x96xf32> to vector<14x32xf32>
    %36 = arith.truncf %35 : vector<14x32xf32> to vector<14x32xbf16>
    %c0_16 = arith.constant 0 : index
    %c0_17 = arith.constant 0 : index
    %37 = vector.load %arg7[%c0_16, %c0_17] : memref<14x32xbf16, #tpu.memory_space<vmem>>, vector<14x32xbf16>
    tpu.vector_store %arg7[%c0_16, %c0_17], %36 {strides = array<i32>} : memref<14x32xbf16, #tpu.memory_space<vmem>>, vector<14x32xbf16>,
    %38 = vector.extract_strided_slice %31 {offsets = [0, 64], sizes = [14, 32], strides = [1, 1]} : vector<14x96xf32> to vector<14x32xf32>
    %39 = arith.truncf %38 : vector<14x32xf32> to vector<14x32xbf16>
    %c0_18 = arith.constant 0 : index
    %c0_19 = arith.constant 0 : index
    %40 = vector.load %arg8[%c0_18, %c0_19] : memref<14x32xbf16, #tpu.memory_space<vmem>>, vector<14x32xbf16>
    tpu.vector_store %arg8[%c0_18, %c0_19], %39 {strides = array<i32>} : memref<14x32xbf16, #tpu.memory_space<vmem>>, vector<14x32xbf16>,
    return
  }
  func.func @transform_0(%arg0: i32) -> (i32, i32) {
    %c0_i32 = arith.constant 0 : i32
    %c0_i32_0 = arith.constant 0 : i32
    return %arg0, %c0_i32 : i32, i32
  }
  func.func @transform_1(%arg0: i32) -> (i32, i32) {
    %c0_i32 = arith.constant 0 : i32
    %c0_i32_0 = arith.constant 0 : i32
    %c0_i32_1 = arith.constant 0 : i32
    return %c0_i32, %c0_i32_0 : i32, i32
  }
  func.func @transform_2(%arg0: i32) -> (i32, i32) {
    %c0_i32 = arith.constant 0 : i32
    %c0_i32_0 = arith.constant 0 : i32
    %c0_i32_1 = arith.constant 0 : i32
    return %c0_i32, %c0_i32_0 : i32, i32
  }
  func.func @transform_3(%arg0: i32) -> (i32, i32) {
    %c0_i32 = arith.constant 0 : i32
    %c0_i32_0 = arith.constant 0 : i32
    %c0_i32_1 = arith.constant 0 : i32
    return %c0_i32, %c0_i32_0 : i32, i32
  }
  func.func @transform_4(%arg0: i32) -> (i32, i32) {
    %c0_i32 = arith.constant 0 : i32
    %c0_i32_0 = arith.constant 0 : i32
    %c0_i32_1 = arith.constant 0 : i32
    return %c0_i32, %c0_i32_0 : i32, i32
  }
  func.func @transform_5(%arg0: i32) -> (i32, i32) {
    %c0_i32 = arith.constant 0 : i32
    %c0_i32_0 = arith.constant 0 : i32
    return %arg0, %c0_i32 : i32, i32
  }
  func.func @transform_6(%arg0: i32) -> (i32, i32) {
    %c0_i32 = arith.constant 0 : i32
    %c0_i32_0 = arith.constant 0 : i32
    return %arg0, %c0_i32 : i32, i32
  }
  func.func @transform_7(%arg0: i32) -> (i32, i32) {
    %c0_i32 = arith.constant 0 : i32
    %c0_i32_0 = arith.constant 0 : i32
    return %arg0, %c0_i32 : i32, i32
  }
}

module attributes {stable_mosaic.version = 11 : i64} {
  func.func @_linear_kernel(%arg0: i32, %arg1: i32, %arg2: i32, %arg3: memref<14x128xbf16, #tpu.memory_space<vmem>>, %arg4: memref<128x32xbf16, #tpu.memory_space<vmem>>, %arg5: memref<1x32xf32, #tpu.memory_space<vmem>>, %arg6: memref<14x32xf32, #tpu.memory_space<vmem>>, %arg7: memref<14x32xbf16, #tpu.memory_space<vmem>>, %arg8: memref<14x32xf32, #tpu.memory_space<vmem>>) attributes {dimension_semantics = [#tpu.dimension_semantics<parallel>, #tpu.dimension_semantics<parallel>, #tpu.dimension_semantics<arbitrary>], iteration_bounds = array<i64: 1, 1, 1>, scalar_prefetch = 0 : i64, scratch_operands = 1 : i64, tpu.core_type = #tpu.core_type<tc>, window_params = [{transform_indices = @transform_0, window_bounds = array<i64: 14, 128>}, {transform_indices = @transform_1, window_bounds = array<i64: 128, 32>}, {transform_indices = @transform_2, window_bounds = array<i64: 1, 32>}, {transform_indices = @transform_3, window_bounds = array<i64: 14, 32>}, {transform_indices = @transform_4, window_bounds = array<i64: 14, 32>}]} {
    %c0_i32 = arith.constant 0 : i32
    %0 = arith.cmpi eq, %arg2, %c0_i32 : i32
    %1 = arith.extui %0 : i1 to i32
    %c0_i32_0 = arith.constant 0 : i32
    %2 = arith.cmpi ne, %1, %c0_i32_0 : i32
    scf.if %2 {
      %cst_10 = arith.constant 0.000000e+00 : f32
      %12 = vector.broadcast %cst_10 : f32 to vector<14x32xf32>
      %c0_11 = arith.constant 0 : index
      %c0_12 = arith.constant 0 : index
      %13 = vector.load %arg8[%c0_11, %c0_12] : memref<14x32xf32, #tpu.memory_space<vmem>>, vector<14x32xf32>
      tpu.vector_store %arg8[%c0_11, %c0_12], %12 {strides = array<i32>} : memref<14x32xf32, #tpu.memory_space<vmem>>, vector<14x32xf32>,
    } else {
    }
    %c0 = arith.constant 0 : index
    %c0_1 = arith.constant 0 : index
    %3 = vector.load %arg8[%c0, %c0_1] : memref<14x32xf32, #tpu.memory_space<vmem>>, vector<14x32xf32>
    %c0_2 = arith.constant 0 : index
    %c0_3 = arith.constant 0 : index
    %4 = vector.load %arg3[%c0_2, %c0_3] : memref<14x128xbf16, #tpu.memory_space<vmem>>, vector<14x128xbf16>
    %c0_4 = arith.constant 0 : index
    %c0_5 = arith.constant 0 : index
    %5 = vector.load %arg4[%c0_4, %c0_5] : memref<128x32xbf16, #tpu.memory_space<vmem>>, vector<128x32xbf16>
    %cst = arith.constant dense<0.000000e+00> : vector<14x32xf32>
    %6 = tpu.matmul %4, %5, %cst {dimension_numbers = #tpu.dot_dimension_numbers<[1], [0], [0], [1], [0, 0, 1, 1], [], []>} : vector<14x128xbf16>, vector<128x32xbf16>, vector<14x32xf32> -> vector<14x32xf32>
    %7 = arith.addf %3, %6 : vector<14x32xf32>
    %c0_6 = arith.constant 0 : index
    %c0_7 = arith.constant 0 : index
    %8 = vector.load %arg8[%c0_6, %c0_7] : memref<14x32xf32, #tpu.memory_space<vmem>>, vector<14x32xf32>
    tpu.vector_store %arg8[%c0_6, %c0_7], %7 {strides = array<i32>} : memref<14x32xf32, #tpu.memory_space<vmem>>, vector<14x32xf32>,
    %c0_i32_8 = arith.constant 0 : i32
    %9 = arith.cmpi eq, %arg2, %c0_i32_8 : i32
    %10 = arith.extui %9 : i1 to i32
    %c0_i32_9 = arith.constant 0 : i32
    %11 = arith.cmpi ne, %10, %c0_i32_9 : i32
    scf.if %11 {
      %c0_10 = arith.constant 0 : index
      %c0_11 = arith.constant 0 : index
      %12 = vector.load %arg8[%c0_10, %c0_11] : memref<14x32xf32, #tpu.memory_space<vmem>>, vector<14x32xf32>
      %c0_12 = arith.constant 0 : index
      %c0_13 = arith.constant 0 : index
      %13 = vector.load %arg5[%c0_12, %c0_13] : memref<1x32xf32, #tpu.memory_space<vmem>>, vector<1x32xf32>
      %14 = vector.broadcast %13 : vector<1x32xf32> to vector<14x32xf32>
      %15 = arith.addf %12, %14 : vector<14x32xf32>
      %cst_14 = arith.constant 5.65685415 : f32
      %16 = vector.broadcast %cst_14 : f32 to vector<14x32xf32>
      %17 = arith.mulf %15, %16 : vector<14x32xf32>
      %c0_15 = arith.constant 0 : index
      %c0_16 = arith.constant 0 : index
      %18 = vector.load %arg6[%c0_15, %c0_16] : memref<14x32xf32, #tpu.memory_space<vmem>>, vector<14x32xf32>
      %19 = arith.addf %17, %18 : vector<14x32xf32>
      %20 = arith.truncf %19 : vector<14x32xf32> to vector<14x32xbf16>
      %c0_17 = arith.constant 0 : index
      %c0_18 = arith.constant 0 : index
      %21 = vector.load %arg7[%c0_17, %c0_18] : memref<14x32xbf16, #tpu.memory_space<vmem>>, vector<14x32xbf16>
      tpu.vector_store %arg7[%c0_17, %c0_18], %20 {strides = array<i32>} : memref<14x32xbf16, #tpu.memory_space<vmem>>, vector<14x32xbf16>,
    } else {
    }
    return
  }
  func.func @transform_0(%arg0: i32, %arg1: i32, %arg2: i32) -> (i32, i32) {
    %c0_i32 = arith.constant 0 : i32
    return %arg0, %arg2 : i32, i32
  }
  func.func @transform_1(%arg0: i32, %arg1: i32, %arg2: i32) -> (i32, i32) {
    %c0_i32 = arith.constant 0 : i32
    return %arg2, %arg1 : i32, i32
  }
  func.func @transform_2(%arg0: i32, %arg1: i32, %arg2: i32) -> (i32, i32) {
    %c0_i32 = arith.constant 0 : i32
    %c0_i32_0 = arith.constant 0 : i32
    return %c0_i32, %arg1 : i32, i32
  }
  func.func @transform_3(%arg0: i32, %arg1: i32, %arg2: i32) -> (i32, i32) {
    %c0_i32 = arith.constant 0 : i32
    return %arg0, %arg1 : i32, i32
  }
  func.func @transform_4(%arg0: i32, %arg1: i32, %arg2: i32) -> (i32, i32) {
    %c0_i32 = arith.constant 0 : i32
    return %arg0, %arg1 : i32, i32
  }
}

module attributes {stable_mosaic.version = 11 : i64} {
  func.func @_flash_attn_kernel(%arg0: i32, %arg1: i32, %arg2: i32, %arg3: memref<1x7x32xbf16, #tpu.memory_space<vmem>>, %arg4: memref<1x7x32xbf16, #tpu.memory_space<vmem>>, %arg5: memref<1x7x32xbf16, #tpu.memory_space<vmem>>, %arg6: memref<1x1x7xf32, #tpu.memory_space<vmem>>, %arg7: memref<1x7x32xbf16, #tpu.memory_space<vmem>>, %arg8: memref<32x32xbf16, #tpu.memory_space<vmem>>, %arg9: memref<1x32xf32, #tpu.memory_space<vmem>>, %arg10: memref<1x7x32xbf16, #tpu.memory_space<vmem>>, %arg11: memref<4x7x8xf32, #tpu.memory_space<vmem>>, %arg12: memref<4x7x1xf32, #tpu.memory_space<vmem>>, %arg13: memref<4x7x1xf32, #tpu.memory_space<vmem>>) attributes {dimension_semantics = [#tpu.dimension_semantics<parallel>, #tpu.dimension_semantics<parallel>, #tpu.dimension_semantics<arbitrary>], iteration_bounds = array<i64: 2, 1, 1>, scalar_prefetch = 0 : i64, scratch_operands = 3 : i64, tpu.core_type = #tpu.core_type<tc>, window_params = [{transform_indices = @transform_0, window_bounds = array<i64: 1, 7, 32>}, {transform_indices = @transform_1, window_bounds = array<i64: 1, 7, 32>}, {transform_indices = @transform_2, window_bounds = array<i64: 1, 7, 32>}, {transform_indices = @transform_3, window_bounds = array<i64: 1, 1, 7>}, {transform_indices = @transform_4, window_bounds = array<i64: 1, 7, 32>}, {pipeline_mode = #tpu.pipeline_mode<synchronous>, transform_indices = @transform_5, window_bounds = array<i64: 32, 32>}, {pipeline_mode = #tpu.pipeline_mode<synchronous>, transform_indices = @transform_6, window_bounds = array<i64: 1, 32>}, {transform_indices = @transform_7, window_bounds = array<i64: 1, 7, 32>}]} {
    %c0_i32 = arith.constant 0 : i32
    %0 = arith.cmpi eq, %arg2, %c0_i32 : i32
    %1 = arith.extui %0 : i1 to i32
    %c0_i32_0 = arith.constant 0 : i32
    %2 = arith.cmpi ne, %1, %c0_i32_0 : i32
    scf.if %2 {
      %cst_102 = arith.constant -1.000000e+30 : f32
      %174 = vector.broadcast %cst_102 : f32 to vector<4x7x1xf32>
      %c0_103 = arith.constant 0 : index
      %c0_104 = arith.constant 0 : index
      %c0_105 = arith.constant 0 : index
      %175 = vector.load %arg12[%c0_103, %c0_104, %c0_105] : memref<4x7x1xf32, #tpu.memory_space<vmem>>, vector<4x7x1xf32>
      tpu.vector_store %arg12[%c0_103, %c0_104, %c0_105], %174 {strides = array<i32>} : memref<4x7x1xf32, #tpu.memory_space<vmem>>, vector<4x7x1xf32>,
      %cst_106 = arith.constant 0.000000e+00 : f32
      %176 = vector.broadcast %cst_106 : f32 to vector<4x7x1xf32>
      %c0_107 = arith.constant 0 : index
      %c0_108 = arith.constant 0 : index
      %c0_109 = arith.constant 0 : index
      %177 = vector.load %arg13[%c0_107, %c0_108, %c0_109] : memref<4x7x1xf32, #tpu.memory_space<vmem>>, vector<4x7x1xf32>
      tpu.vector_store %arg13[%c0_107, %c0_108, %c0_109], %176 {strides = array<i32>} : memref<4x7x1xf32, #tpu.memory_space<vmem>>, vector<4x7x1xf32>,
      %cst_110 = arith.constant 0.000000e+00 : f32
      %178 = vector.broadcast %cst_110 : f32 to vector<4x7x8xf32>
      %c0_111 = arith.constant 0 : index
      %c0_112 = arith.constant 0 : index
      %c0_113 = arith.constant 0 : index
      %179 = vector.load %arg11[%c0_111, %c0_112, %c0_113] : memref<4x7x8xf32, #tpu.memory_space<vmem>>, vector<4x7x8xf32>
      tpu.vector_store %arg11[%c0_111, %c0_112, %c0_113], %178 {strides = array<i32>} : memref<4x7x8xf32, #tpu.memory_space<vmem>>, vector<4x7x8xf32>,
    } else {
    }
    %c0 = arith.constant 0 : index
    %c0_1 = arith.constant 0 : index
    %c0_2 = arith.constant 0 : index
    %3 = vector.load %arg3[%c0, %c0_1, %c0_2] : memref<1x7x32xbf16, #tpu.memory_space<vmem>>, vector<1x7x32xbf16>
    %4 = vector.shape_cast %3 : vector<1x7x32xbf16> to vector<7x32xbf16>
    %c0_3 = arith.constant 0 : index
    %c0_4 = arith.constant 0 : index
    %c0_5 = arith.constant 0 : index
    %5 = vector.load %arg4[%c0_3, %c0_4, %c0_5] : memref<1x7x32xbf16, #tpu.memory_space<vmem>>, vector<1x7x32xbf16>
    %6 = vector.shape_cast %5 : vector<1x7x32xbf16> to vector<7x32xbf16>
    %c0_6 = arith.constant 0 : index
    %c0_7 = arith.constant 0 : index
    %c0_8 = arith.constant 0 : index
    %7 = vector.load %arg5[%c0_6, %c0_7, %c0_8] : memref<1x7x32xbf16, #tpu.memory_space<vmem>>, vector<1x7x32xbf16>
    %8 = vector.shape_cast %7 : vector<1x7x32xbf16> to vector<7x32xbf16>
    %c0_9 = arith.constant 0 : index
    %c0_10 = arith.constant 0 : index
    %c0_11 = arith.constant 0 : index
    %9 = vector.load %arg6[%c0_9, %c0_10, %c0_11] : memref<1x1x7xf32, #tpu.memory_space<vmem>>, vector<1x1x7xf32>
    %10 = vector.shape_cast %9 : vector<1x1x7xf32> to vector<1x7xf32>
    %11 = vector.extract_strided_slice %4 {offsets = [0, 0], sizes = [7, 8], strides = [1, 1]} : vector<7x32xbf16> to vector<7x8xbf16>
    %12 = vector.extract_strided_slice %6 {offsets = [0, 0], sizes = [7, 8], strides = [1, 1]} : vector<7x32xbf16> to vector<7x8xbf16>
    %cst = arith.constant dense<0.000000e+00> : vector<7x7xf32>
    %13 = tpu.matmul %11, %12, %cst {dimension_numbers = #tpu.dot_dimension_numbers<[1], [1], [0], [0], [0, 0, 1, 0], [], []>} : vector<7x8xbf16>, vector<7x8xbf16>, vector<7x7xf32> -> vector<7x7xf32>
    %cst_12 = arith.constant 0.353553385 : f32
    %14 = vector.broadcast %cst_12 : f32 to vector<7x7xf32>
    %15 = arith.mulf %13, %14 : vector<7x7xf32>
    %16 = vector.broadcast %10 : vector<1x7xf32> to vector<7x7xf32>
    %17 = arith.addf %15, %16 : vector<7x7xf32>
    %c0_13 = arith.constant 0 : index
    %c0_14 = arith.constant 0 : index
    %c0_15 = arith.constant 0 : index
    %18 = vector.load %arg12[%c0_13, %c0_14, %c0_15] : memref<4x7x1xf32, #tpu.memory_space<vmem>>, vector<1x7x1xf32>
    %19 = vector.shape_cast %18 : vector<1x7x1xf32> to vector<7x1xf32>
    %cst_16 = arith.constant dense<0xFF800000> : vector<7xf32>
    %20 = vector.multi_reduction <maximumf>, %17, %cst_16 [1] : vector<7x7xf32> to vector<7xf32>
    %21 = vector.shape_cast %20 : vector<7xf32> to vector<7x1xf32>
    %22 = arith.maximumf %19, %21 : vector<7x1xf32>
    %23 = arith.subf %19, %22 : vector<7x1xf32>
    %24 = math.exp %23 : vector<7x1xf32>
    %25 = vector.broadcast %22 : vector<7x1xf32> to vector<7x7xf32>
    %26 = arith.subf %17, %25 : vector<7x7xf32>
    %27 = math.exp %26 : vector<7x7xf32>
    %28 = arith.truncf %27 : vector<7x7xf32> to vector<7x7xbf16>
    %29 = vector.extract_strided_slice %8 {offsets = [0, 0], sizes = [7, 8], strides = [1, 1]} : vector<7x32xbf16> to vector<7x8xbf16>
    %cst_17 = arith.constant dense<0.000000e+00> : vector<7x8xf32>
    %30 = tpu.matmul %28, %29, %cst_17 {dimension_numbers = #tpu.dot_dimension_numbers<[1], [0], [0], [1], [0, 0, 1, 1], [], []>} : vector<7x7xbf16>, vector<7x8xbf16>, vector<7x8xf32> -> vector<7x8xf32>
    %c0_18 = arith.constant 0 : index
    %c0_19 = arith.constant 0 : index
    %c0_20 = arith.constant 0 : index
    %31 = vector.load %arg11[%c0_18, %c0_19, %c0_20] : memref<4x7x8xf32, #tpu.memory_space<vmem>>, vector<1x7x8xf32>
    %32 = vector.shape_cast %31 : vector<1x7x8xf32> to vector<7x8xf32>
    %33 = vector.broadcast %24 : vector<7x1xf32> to vector<7x8xf32>
    %34 = arith.mulf %33, %32 : vector<7x8xf32>
    %35 = arith.addf %34, %30 : vector<7x8xf32>
    %c0_21 = arith.constant 0 : index
    %c0_22 = arith.constant 0 : index
    %c0_23 = arith.constant 0 : index
    %36 = vector.load %arg11[%c0_21, %c0_22, %c0_23] : memref<4x7x8xf32, #tpu.memory_space<vmem>>, vector<1x7x8xf32>
    %37 = vector.shape_cast %36 : vector<1x7x8xf32> to vector<7x8xf32>
    %38 = vector.shape_cast %35 : vector<7x8xf32> to vector<1x7x8xf32>
    tpu.vector_store %arg11[%c0_21, %c0_22, %c0_23], %38 {strides = array<i32>} : memref<4x7x8xf32, #tpu.memory_space<vmem>>, vector<1x7x8xf32>,
    %c0_24 = arith.constant 0 : index
    %c0_25 = arith.constant 0 : index
    %c0_26 = arith.constant 0 : index
    %39 = vector.load %arg13[%c0_24, %c0_25, %c0_26] : memref<4x7x1xf32, #tpu.memory_space<vmem>>, vector<1x7x1xf32>
    %40 = vector.shape_cast %39 : vector<1x7x1xf32> to vector<7x1xf32>
    %41 = arith.mulf %24, %40 : vector<7x1xf32>
    %cst_27 = arith.constant dense<0.000000e+00> : vector<7xf32>
    %42 = vector.multi_reduction <add>, %27, %cst_27 [1] : vector<7x7xf32> to vector<7xf32>
    %43 = vector.shape_cast %42 : vector<7xf32> to vector<7x1xf32>
    %44 = arith.addf %41, %43 : vector<7x1xf32>
    %c0_28 = arith.constant 0 : index
    %c0_29 = arith.constant 0 : index
    %c0_30 = arith.constant 0 : index
    %45 = vector.load %arg13[%c0_28, %c0_29, %c0_30] : memref<4x7x1xf32, #tpu.memory_space<vmem>>, vector<1x7x1xf32>
    %46 = vector.shape_cast %45 : vector<1x7x1xf32> to vector<7x1xf32>
    %47 = vector.shape_cast %44 : vector<7x1xf32> to vector<1x7x1xf32>
    tpu.vector_store %arg13[%c0_28, %c0_29, %c0_30], %47 {strides = array<i32>} : memref<4x7x1xf32, #tpu.memory_space<vmem>>, vector<1x7x1xf32>,
    %c0_31 = arith.constant 0 : index
    %c0_32 = arith.constant 0 : index
    %c0_33 = arith.constant 0 : index
    %48 = vector.load %arg12[%c0_31, %c0_32, %c0_33] : memref<4x7x1xf32, #tpu.memory_space<vmem>>, vector<1x7x1xf32>
    %49 = vector.shape_cast %48 : vector<1x7x1xf32> to vector<7x1xf32>
    %50 = vector.shape_cast %22 : vector<7x1xf32> to vector<1x7x1xf32>
    tpu.vector_store %arg12[%c0_31, %c0_32, %c0_33], %50 {strides = array<i32>} : memref<4x7x1xf32, #tpu.memory_space<vmem>>, vector<1x7x1xf32>,
    %51 = vector.extract_strided_slice %4 {offsets = [0, 8], sizes = [7, 8], strides = [1, 1]} : vector<7x32xbf16> to vector<7x8xbf16>
    %52 = vector.extract_strided_slice %6 {offsets = [0, 8], sizes = [7, 8], strides = [1, 1]} : vector<7x32xbf16> to vector<7x8xbf16>
    %cst_34 = arith.constant dense<0.000000e+00> : vector<7x7xf32>
    %53 = tpu.matmul %51, %52, %cst_34 {dimension_numbers = #tpu.dot_dimension_numbers<[1], [1], [0], [0], [0, 0, 1, 0], [], []>} : vector<7x8xbf16>, vector<7x8xbf16>, vector<7x7xf32> -> vector<7x7xf32>
    %cst_35 = arith.constant 0.353553385 : f32
    %54 = vector.broadcast %cst_35 : f32 to vector<7x7xf32>
    %55 = arith.mulf %53, %54 : vector<7x7xf32>
    %56 = vector.broadcast %10 : vector<1x7xf32> to vector<7x7xf32>
    %57 = arith.addf %55, %56 : vector<7x7xf32>
    %c1 = arith.constant 1 : index
    %c0_36 = arith.constant 0 : index
    %c0_37 = arith.constant 0 : index
    %58 = vector.load %arg12[%c1, %c0_36, %c0_37] : memref<4x7x1xf32, #tpu.memory_space<vmem>>, vector<1x7x1xf32>
    %59 = vector.shape_cast %58 : vector<1x7x1xf32> to vector<7x1xf32>
    %cst_38 = arith.constant dense<0xFF800000> : vector<7xf32>
    %60 = vector.multi_reduction <maximumf>, %57, %cst_38 [1] : vector<7x7xf32> to vector<7xf32>
    %61 = vector.shape_cast %60 : vector<7xf32> to vector<7x1xf32>
    %62 = arith.maximumf %59, %61 : vector<7x1xf32>
    %63 = arith.subf %59, %62 : vector<7x1xf32>
    %64 = math.exp %63 : vector<7x1xf32>
    %65 = vector.broadcast %62 : vector<7x1xf32> to vector<7x7xf32>
    %66 = arith.subf %57, %65 : vector<7x7xf32>
    %67 = math.exp %66 : vector<7x7xf32>
    %68 = arith.truncf %67 : vector<7x7xf32> to vector<7x7xbf16>
    %69 = vector.extract_strided_slice %8 {offsets = [0, 8], sizes = [7, 8], strides = [1, 1]} : vector<7x32xbf16> to vector<7x8xbf16>
    %cst_39 = arith.constant dense<0.000000e+00> : vector<7x8xf32>
    %70 = tpu.matmul %68, %69, %cst_39 {dimension_numbers = #tpu.dot_dimension_numbers<[1], [0], [0], [1], [0, 0, 1, 1], [], []>} : vector<7x7xbf16>, vector<7x8xbf16>, vector<7x8xf32> -> vector<7x8xf32>
    %c1_40 = arith.constant 1 : index
    %c0_41 = arith.constant 0 : index
    %c0_42 = arith.constant 0 : index
    %71 = vector.load %arg11[%c1_40, %c0_41, %c0_42] : memref<4x7x8xf32, #tpu.memory_space<vmem>>, vector<1x7x8xf32>
    %72 = vector.shape_cast %71 : vector<1x7x8xf32> to vector<7x8xf32>
    %73 = vector.broadcast %64 : vector<7x1xf32> to vector<7x8xf32>
    %74 = arith.mulf %73, %72 : vector<7x8xf32>
    %75 = arith.addf %74, %70 : vector<7x8xf32>
    %c1_43 = arith.constant 1 : index
    %c0_44 = arith.constant 0 : index
    %c0_45 = arith.constant 0 : index
    %76 = vector.load %arg11[%c1_43, %c0_44, %c0_45] : memref<4x7x8xf32, #tpu.memory_space<vmem>>, vector<1x7x8xf32>
    %77 = vector.shape_cast %76 : vector<1x7x8xf32> to vector<7x8xf32>
    %78 = vector.shape_cast %75 : vector<7x8xf32> to vector<1x7x8xf32>
    tpu.vector_store %arg11[%c1_43, %c0_44, %c0_45], %78 {strides = array<i32>} : memref<4x7x8xf32, #tpu.memory_space<vmem>>, vector<1x7x8xf32>,
    %c1_46 = arith.constant 1 : index
    %c0_47 = arith.constant 0 : index
    %c0_48 = arith.constant 0 : index
    %79 = vector.load %arg13[%c1_46, %c0_47, %c0_48] : memref<4x7x1xf32, #tpu.memory_space<vmem>>, vector<1x7x1xf32>
    %80 = vector.shape_cast %79 : vector<1x7x1xf32> to vector<7x1xf32>
    %81 = arith.mulf %64, %80 : vector<7x1xf32>
    %cst_49 = arith.constant dense<0.000000e+00> : vector<7xf32>
    %82 = vector.multi_reduction <add>, %67, %cst_49 [1] : vector<7x7xf32> to vector<7xf32>
    %83 = vector.shape_cast %82 : vector<7xf32> to vector<7x1xf32>
    %84 = arith.addf %81, %83 : vector<7x1xf32>
    %c1_50 = arith.constant 1 : index
    %c0_51 = arith.constant 0 : index
    %c0_52 = arith.constant 0 : index
    %85 = vector.load %arg13[%c1_50, %c0_51, %c0_52] : memref<4x7x1xf32, #tpu.memory_space<vmem>>, vector<1x7x1xf32>
    %86 = vector.shape_cast %85 : vector<1x7x1xf32> to vector<7x1xf32>
    %87 = vector.shape_cast %84 : vector<7x1xf32> to vector<1x7x1xf32>
    tpu.vector_store %arg13[%c1_50, %c0_51, %c0_52], %87 {strides = array<i32>} : memref<4x7x1xf32, #tpu.memory_space<vmem>>, vector<1x7x1xf32>,
    %c1_53 = arith.constant 1 : index
    %c0_54 = arith.constant 0 : index
    %c0_55 = arith.constant 0 : index
    %88 = vector.load %arg12[%c1_53, %c0_54, %c0_55] : memref<4x7x1xf32, #tpu.memory_space<vmem>>, vector<1x7x1xf32>
    %89 = vector.shape_cast %88 : vector<1x7x1xf32> to vector<7x1xf32>
    %90 = vector.shape_cast %62 : vector<7x1xf32> to vector<1x7x1xf32>
    tpu.vector_store %arg12[%c1_53, %c0_54, %c0_55], %90 {strides = array<i32>} : memref<4x7x1xf32, #tpu.memory_space<vmem>>, vector<1x7x1xf32>,
    %91 = vector.extract_strided_slice %4 {offsets = [0, 16], sizes = [7, 8], strides = [1, 1]} : vector<7x32xbf16> to vector<7x8xbf16>
    %92 = vector.extract_strided_slice %6 {offsets = [0, 16], sizes = [7, 8], strides = [1, 1]} : vector<7x32xbf16> to vector<7x8xbf16>
    %cst_56 = arith.constant dense<0.000000e+00> : vector<7x7xf32>
    %93 = tpu.matmul %91, %92, %cst_56 {dimension_numbers = #tpu.dot_dimension_numbers<[1], [1], [0], [0], [0, 0, 1, 0], [], []>} : vector<7x8xbf16>, vector<7x8xbf16>, vector<7x7xf32> -> vector<7x7xf32>
    %cst_57 = arith.constant 0.353553385 : f32
    %94 = vector.broadcast %cst_57 : f32 to vector<7x7xf32>
    %95 = arith.mulf %93, %94 : vector<7x7xf32>
    %96 = vector.broadcast %10 : vector<1x7xf32> to vector<7x7xf32>
    %97 = arith.addf %95, %96 : vector<7x7xf32>
    %c2 = arith.constant 2 : index
    %c0_58 = arith.constant 0 : index
    %c0_59 = arith.constant 0 : index
    %98 = vector.load %arg12[%c2, %c0_58, %c0_59] : memref<4x7x1xf32, #tpu.memory_space<vmem>>, vector<1x7x1xf32>
    %99 = vector.shape_cast %98 : vector<1x7x1xf32> to vector<7x1xf32>
    %cst_60 = arith.constant dense<0xFF800000> : vector<7xf32>
    %100 = vector.multi_reduction <maximumf>, %97, %cst_60 [1] : vector<7x7xf32> to vector<7xf32>
    %101 = vector.shape_cast %100 : vector<7xf32> to vector<7x1xf32>
    %102 = arith.maximumf %99, %101 : vector<7x1xf32>
    %103 = arith.subf %99, %102 : vector<7x1xf32>
    %104 = math.exp %103 : vector<7x1xf32>
    %105 = vector.broadcast %102 : vector<7x1xf32> to vector<7x7xf32>
    %106 = arith.subf %97, %105 : vector<7x7xf32>
    %107 = math.exp %106 : vector<7x7xf32>
    %108 = arith.truncf %107 : vector<7x7xf32> to vector<7x7xbf16>
    %109 = vector.extract_strided_slice %8 {offsets = [0, 16], sizes = [7, 8], strides = [1, 1]} : vector<7x32xbf16> to vector<7x8xbf16>
    %cst_61 = arith.constant dense<0.000000e+00> : vector<7x8xf32>
    %110 = tpu.matmul %108, %109, %cst_61 {dimension_numbers = #tpu.dot_dimension_numbers<[1], [0], [0], [1], [0, 0, 1, 1], [], []>} : vector<7x7xbf16>, vector<7x8xbf16>, vector<7x8xf32> -> vector<7x8xf32>
    %c2_62 = arith.constant 2 : index
    %c0_63 = arith.constant 0 : index
    %c0_64 = arith.constant 0 : index
    %111 = vector.load %arg11[%c2_62, %c0_63, %c0_64] : memref<4x7x8xf32, #tpu.memory_space<vmem>>, vector<1x7x8xf32>
    %112 = vector.shape_cast %111 : vector<1x7x8xf32> to vector<7x8xf32>
    %113 = vector.broadcast %104 : vector<7x1xf32> to vector<7x8xf32>
    %114 = arith.mulf %113, %112 : vector<7x8xf32>
    %115 = arith.addf %114, %110 : vector<7x8xf32>
    %c2_65 = arith.constant 2 : index
    %c0_66 = arith.constant 0 : index
    %c0_67 = arith.constant 0 : index
    %116 = vector.load %arg11[%c2_65, %c0_66, %c0_67] : memref<4x7x8xf32, #tpu.memory_space<vmem>>, vector<1x7x8xf32>
    %117 = vector.shape_cast %116 : vector<1x7x8xf32> to vector<7x8xf32>
    %118 = vector.shape_cast %115 : vector<7x8xf32> to vector<1x7x8xf32>
    tpu.vector_store %arg11[%c2_65, %c0_66, %c0_67], %118 {strides = array<i32>} : memref<4x7x8xf32, #tpu.memory_space<vmem>>, vector<1x7x8xf32>,
    %c2_68 = arith.constant 2 : index
    %c0_69 = arith.constant 0 : index
    %c0_70 = arith.constant 0 : index
    %119 = vector.load %arg13[%c2_68, %c0_69, %c0_70] : memref<4x7x1xf32, #tpu.memory_space<vmem>>, vector<1x7x1xf32>
    %120 = vector.shape_cast %119 : vector<1x7x1xf32> to vector<7x1xf32>
    %121 = arith.mulf %104, %120 : vector<7x1xf32>
    %cst_71 = arith.constant dense<0.000000e+00> : vector<7xf32>
    %122 = vector.multi_reduction <add>, %107, %cst_71 [1] : vector<7x7xf32> to vector<7xf32>
    %123 = vector.shape_cast %122 : vector<7xf32> to vector<7x1xf32>
    %124 = arith.addf %121, %123 : vector<7x1xf32>
    %c2_72 = arith.constant 2 : index
    %c0_73 = arith.constant 0 : index
    %c0_74 = arith.constant 0 : index
    %125 = vector.load %arg13[%c2_72, %c0_73, %c0_74] : memref<4x7x1xf32, #tpu.memory_space<vmem>>, vector<1x7x1xf32>
    %126 = vector.shape_cast %125 : vector<1x7x1xf32> to vector<7x1xf32>
    %127 = vector.shape_cast %124 : vector<7x1xf32> to vector<1x7x1xf32>
    tpu.vector_store %arg13[%c2_72, %c0_73, %c0_74], %127 {strides = array<i32>} : memref<4x7x1xf32, #tpu.memory_space<vmem>>, vector<1x7x1xf32>,
    %c2_75 = arith.constant 2 : index
    %c0_76 = arith.constant 0 : index
    %c0_77 = arith.constant 0 : index
    %128 = vector.load %arg12[%c2_75, %c0_76, %c0_77] : memref<4x7x1xf32, #tpu.memory_space<vmem>>, vector<1x7x1xf32>
    %129 = vector.shape_cast %128 : vector<1x7x1xf32> to vector<7x1xf32>
    %130 = vector.shape_cast %102 : vector<7x1xf32> to vector<1x7x1xf32>
    tpu.vector_store %arg12[%c2_75, %c0_76, %c0_77], %130 {strides = array<i32>} : memref<4x7x1xf32, #tpu.memory_space<vmem>>, vector<1x7x1xf32>,
    %131 = vector.extract_strided_slice %4 {offsets = [0, 24], sizes = [7, 8], strides = [1, 1]} : vector<7x32xbf16> to vector<7x8xbf16>
    %132 = vector.extract_strided_slice %6 {offsets = [0, 24], sizes = [7, 8], strides = [1, 1]} : vector<7x32xbf16> to vector<7x8xbf16>
    %cst_78 = arith.constant dense<0.000000e+00> : vector<7x7xf32>
    %133 = tpu.matmul %131, %132, %cst_78 {dimension_numbers = #tpu.dot_dimension_numbers<[1], [1], [0], [0], [0, 0, 1, 0], [], []>} : vector<7x8xbf16>, vector<7x8xbf16>, vector<7x7xf32> -> vector<7x7xf32>
    %cst_79 = arith.constant 0.353553385 : f32
    %134 = vector.broadcast %cst_79 : f32 to vector<7x7xf32>
    %135 = arith.mulf %133, %134 : vector<7x7xf32>
    %136 = vector.broadcast %10 : vector<1x7xf32> to vector<7x7xf32>
    %137 = arith.addf %135, %136 : vector<7x7xf32>
    %c3 = arith.constant 3 : index
    %c0_80 = arith.constant 0 : index
    %c0_81 = arith.constant 0 : index
    %138 = vector.load %arg12[%c3, %c0_80, %c0_81] : memref<4x7x1xf32, #tpu.memory_space<vmem>>, vector<1x7x1xf32>
    %139 = vector.shape_cast %138 : vector<1x7x1xf32> to vector<7x1xf32>
    %cst_82 = arith.constant dense<0xFF800000> : vector<7xf32>
    %140 = vector.multi_reduction <maximumf>, %137, %cst_82 [1] : vector<7x7xf32> to vector<7xf32>
    %141 = vector.shape_cast %140 : vector<7xf32> to vector<7x1xf32>
    %142 = arith.maximumf %139, %141 : vector<7x1xf32>
    %143 = arith.subf %139, %142 : vector<7x1xf32>
    %144 = math.exp %143 : vector<7x1xf32>
    %145 = vector.broadcast %142 : vector<7x1xf32> to vector<7x7xf32>
    %146 = arith.subf %137, %145 : vector<7x7xf32>
    %147 = math.exp %146 : vector<7x7xf32>
    %148 = arith.truncf %147 : vector<7x7xf32> to vector<7x7xbf16>
    %149 = vector.extract_strided_slice %8 {offsets = [0, 24], sizes = [7, 8], strides = [1, 1]} : vector<7x32xbf16> to vector<7x8xbf16>
    %cst_83 = arith.constant dense<0.000000e+00> : vector<7x8xf32>
    %150 = tpu.matmul %148, %149, %cst_83 {dimension_numbers = #tpu.dot_dimension_numbers<[1], [0], [0], [1], [0, 0, 1, 1], [], []>} : vector<7x7xbf16>, vector<7x8xbf16>, vector<7x8xf32> -> vector<7x8xf32>
    %c3_84 = arith.constant 3 : index
    %c0_85 = arith.constant 0 : index
    %c0_86 = arith.constant 0 : index
    %151 = vector.load %arg11[%c3_84, %c0_85, %c0_86] : memref<4x7x8xf32, #tpu.memory_space<vmem>>, vector<1x7x8xf32>
    %152 = vector.shape_cast %151 : vector<1x7x8xf32> to vector<7x8xf32>
    %153 = vector.broadcast %144 : vector<7x1xf32> to vector<7x8xf32>
    %154 = arith.mulf %153, %152 : vector<7x8xf32>
    %155 = arith.addf %154, %150 : vector<7x8xf32>
    %c3_87 = arith.constant 3 : index
    %c0_88 = arith.constant 0 : index
    %c0_89 = arith.constant 0 : index
    %156 = vector.load %arg11[%c3_87, %c0_88, %c0_89] : memref<4x7x8xf32, #tpu.memory_space<vmem>>, vector<1x7x8xf32>
    %157 = vector.shape_cast %156 : vector<1x7x8xf32> to vector<7x8xf32>
    %158 = vector.shape_cast %155 : vector<7x8xf32> to vector<1x7x8xf32>
    tpu.vector_store %arg11[%c3_87, %c0_88, %c0_89], %158 {strides = array<i32>} : memref<4x7x8xf32, #tpu.memory_space<vmem>>, vector<1x7x8xf32>,
    %c3_90 = arith.constant 3 : index
    %c0_91 = arith.constant 0 : index
    %c0_92 = arith.constant 0 : index
    %159 = vector.load %arg13[%c3_90, %c0_91, %c0_92] : memref<4x7x1xf32, #tpu.memory_space<vmem>>, vector<1x7x1xf32>
    %160 = vector.shape_cast %159 : vector<1x7x1xf32> to vector<7x1xf32>
    %161 = arith.mulf %144, %160 : vector<7x1xf32>
    %cst_93 = arith.constant dense<0.000000e+00> : vector<7xf32>
    %162 = vector.multi_reduction <add>, %147, %cst_93 [1] : vector<7x7xf32> to vector<7xf32>
    %163 = vector.shape_cast %162 : vector<7xf32> to vector<7x1xf32>
    %164 = arith.addf %161, %163 : vector<7x1xf32>
    %c3_94 = arith.constant 3 : index
    %c0_95 = arith.constant 0 : index
    %c0_96 = arith.constant 0 : index
    %165 = vector.load %arg13[%c3_94, %c0_95, %c0_96] : memref<4x7x1xf32, #tpu.memory_space<vmem>>, vector<1x7x1xf32>
    %166 = vector.shape_cast %165 : vector<1x7x1xf32> to vector<7x1xf32>
    %167 = vector.shape_cast %164 : vector<7x1xf32> to vector<1x7x1xf32>
    tpu.vector_store %arg13[%c3_94, %c0_95, %c0_96], %167 {strides = array<i32>} : memref<4x7x1xf32, #tpu.memory_space<vmem>>, vector<1x7x1xf32>,
    %c3_97 = arith.constant 3 : index
    %c0_98 = arith.constant 0 : index
    %c0_99 = arith.constant 0 : index
    %168 = vector.load %arg12[%c3_97, %c0_98, %c0_99] : memref<4x7x1xf32, #tpu.memory_space<vmem>>, vector<1x7x1xf32>
    %169 = vector.shape_cast %168 : vector<1x7x1xf32> to vector<7x1xf32>
    %170 = vector.shape_cast %142 : vector<7x1xf32> to vector<1x7x1xf32>
    tpu.vector_store %arg12[%c3_97, %c0_98, %c0_99], %170 {strides = array<i32>} : memref<4x7x1xf32, #tpu.memory_space<vmem>>, vector<1x7x1xf32>,
    %c0_i32_100 = arith.constant 0 : i32
    %171 = arith.cmpi eq, %arg2, %c0_i32_100 : i32
    %172 = arith.extui %171 : i1 to i32
    %c0_i32_101 = arith.constant 0 : i32
    %173 = arith.cmpi ne, %172, %c0_i32_101 : i32
    scf.if %173 {
      %c0_102 = arith.constant 0 : index
      %c0_103 = arith.constant 0 : index
      %c0_104 = arith.constant 0 : index
      %174 = vector.load %arg11[%c0_102, %c0_103, %c0_104] : memref<4x7x8xf32, #tpu.memory_space<vmem>>, vector<1x7x8xf32>
      %175 = vector.shape_cast %174 : vector<1x7x8xf32> to vector<7x8xf32>
      %c0_105 = arith.constant 0 : index
      %c0_106 = arith.constant 0 : index
      %c0_107 = arith.constant 0 : index
      %176 = vector.load %arg13[%c0_105, %c0_106, %c0_107] : memref<4x7x1xf32, #tpu.memory_space<vmem>>, vector<1x7x1xf32>
      %177 = vector.shape_cast %176 : vector<1x7x1xf32> to vector<7x1xf32>
      %178 = tpu.reciprocal %177 {approx = true} : vector<7x1xf32> -> vector<7x1xf32>
      %179 = vector.broadcast %178 : vector<7x1xf32> to vector<7x8xf32>
      %180 = arith.mulf %175, %179 : vector<7x8xf32>
      %c1_108 = arith.constant 1 : index
      %c0_109 = arith.constant 0 : index
      %c0_110 = arith.constant 0 : index
      %181 = vector.load %arg11[%c1_108, %c0_109, %c0_110] : memref<4x7x8xf32, #tpu.memory_space<vmem>>, vector<1x7x8xf32>
      %182 = vector.shape_cast %181 : vector<1x7x8xf32> to vector<7x8xf32>
      %c1_111 = arith.constant 1 : index
      %c0_112 = arith.constant 0 : index
      %c0_113 = arith.constant 0 : index
      %183 = vector.load %arg13[%c1_111, %c0_112, %c0_113] : memref<4x7x1xf32, #tpu.memory_space<vmem>>, vector<1x7x1xf32>
      %184 = vector.shape_cast %183 : vector<1x7x1xf32> to vector<7x1xf32>
      %185 = tpu.reciprocal %184 {approx = true} : vector<7x1xf32> -> vector<7x1xf32>
      %186 = vector.broadcast %185 : vector<7x1xf32> to vector<7x8xf32>
      %187 = arith.mulf %182, %186 : vector<7x8xf32>
      %c2_114 = arith.constant 2 : index
      %c0_115 = arith.constant 0 : index
      %c0_116 = arith.constant 0 : index
      %188 = vector.load %arg11[%c2_114, %c0_115, %c0_116] : memref<4x7x8xf32, #tpu.memory_space<vmem>>, vector<1x7x8xf32>
      %189 = vector.shape_cast %188 : vector<1x7x8xf32> to vector<7x8xf32>
      %c2_117 = arith.constant 2 : index
      %c0_118 = arith.constant 0 : index
      %c0_119 = arith.constant 0 : index
      %190 = vector.load %arg13[%c2_117, %c0_118, %c0_119] : memref<4x7x1xf32, #tpu.memory_space<vmem>>, vector<1x7x1xf32>
      %191 = vector.shape_cast %190 : vector<1x7x1xf32> to vector<7x1xf32>
      %192 = tpu.reciprocal %191 {approx = true} : vector<7x1xf32> -> vector<7x1xf32>
      %193 = vector.broadcast %192 : vector<7x1xf32> to vector<7x8xf32>
      %194 = arith.mulf %189, %193 : vector<7x8xf32>
      %c3_120 = arith.constant 3 : index
      %c0_121 = arith.constant 0 : index
      %c0_122 = arith.constant 0 : index
      %195 = vector.load %arg11[%c3_120, %c0_121, %c0_122] : memref<4x7x8xf32, #tpu.memory_space<vmem>>, vector<1x7x8xf32>
      %196 = vector.shape_cast %195 : vector<1x7x8xf32> to vector<7x8xf32>
      %c3_123 = arith.constant 3 : index
      %c0_124 = arith.constant 0 : index
      %c0_125 = arith.constant 0 : index
      %197 = vector.load %arg13[%c3_123, %c0_124, %c0_125] : memref<4x7x1xf32, #tpu.memory_space<vmem>>, vector<1x7x1xf32>
      %198 = vector.shape_cast %197 : vector<1x7x1xf32> to vector<7x1xf32>
      %199 = tpu.reciprocal %198 {approx = true} : vector<7x1xf32> -> vector<7x1xf32>
      %200 = vector.broadcast %199 : vector<7x1xf32> to vector<7x8xf32>
      %201 = arith.mulf %196, %200 : vector<7x8xf32>
      %202 = tpu.concatenate %180, %187, %194, %201 in 1 : vector<7x8xf32>, vector<7x8xf32>, vector<7x8xf32>, vector<7x8xf32> -> vector<7x32xf32>
      %203 = arith.truncf %202 : vector<7x32xf32> to vector<7x32xbf16>
      %c0_126 = arith.constant 0 : index
      %c0_127 = arith.constant 0 : index
      %204 = vector.load %arg8[%c0_126, %c0_127] : memref<32x32xbf16, #tpu.memory_space<vmem>>, vector<32x32xbf16>
      %cst_128 = arith.constant dense<0.000000e+00> : vector<7x32xf32>
      %205 = tpu.matmul %203, %204, %cst_128 {dimension_numbers = #tpu.dot_dimension_numbers<[1], [0], [0], [1], [0, 0, 1, 1], [], []>} : vector<7x32xbf16>, vector<32x32xbf16>, vector<7x32xf32> -> vector<7x32xf32>
      %c0_129 = arith.constant 0 : index
      %c0_130 = arith.constant 0 : index
      %206 = vector.load %arg9[%c0_129, %c0_130] : memref<1x32xf32, #tpu.memory_space<vmem>>, vector<1x32xf32>
      %207 = vector.broadcast %206 : vector<1x32xf32> to vector<7x32xf32>
      %208 = arith.addf %205, %207 : vector<7x32xf32>
      %c0_131 = arith.constant 0 : index
      %c0_132 = arith.constant 0 : index
      %c0_133 = arith.constant 0 : index
      %209 = vector.load %arg7[%c0_131, %c0_132, %c0_133] : memref<1x7x32xbf16, #tpu.memory_space<vmem>>, vector<1x7x32xbf16>
      %210 = vector.shape_cast %209 : vector<1x7x32xbf16> to vector<7x32xbf16>
      %211 = arith.extf %210 : vector<7x32xbf16> to vector<7x32xf32>
      %212 = arith.addf %208, %211 : vector<7x32xf32>
      %213 = arith.truncf %212 : vector<7x32xf32> to vector<7x32xbf16>
      %c0_134 = arith.constant 0 : index
      %c0_135 = arith.constant 0 : index
      %c0_136 = arith.constant 0 : index
      %214 = vector.load %arg10[%c0_134, %c0_135, %c0_136] : memref<1x7x32xbf16, #tpu.memory_space<vmem>>, vector<1x7x32xbf16>
      %215 = vector.shape_cast %214 : vector<1x7x32xbf16> to vector<7x32xbf16>
      %216 = vector.shape_cast %213 : vector<7x32xbf16> to vector<1x7x32xbf16>
      tpu.vector_store %arg10[%c0_134, %c0_135, %c0_136], %216 {strides = array<i32>} : memref<1x7x32xbf16, #tpu.memory_space<vmem>>, vector<1x7x32xbf16>,
    } else {
    }
    return
  }
  func.func @transform_0(%arg0: i32, %arg1: i32, %arg2: i32) -> (i32, i32, i32) {
    %c0_i32 = arith.constant 0 : i32
    %c0_i32_0 = arith.constant 0 : i32
    return %arg0, %arg1, %c0_i32 : i32, i32, i32
  }
  func.func @transform_1(%arg0: i32, %arg1: i32, %arg2: i32) -> (i32, i32, i32) {
    %c0_i32 = arith.constant 0 : i32
    %c0_i32_0 = arith.constant 0 : i32
    return %arg0, %arg2, %c0_i32 : i32, i32, i32
  }
  func.func @transform_2(%arg0: i32, %arg1: i32, %arg2: i32) -> (i32, i32, i32) {
    %c0_i32 = arith.constant 0 : i32
    %c0_i32_0 = arith.constant 0 : i32
    return %arg0, %arg2, %c0_i32 : i32, i32, i32
  }
  func.func @transform_3(%arg0: i32, %arg1: i32, %arg2: i32) -> (i32, i32, i32) {
    %c0_i32 = arith.constant 0 : i32
    %c0_i32_0 = arith.constant 0 : i32
    return %arg0, %c0_i32, %arg2 : i32, i32, i32
  }
  func.func @transform_4(%arg0: i32, %arg1: i32, %arg2: i32) -> (i32, i32, i32) {
    %c0_i32 = arith.constant 0 : i32
    %c0_i32_0 = arith.constant 0 : i32
    return %arg0, %arg1, %c0_i32 : i32, i32, i32
  }
  func.func @transform_5(%arg0: i32, %arg1: i32, %arg2: i32) -> (i32, i32) {
    %c0_i32 = arith.constant 0 : i32
    %c0_i32_0 = arith.constant 0 : i32
    %c0_i32_1 = arith.constant 0 : i32
    return %c0_i32, %c0_i32_0 : i32, i32
  }
  func.func @transform_6(%arg0: i32, %arg1: i32, %arg2: i32) -> (i32, i32) {
    %c0_i32 = arith.constant 0 : i32
    %c0_i32_0 = arith.constant 0 : i32
    %c0_i32_1 = arith.constant 0 : i32
    return %c0_i32, %c0_i32_0 : i32, i32
  }
  func.func @transform_7(%arg0: i32, %arg1: i32, %arg2: i32) -> (i32, i32, i32) {
    %c0_i32 = arith.constant 0 : i32
    %c0_i32_0 = arith.constant 0 : i32
    return %arg0, %arg1, %c0_i32 : i32, i32, i32
  }
}

module attributes {stable_mosaic.version = 11 : i64} {
  func.func @_ln_ffn_kernel(%arg0: i32, %arg1: memref<14x32xbf16, #tpu.memory_space<vmem>>, %arg2: memref<1x32xf32, #tpu.memory_space<vmem>>, %arg3: memref<1x32xf32, #tpu.memory_space<vmem>>, %arg4: memref<32x64xbf16, #tpu.memory_space<vmem>>, %arg5: memref<1x64xf32, #tpu.memory_space<vmem>>, %arg6: memref<64x32xbf16, #tpu.memory_space<vmem>>, %arg7: memref<1x32xf32, #tpu.memory_space<vmem>>, %arg8: memref<14x32xbf16, #tpu.memory_space<vmem>>) attributes {dimension_semantics = [#tpu.dimension_semantics<parallel>], iteration_bounds = array<i64: 1>, scalar_prefetch = 0 : i64, scratch_operands = 0 : i64, tpu.core_type = #tpu.core_type<tc>, window_params = [{transform_indices = @transform_0, window_bounds = array<i64: 14, 32>}, {pipeline_mode = #tpu.pipeline_mode<synchronous>, transform_indices = @transform_1, window_bounds = array<i64: 1, 32>}, {pipeline_mode = #tpu.pipeline_mode<synchronous>, transform_indices = @transform_2, window_bounds = array<i64: 1, 32>}, {pipeline_mode = #tpu.pipeline_mode<synchronous>, transform_indices = @transform_3, window_bounds = array<i64: 32, 64>}, {pipeline_mode = #tpu.pipeline_mode<synchronous>, transform_indices = @transform_4, window_bounds = array<i64: 1, 64>}, {pipeline_mode = #tpu.pipeline_mode<synchronous>, transform_indices = @transform_5, window_bounds = array<i64: 64, 32>}, {pipeline_mode = #tpu.pipeline_mode<synchronous>, transform_indices = @transform_6, window_bounds = array<i64: 1, 32>}, {transform_indices = @transform_7, window_bounds = array<i64: 14, 32>}]} {
    %c0 = arith.constant 0 : index
    %c0_0 = arith.constant 0 : index
    %0 = vector.load %arg1[%c0, %c0_0] : memref<14x32xbf16, #tpu.memory_space<vmem>>, vector<14x32xbf16>
    %1 = arith.extf %0 : vector<14x32xbf16> to vector<14x32xf32>
    %cst = arith.constant dense<0.000000e+00> : vector<14xf32>
    %2 = vector.multi_reduction <add>, %1, %cst [1] : vector<14x32xf32> to vector<14xf32>
    %3 = vector.shape_cast %2 : vector<14xf32> to vector<14x1xf32>
    %cst_1 = arith.constant 3.200000e+01 : f32
    %4 = vector.broadcast %cst_1 : f32 to vector<14x1xf32>
    %5 = arith.divf %3, %4 : vector<14x1xf32>
    %6 = vector.broadcast %5 : vector<14x1xf32> to vector<14x32xf32>
    %7 = arith.subf %1, %6 : vector<14x32xf32>
    %8 = arith.mulf %7, %7 : vector<14x32xf32>
    %cst_2 = arith.constant dense<0.000000e+00> : vector<14xf32>
    %9 = vector.multi_reduction <add>, %8, %cst_2 [1] : vector<14x32xf32> to vector<14xf32>
    %10 = vector.shape_cast %9 : vector<14xf32> to vector<14x1xf32>
    %cst_3 = arith.constant 3.200000e+01 : f32
    %11 = vector.broadcast %cst_3 : f32 to vector<14x1xf32>
    %12 = arith.divf %10, %11 : vector<14x1xf32>
    %13 = vector.broadcast %5 : vector<14x1xf32> to vector<14x32xf32>
    %14 = arith.subf %1, %13 : vector<14x32xf32>
    %cst_4 = arith.constant 9.99999996E-13 : f32
    %15 = vector.broadcast %cst_4 : f32 to vector<14x1xf32>
    %16 = arith.addf %12, %15 : vector<14x1xf32>
    %17 = math.rsqrt %16 : vector<14x1xf32>
    %18 = vector.broadcast %17 : vector<14x1xf32> to vector<14x32xf32>
    %19 = arith.mulf %14, %18 : vector<14x32xf32>
    %c0_5 = arith.constant 0 : index
    %c0_6 = arith.constant 0 : index
    %20 = vector.load %arg2[%c0_5, %c0_6] : memref<1x32xf32, #tpu.memory_space<vmem>>, vector<1x32xf32>
    %21 = vector.broadcast %20 : vector<1x32xf32> to vector<14x32xf32>
    %22 = arith.mulf %19, %21 : vector<14x32xf32>
    %c0_7 = arith.constant 0 : index
    %c0_8 = arith.constant 0 : index
    %23 = vector.load %arg3[%c0_7, %c0_8] : memref<1x32xf32, #tpu.memory_space<vmem>>, vector<1x32xf32>
    %24 = vector.broadcast %23 : vector<1x32xf32> to vector<14x32xf32>
    %25 = arith.addf %22, %24 : vector<14x32xf32>
    %26 = arith.truncf %25 : vector<14x32xf32> to vector<14x32xbf16>
    %c0_9 = arith.constant 0 : index
    %c0_10 = arith.constant 0 : index
    %27 = vector.load %arg4[%c0_9, %c0_10] : memref<32x64xbf16, #tpu.memory_space<vmem>>, vector<32x64xbf16>
    %cst_11 = arith.constant dense<0.000000e+00> : vector<14x64xf32>
    %28 = tpu.matmul %26, %27, %cst_11 {dimension_numbers = #tpu.dot_dimension_numbers<[1], [0], [0], [1], [0, 0, 1, 1], [], []>} : vector<14x32xbf16>, vector<32x64xbf16>, vector<14x64xf32> -> vector<14x64xf32>
    %c0_12 = arith.constant 0 : index
    %c0_13 = arith.constant 0 : index
    %29 = vector.load %arg5[%c0_12, %c0_13] : memref<1x64xf32, #tpu.memory_space<vmem>>, vector<1x64xf32>
    %30 = vector.broadcast %29 : vector<1x64xf32> to vector<14x64xf32>
    %31 = arith.addf %28, %30 : vector<14x64xf32>
    %cst_14 = arith.constant 0.000000e+00 : f32
    %32 = vector.broadcast %cst_14 : f32 to vector<14x64xf32>
    %33 = arith.maximumf %31, %32 : vector<14x64xf32>
    %34 = arith.truncf %33 : vector<14x64xf32> to vector<14x64xbf16>
    %c0_15 = arith.constant 0 : index
    %c0_16 = arith.constant 0 : index
    %35 = vector.load %arg6[%c0_15, %c0_16] : memref<64x32xbf16, #tpu.memory_space<vmem>>, vector<64x32xbf16>
    %cst_17 = arith.constant dense<0.000000e+00> : vector<14x32xf32>
    %36 = tpu.matmul %34, %35, %cst_17 {dimension_numbers = #tpu.dot_dimension_numbers<[1], [0], [0], [1], [0, 0, 1, 1], [], []>} : vector<14x64xbf16>, vector<64x32xbf16>, vector<14x32xf32> -> vector<14x32xf32>
    %c0_18 = arith.constant 0 : index
    %c0_19 = arith.constant 0 : index
    %37 = vector.load %arg7[%c0_18, %c0_19] : memref<1x32xf32, #tpu.memory_space<vmem>>, vector<1x32xf32>
    %38 = vector.broadcast %37 : vector<1x32xf32> to vector<14x32xf32>
    %39 = arith.addf %36, %38 : vector<14x32xf32>
    %40 = arith.addf %1, %39 : vector<14x32xf32>
    %41 = arith.truncf %40 : vector<14x32xf32> to vector<14x32xbf16>
    %c0_20 = arith.constant 0 : index
    %c0_21 = arith.constant 0 : index
    %42 = vector.load %arg8[%c0_20, %c0_21] : memref<14x32xbf16, #tpu.memory_space<vmem>>, vector<14x32xbf16>
    tpu.vector_store %arg8[%c0_20, %c0_21], %41 {strides = array<i32>} : memref<14x32xbf16, #tpu.memory_space<vmem>>, vector<14x32xbf16>,
    return
  }
  func.func @transform_0(%arg0: i32) -> (i32, i32) {
    %c0_i32 = arith.constant 0 : i32
    %c0_i32_0 = arith.constant 0 : i32
    return %arg0, %c0_i32 : i32, i32
  }
  func.func @transform_1(%arg0: i32) -> (i32, i32) {
    %c0_i32 = arith.constant 0 : i32
    %c0_i32_0 = arith.constant 0 : i32
    %c0_i32_1 = arith.constant 0 : i32
    return %c0_i32, %c0_i32_0 : i32, i32
  }
  func.func @transform_2(%arg0: i32) -> (i32, i32) {
    %c0_i32 = arith.constant 0 : i32
    %c0_i32_0 = arith.constant 0 : i32
    %c0_i32_1 = arith.constant 0 : i32
    return %c0_i32, %c0_i32_0 : i32, i32
  }
  func.func @transform_3(%arg0: i32) -> (i32, i32) {
    %c0_i32 = arith.constant 0 : i32
    %c0_i32_0 = arith.constant 0 : i32
    %c0_i32_1 = arith.constant 0 : i32
    return %c0_i32, %c0_i32_0 : i32, i32
  }
  func.func @transform_4(%arg0: i32) -> (i32, i32) {
    %c0_i32 = arith.constant 0 : i32
    %c0_i32_0 = arith.constant 0 : i32
    %c0_i32_1 = arith.constant 0 : i32
    return %c0_i32, %c0_i32_0 : i32, i32
  }
  func.func @transform_5(%arg0: i32) -> (i32, i32) {
    %c0_i32 = arith.constant 0 : i32
    %c0_i32_0 = arith.constant 0 : i32
    %c0_i32_1 = arith.constant 0 : i32
    return %c0_i32, %c0_i32_0 : i32, i32
  }
  func.func @transform_6(%arg0: i32) -> (i32, i32) {
    %c0_i32 = arith.constant 0 : i32
    %c0_i32_0 = arith.constant 0 : i32
    %c0_i32_1 = arith.constant 0 : i32
    return %c0_i32, %c0_i32_0 : i32, i32
  }
  func.func @transform_7(%arg0: i32) -> (i32, i32) {
    %c0_i32 = arith.constant 0 : i32
    %c0_i32_0 = arith.constant 0 : i32
    return %arg0, %c0_i32 : i32, i32
  }
}

module attributes {stable_mosaic.version = 11 : i64} {
  func.func @_ln_kernel(%arg0: i32, %arg1: memref<14x32xbf16, #tpu.memory_space<vmem>>, %arg2: memref<1x32xf32, #tpu.memory_space<vmem>>, %arg3: memref<1x32xf32, #tpu.memory_space<vmem>>, %arg4: memref<14x32xf32, #tpu.memory_space<vmem>>) attributes {dimension_semantics = [#tpu.dimension_semantics<parallel>], iteration_bounds = array<i64: 1>, scalar_prefetch = 0 : i64, scratch_operands = 0 : i64, tpu.core_type = #tpu.core_type<tc>, window_params = [{transform_indices = @transform_0, window_bounds = array<i64: 14, 32>}, {pipeline_mode = #tpu.pipeline_mode<synchronous>, transform_indices = @transform_1, window_bounds = array<i64: 1, 32>}, {pipeline_mode = #tpu.pipeline_mode<synchronous>, transform_indices = @transform_2, window_bounds = array<i64: 1, 32>}, {transform_indices = @transform_3, window_bounds = array<i64: 14, 32>}]} {
    %c0 = arith.constant 0 : index
    %c0_0 = arith.constant 0 : index
    %0 = vector.load %arg1[%c0, %c0_0] : memref<14x32xbf16, #tpu.memory_space<vmem>>, vector<14x32xbf16>
    %1 = arith.extf %0 : vector<14x32xbf16> to vector<14x32xf32>
    %cst = arith.constant dense<0.000000e+00> : vector<14xf32>
    %2 = vector.multi_reduction <add>, %1, %cst [1] : vector<14x32xf32> to vector<14xf32>
    %3 = vector.shape_cast %2 : vector<14xf32> to vector<14x1xf32>
    %cst_1 = arith.constant 3.200000e+01 : f32
    %4 = vector.broadcast %cst_1 : f32 to vector<14x1xf32>
    %5 = arith.divf %3, %4 : vector<14x1xf32>
    %6 = vector.broadcast %5 : vector<14x1xf32> to vector<14x32xf32>
    %7 = arith.subf %1, %6 : vector<14x32xf32>
    %8 = arith.mulf %7, %7 : vector<14x32xf32>
    %cst_2 = arith.constant dense<0.000000e+00> : vector<14xf32>
    %9 = vector.multi_reduction <add>, %8, %cst_2 [1] : vector<14x32xf32> to vector<14xf32>
    %10 = vector.shape_cast %9 : vector<14xf32> to vector<14x1xf32>
    %cst_3 = arith.constant 3.200000e+01 : f32
    %11 = vector.broadcast %cst_3 : f32 to vector<14x1xf32>
    %12 = arith.divf %10, %11 : vector<14x1xf32>
    %13 = vector.broadcast %5 : vector<14x1xf32> to vector<14x32xf32>
    %14 = arith.subf %1, %13 : vector<14x32xf32>
    %cst_4 = arith.constant 9.99999996E-13 : f32
    %15 = vector.broadcast %cst_4 : f32 to vector<14x1xf32>
    %16 = arith.addf %12, %15 : vector<14x1xf32>
    %17 = math.rsqrt %16 : vector<14x1xf32>
    %18 = vector.broadcast %17 : vector<14x1xf32> to vector<14x32xf32>
    %19 = arith.mulf %14, %18 : vector<14x32xf32>
    %c0_5 = arith.constant 0 : index
    %c0_6 = arith.constant 0 : index
    %20 = vector.load %arg2[%c0_5, %c0_6] : memref<1x32xf32, #tpu.memory_space<vmem>>, vector<1x32xf32>
    %21 = vector.broadcast %20 : vector<1x32xf32> to vector<14x32xf32>
    %22 = arith.mulf %19, %21 : vector<14x32xf32>
    %c0_7 = arith.constant 0 : index
    %c0_8 = arith.constant 0 : index
    %23 = vector.load %arg3[%c0_7, %c0_8] : memref<1x32xf32, #tpu.memory_space<vmem>>, vector<1x32xf32>
    %24 = vector.broadcast %23 : vector<1x32xf32> to vector<14x32xf32>
    %25 = arith.addf %22, %24 : vector<14x32xf32>
    %c0_9 = arith.constant 0 : index
    %c0_10 = arith.constant 0 : index
    %26 = vector.load %arg4[%c0_9, %c0_10] : memref<14x32xf32, #tpu.memory_space<vmem>>, vector<14x32xf32>
    tpu.vector_store %arg4[%c0_9, %c0_10], %25 {strides = array<i32>} : memref<14x32xf32, #tpu.memory_space<vmem>>, vector<14x32xf32>,
    return
  }
  func.func @transform_0(%arg0: i32) -> (i32, i32) {
    %c0_i32 = arith.constant 0 : i32
    %c0_i32_0 = arith.constant 0 : i32
    return %arg0, %c0_i32 : i32, i32
  }
  func.func @transform_1(%arg0: i32) -> (i32, i32) {
    %c0_i32 = arith.constant 0 : i32
    %c0_i32_0 = arith.constant 0 : i32
    %c0_i32_1 = arith.constant 0 : i32
    return %c0_i32, %c0_i32_0 : i32, i32
  }
  func.func @transform_2(%arg0: i32) -> (i32, i32) {
    %c0_i32 = arith.constant 0 : i32
    %c0_i32_0 = arith.constant 0 : i32
    %c0_i32_1 = arith.constant 0 : i32
    return %c0_i32, %c0_i32_0 : i32, i32
  }
  func.func @transform_3(%arg0: i32) -> (i32, i32) {
    %c0_i32 = arith.constant 0 : i32
    %c0_i32_0 = arith.constant 0 : i32
    return %arg0, %c0_i32 : i32, i32
  }
}

</mosaic_0001>

<bundles_post_ra>
// kernel: encoder_forward.10
= control target key start
LH: loop header
LB: loop body
LE: loop exit
PB: predicated region body
PF: predicated region fallthrough
CT: control target
= control target key end

     0   :  { %s1265_s12 = smov 0   ;;  %s1267_s13 = smov 0   ;;  %s1535_s0 = inlined_call_operand.vmem [shape: f32[512,9], index: 0, kind: input, shape index: {}]   ;;  %s1536_s1 = inlined_call_operand.vmem [shape: bf16[9,32], index: 1, kind: input, shape index: {}]   ;;  %s1537_s2 = inlined_call_operand.vmem [shape: f32[1,32], index: 2, kind: input, shape index: {}]   ;;  %s1538_s3 = inlined_call_operand.vmem [shape: bf16[512,32], index: 3, kind: output, shape index: {}]  }
   0x1   :  { %s1269_s14 = smov 0  }
   0x2 LB: > { %s32_s15 = sadd.s32 1, %s1237_s13  ;;  %p1050_p0 = scmp.ge.s32.totalorder %s1241_s14, 1  ;;  %s1241_s14 = sphi %s1269_s14, %s13_s14   ;;  %s1237_s13 = sphi %s1267_s13, %s1541_s13   ;;  %s1233_s12 = sphi %s1265_s12, %s1540_s12  }
   0x3   : > { %p34_p1 = scmp.ge.s32.totalorder %s32_s15, 2  ;;  %p188_p2 = scmp.lt.s32.totalorder %s1241_s14, 3 }
   0x5   : > { %s1543_s15 = smov (%p34_p1, %s32_s15), 0  ;;  %p189_p3 = pnand %p1050_p0, %p188_p2 }
   0x6   : > { %v1218_v0 = vld [vmem:[%s1536_s1] sm:$0x1f] (!%p189_p3)   ;;  %vm433_vm0 = vcmask (!%p189_p3), 1043456   ;;  %vm434_vm1 = vcmask (!%p189_p3), 1044480   ;;  %s1051_s18 = sshll.u32 (!%p189_p3), %s1233_s12, 5  ;;  %v1243_v1 = vmov (!%p189_p3), 65535  }
   0x7   : > { %192 = sbr.rel (%p189_p3) target bundleno = 284 (0x11c), region = 32  ;;  %v435_v2 = vsel (!%p189_p3), %vm433_vm0, 4294967295, %v1243_v1  ;;  %p1291_p4 = scmp.lt.s32.totalorder (!%p189_p3), %s1051_s18, 63  ;;  %vm264_vm2 = vcmask (!%p189_p3), 261120   ;;  %v1244_v4 = vmov (!%p189_p3), 0.0   ;;  %vm384_vm3 = vcmask (!%p189_p3), 72704  }
   0x8   : > { %v436_v3 = vsel (!%p189_p3), %vm434_vm1, %v435_v2, 0  ;;  %267 = vst.msk [vmem:[#allocation2 + $0x10] sm:$0xff] (!%p189_p3), %vm264_vm2, %v1244_v4  ;;  %265 = vst.msk [vmem:[#allocation2] sm:$0xff] (!%p189_p3), %vm264_vm2, %v1244_v4  ;;  %vm900_vm4 = vcmask (!%p189_p3), 257024  }
   0x9   : > { %266 = vst.msk [vmem:[#allocation2 + $0x8] sm:$0xff] (!%p189_p3), %vm264_vm2, %v1244_v4  ;;  %268 = vst.msk [vmem:[#allocation2 + $0x18] sm:$0xff] (!%p189_p3), %vm264_vm2, %v1244_v4  ;;  %v438_v5 = vand.u32 (!%p189_p3), %v1218_v0, %v436_v3 }
   0xa   : > { %269 = vst.msk [vmem:[#allocation2 + $0x20] sm:$0xff] (!%p189_p3), %vm264_vm2, %v1244_v4  ;;  %270 = vst.msk [vmem:[#allocation2 + $0x28] sm:$0xff] (!%p189_p3), %vm264_vm2, %v1244_v4 }
   0xb   : > { %271 = vst.msk [vmem:[#allocation2 + $0x30] sm:$0xff] (!%p189_p3), %vm264_vm2, %v1244_v4  ;;  %272 = vst.msk [vmem:[#allocation2 + $0x38] sm:$0xff] (!%p189_p3), %vm264_vm2, %v1244_v4  ;;  %1156 = vmatprep.subr.bf16.mxu0 (!%p189_p3), %v438_v5  ;;  %1190 = vmatprep.subr.bf16.mxu1 (!%p189_p3), %v438_v5 }
   0xc   : > { %273 = vst.msk [vmem:[#allocation2 + $0x40] sm:$0xff] (!%p189_p3), %vm264_vm2, %v1244_v4  ;;  %274 = vst.msk [vmem:[#allocation2 + $0x48] sm:$0xff] (!%p189_p3), %vm264_vm2, %v1244_v4  ;;  %1157 = vmatpush3.bf16.msra.mxu0 (!%p189_p3), %v438_v5  ;;  %1191 = vmatpush3.bf16.msra.mxu1 (!%p189_p3), %v438_v5 }
   0xd   : > { %275 = vst.msk [vmem:[#allocation2 + $0x50] sm:$0xff] (!%p189_p3), %vm264_vm2, %v1244_v4  ;;  %276 = vst.msk [vmem:[#allocation2 + $0x58] sm:$0xff] (!%p189_p3), %vm264_vm2, %v1244_v4 }
   0xe   : > { %277 = vst.msk [vmem:[#allocation2 + $0x60] sm:$0xff] %vm264_vm2, %v1244_v4  ;;  %278 = vst.msk [vmem:[#allocation2 + $0x68] sm:$0xff] %vm264_vm2, %v1244_v4  ;;  %s1545_s18 = smov (!%p1291_p4, %s1051_s18), 63 }
   0xf   : > { %279 = vst.msk [vmem:[#allocation2 + $0x70] sm:$0xff] %vm264_vm2, %v1244_v4  ;;  %280 = vst.msk [vmem:[#allocation2 + $0x78] sm:$0xff] %vm264_vm2, %v1244_v4  ;;  %s1052_s20 = sshll.u32 %s1545_s18, 3  ;;  %v299_v54 = vld [vmem:[#allocation2 + $0x10] sm:$0xff]  ;;  %v297_v56 = vld [vmem:[#allocation2] sm:$0xff]  ;;  %s1054_s26 = sshll.u32 %s1545_s18, 2 }
  0x10   : > { %281 = vst.msk [vmem:[#allocation2 + $0x80] sm:$0xff] %vm264_vm2, %v1244_v4  ;;  %282 = vst.msk [vmem:[#allocation2 + $0x88] sm:$0xff] %vm264_vm2, %v1244_v4  ;;  %s1337_s23 = scalar_lea.vmem %s1535_s0, %s1052_s20  ;;  %v300_v59 = vld [vmem:[#allocation2 + $0x18] sm:$0xff]  ;;  %v298_v0 = vld [vmem:[#allocation2 + $0x8] sm:$0xff]  ;;  %s1414_s29 = scalar_lea.vmem %s1538_s3, %s1054_s26 }
  0x11   : > { %283 = vst.msk [vmem:[#allocation2 + $0x90] sm:$0xff] %vm264_vm2, %v1244_v4  ;;  %284 = vst.msk [vmem:[#allocation2 + $0x98] sm:$0xff] %vm264_vm2, %v1244_v4  ;;  %v329_v6 = vld [vmem:[%s1337_s23] sm:$0xff]  ;;  %v330_v7 = vld [vmem:[%s1337_s23 + $0x8] sm:$0xff] }
  0x12   : > { %285 = vst.msk [vmem:[#allocation2 + $0xa0] sm:$0xff] %vm264_vm2, %v1244_v4  ;;  %286 = vst.msk [vmem:[#allocation2 + $0xa8] sm:$0xff] %vm264_vm2, %v1244_v4  ;;  %v345_v8 = vld [vmem:[%s1337_s23 + $0x80] sm:$0xff]  ;;  %v361_v9 = vpack.c.bf16 %v330_v7, %v329_v6  ;;  %v346_v10 = vld [vmem:[%s1337_s23 + $0x88] sm:$0xff] }
  0x13   : > { %287 = vst.msk [vmem:[#allocation2 + $0xb0] sm:$0xff] %vm264_vm2, %v1244_v4  ;;  %288 = vst.msk [vmem:[#allocation2 + $0xb8] sm:$0xff] %vm264_vm2, %v1244_v4  ;;  %v331_v11 = vld [vmem:[%s1337_s23 + $0x10] sm:$0xff]  ;;  %v332_v12 = vld [vmem:[%s1337_s23 + $0x18] sm:$0xff]  ;;  %v369_v13 = vpack.c.bf16 %v346_v10, %v345_v8 }
  0x14   : > { %289 = vst.msk [vmem:[#allocation2 + $0xc0] sm:$0xff] %vm264_vm2, %v1244_v4  ;;  %290 = vst.msk [vmem:[#allocation2 + $0xc8] sm:$0xff] %vm264_vm2, %v1244_v4  ;;  %v362_v14 = vpack.c.bf16 %v332_v12, %v331_v11  ;;  %v347_v15 = vld [vmem:[%s1337_s23 + $0x90] sm:$0xff]  ;;  %v348_v16 = vld [vmem:[%s1337_s23 + $0x98] sm:$0xff]  ;;  %1158 = vmatprep.mubr.msk.bf16.mxu0 %vm384_vm3, %v361_v9 }
  0x15   : > { %291 = vst.msk [vmem:[#allocation2 + $0xd0] sm:$0xff] %vm264_vm2, %v1244_v4  ;;  %292 = vst.msk [vmem:[#allocation2 + $0xd8] sm:$0xff] %vm264_vm2, %v1244_v4  ;;  %v333_v17 = vld [vmem:[%s1337_s23 + $0x20] sm:$0xff]  ;;  %v370_v18 = vpack.c.bf16 %v348_v16, %v347_v15  ;;  %v334_v19 = vld [vmem:[%s1337_s23 + $0x28] sm:$0xff]  ;;  %1174 = vmatprep.mubr.msk.bf16.mxu1 %vm384_vm3, %v369_v13 }
  0x16   : > { %293 = vst.msk [vmem:[#allocation2 + $0xe0] sm:$0xff] %vm264_vm2, %v1244_v4  ;;  %294 = vst.msk [vmem:[#allocation2 + $0xe8] sm:$0xff] %vm264_vm2, %v1244_v4  ;;  %v349_v20 = vld [vmem:[%s1337_s23 + $0xa0] sm:$0xff]  ;;  %v350_v21 = vld [vmem:[%s1337_s23 + $0xa8] sm:$0xff]  ;;  %1159 = vmatmul.mubr.msk.bf16.vlgmr.msra.gmra.mrb[0].mxu0 %vm384_vm3, %v362_v14  ;;  %v363_v22 = vpack.c.bf16 %v334_v19, %v333_v17 }
  0x17   : > { %295 = vst.msk [vmem:[#allocation2 + $0xf0] sm:$0xff] %vm264_vm2, %v1244_v4  ;;  %296 = vst.msk [vmem:[#allocation2 + $0xf8] sm:$0xff] %vm264_vm2, %v1244_v4  ;;  %v371_v23 = vpack.c.bf16 %v350_v21, %v349_v20  ;;  %1175 = vmatmul.mubr.msk.bf16.vlgmr.msra.gmra.mrb[0].mxu1 %vm384_vm3, %v370_v18  ;;  %v335_v24 = vld [vmem:[%s1337_s23 + $0x30] sm:$0xff]  ;;  %v336_v25 = vld [vmem:[%s1337_s23 + $0x38] sm:$0xff] }
  0x18   : > { %v351_v26 = vld [vmem:[%s1337_s23 + $0xb0] sm:$0xff]  ;;  %1162 = vmatprep.mubr.msk.bf16.mxu0 %vm384_vm3, %v363_v22  ;;  %v352_v27 = vld [vmem:[%s1337_s23 + $0xb8] sm:$0xff]  ;;  %v337_v28 = vld [vmem:[%s1337_s23 + $0x40] sm:$0xff]  ;;  %v364_v32 = vpack.c.bf16 %v336_v25, %v335_v24 }
  0x19   : > { %1178 = vmatprep.mubr.msk.bf16.mxu1 %vm384_vm3, %v371_v23  ;;  %v338_v29 = vld [vmem:[%s1337_s23 + $0x48] sm:$0xff]  ;;  %v353_v30 = vld [vmem:[%s1337_s23 + $0xc0] sm:$0xff]  ;;  %v372_v33 = vpack.c.bf16 %v352_v27, %v351_v26  ;;  %v339_v36 = vld [vmem:[%s1337_s23 + $0x50] sm:$0xff] }
  0x1a   : > { %v354_v31 = vld [vmem:[%s1337_s23 + $0xc8] sm:$0xff]  ;;  %v365_v34 = vpack.c.bf16 %v338_v29, %v337_v28  ;;  %v340_v37 = vld [vmem:[%s1337_s23 + $0x58] sm:$0xff]  ;;  %v355_v38 = vld [vmem:[%s1337_s23 + $0xd0] sm:$0xff] }
  0x1b   : > { %v373_v35 = vpack.c.bf16 %v354_v31, %v353_v30  ;;  %v356_v39 = vld [vmem:[%s1337_s23 + $0xd8] sm:$0xff]  ;;  %v341_v40 = vld [vmem:[%s1337_s23 + $0x60] sm:$0xff]  ;;  %v342_v41 = vld [vmem:[%s1337_s23 + $0x68] sm:$0xff]  ;;  %v366_v44 = vpack.c.bf16 %v340_v37, %v339_v36 }
  0x1c   : > { %v357_v42 = vld [vmem:[%s1337_s23 + $0xe0] sm:$0xff]  ;;  %v358_v43 = vld [vmem:[%s1337_s23 + $0xe8] sm:$0xff]  ;;  %v374_v45 = vpack.c.bf16 %v356_v39, %v355_v38  ;;  %v367_v46 = vpack.c.bf16 %v342_v41, %v341_v40  ;;  %v343_v48 = vld [vmem:[%s1337_s23 + $0x70] sm:$0xff] }
  0x1d   : > { %v375_v47 = vpack.c.bf16 %v358_v43, %v357_v42  ;;  %v344_v49 = vld [vmem:[%s1337_s23 + $0x78] sm:$0xff]  ;;  %v359_v50 = vld [vmem:[%s1337_s23 + $0xf0] sm:$0xff]  ;;  %v313_v58 = vld [vmem:[#allocation2 + $0x80] sm:$0xff] }
  0x1e   : > { %1163 = vmatmul.mubr.msk.bf16.gmra.mrb[4].mxu0 %vm384_vm3, %v364_v32  ;;  %v360_v51 = vld [vmem:[%s1337_s23 + $0xf8] sm:$0xff]  ;;  %v368_v52 = vpack.c.bf16 %v344_v49, %v343_v48  ;;  %v315_v55 = vld [vmem:[#allocation2 + $0x90] sm:$0xff]  ;;  %v314_v5 = vld [vmem:[#allocation2 + $0x88] sm:$0xff] }
  0x1f   : > { %1179 = vmatmul.mubr.msk.bf16.gmra.mrb[4].mxu1 %vm384_vm3, %v372_v33  ;;  %1166 = vmatprep.mubr.msk.bf16.mxu0 %vm384_vm3, %v365_v34  ;;  %v376_v53 = vpack.c.bf16 %v360_v51, %v359_v50  ;;  %v316_v63 = vld [vmem:[#allocation2 + $0x98] sm:$0xff]  ;;  %v303_v14 = vld [vmem:[#allocation2 + $0x30] sm:$0xff]  ;;  %v301_v16 = vld [vmem:[#allocation2 + $0x20] sm:$0xff] }
  0x20   : > { %1182 = vmatprep.mubr.msk.bf16.mxu1 %vm384_vm3, %v373_v35  ;;  %v319_v15 = vld [vmem:[#allocation2 + $0xb0] sm:$0xff]  ;;  %v1398_v17 = vld [vmem:[%s1537_s2] ss:$0 sm:$0xff]  ;;  %v304_v20 = vld [vmem:[#allocation2 + $0x38] sm:$0xff] }
  0x21   : > { %v317_v19 = vld [vmem:[#allocation2 + $0xa0] sm:$0xff]  ;;  %v320_v24 = vld [vmem:[#allocation2 + $0xb8] sm:$0xff]  ;;  %v302_v25 = vld [vmem:[#allocation2 + $0x28] sm:$0xff] }
  0x22   : > { %v318_v31 = vld [vmem:[#allocation2 + $0xa8] sm:$0xff] }
  0x26   : > { %1167 = vmatmul.mubr.msk.bf16.gmra.mrb[8].mxu0 %vm384_vm3, %v366_v44 }
  0x27   : > { %1183 = vmatmul.mubr.msk.bf16.gmra.mrb[8].mxu1 %vm384_vm3, %v374_v45  ;;  %1170 = vmatprep.mubr.msk.bf16.mxu0 %vm384_vm3, %v367_v46 }
  0x28   : > { %1186 = vmatprep.mubr.msk.bf16.mxu1 %vm384_vm3, %v375_v47 }
  0x2e   : > { %1171 = vmatmul.mubr.msk.bf16.gmra.mrb[12].mxu0 %vm384_vm3, %v368_v52 }
  0x2f   : > { %1187 = vmatmul.mubr.msk.bf16.gmra.mrb[12].mxu1 %vm384_vm3, %v376_v53 }
  0xe9   : > { %v1160_v57 = vpop.f32.mrb[0].mxu0 }
  0xea   : > { %v603_v60 = vadd.f32 %v1160_v57, %v299_v54  ;;  %v1176_v61 = vpop.f32.mrb[0].mxu1  ;;  %v474_v62 = vpop.f32.mrb[1].mxu0  ;;  %v307_v57 = vld [vmem:[#allocation2 + $0x50] sm:$0xff] }
  0xeb   : > { %v619_v1 = vadd.f32 %v1176_v61, %v315_v55  ;;  %v601_v2 = vadd.f32 %v474_v62, %v297_v56  ;;  %v538_v3 = vpop.f32.mrb[1].mxu1  ;;  %v1161_v4 = vpop.f32.mrb[2].mxu0  ;;  %v323_v62 = vld [vmem:[#allocation2 + $0xd0] sm:$0xff] }
  0xec   : > { %636 = vst.msk [vmem:[#allocation2 + $0x10] sm:$0xff] %vm264_vm2, %v603_v60  ;;  %v617_v6 = vadd.f32 %v538_v3, %v313_v58  ;;  %v604_v7 = vadd.f32 %v1161_v4, %v300_v59  ;;  %v1177_v8 = vpop.f32.mrb[2].mxu1  ;;  %v477_v9 = vpop.f32.mrb[3].mxu0 }
  0xed   : > { %652 = vst.msk [vmem:[#allocation2 + $0x90] sm:$0xff] %vm264_vm2, %v619_v1  ;;  %634 = vst.msk [vmem:[#allocation2] sm:$0xff] %vm264_vm2, %v601_v2  ;;  %v620_v10 = vadd.f32 %v1177_v8, %v316_v63  ;;  %v602_v11 = vadd.f32 %v477_v9, %v298_v0  ;;  %v541_v12 = vpop.f32.mrb[3].mxu1  ;;  %v305_v63 = vld [vmem:[#allocation2 + $0x40] sm:$0xff] }
  0xee   : > { %650 = vst.msk [vmem:[#allocation2 + $0x80] sm:$0xff] %vm264_vm2, %v617_v6  ;;  %637 = vst.msk [vmem:[#allocation2 + $0x18] sm:$0xff] %vm264_vm2, %v604_v7  ;;  %v618_v13 = vadd.f32 %v541_v12, %v314_v5  ;;  %v321_v5 = vld [vmem:[#allocation2 + $0xc0] sm:$0xff]  ;;  %v308_v6 = vld [vmem:[#allocation2 + $0x58] sm:$0xff] }
  0xef   : > { %653 = vst.msk [vmem:[#allocation2 + $0x98] sm:$0xff] %vm264_vm2, %v620_v10  ;;  %635 = vst.msk [vmem:[#allocation2 + $0x8] sm:$0xff] %vm264_vm2, %v602_v11 }
  0xf0   : > { %651 = vst.msk [vmem:[#allocation2 + $0x88] sm:$0xff] %vm264_vm2, %v618_v13  ;;  %v324_v13 = vld [vmem:[#allocation2 + $0xd8] sm:$0xff] }
  0xf1   : > { %v1164_v18 = vpop.f32.mrb[4].mxu0 }
  0xf2   : > { %v607_v21 = vadd.f32 %v1164_v18, %v303_v14  ;;  %v1180_v22 = vpop.f32.mrb[4].mxu1  ;;  %v490_v23 = vpop.f32.mrb[5].mxu0  ;;  %v306_v14 = vld [vmem:[#allocation2 + $0x48] sm:$0xff] }
  0xf3   : > { %v671_v26 = vld [vmem:[#allocation2 + $0x10] sm:$0xff]  ;;  %v623_v27 = vadd.f32 %v1180_v22, %v319_v15  ;;  %v605_v28 = vadd.f32 %v490_v23, %v301_v16  ;;  %v554_v29 = vpop.f32.mrb[5].mxu1  ;;  %v1165_v30 = vpop.f32.mrb[6].mxu0  ;;  %v322_v23 = vld [vmem:[#allocation2 + $0xc8] sm:$0xff] }
  0xf4   : > { %v710_v32 = vadd.f32 %v1398_v17, %v671_v26  ;;  %v687_v33 = vld [vmem:[#allocation2 + $0x90] sm:$0xff]  ;;  %v669_v34 = vld [vmem:[#allocation2] sm:$0xff]  ;;  %640 = vst.msk [vmem:[#allocation2 + $0x30] sm:$0xff] %vm264_vm2, %v607_v21  ;;  %v621_v35 = vadd.f32 %v554_v29, %v317_v19  ;;  %v608_v36 = vadd.f32 %v1165_v30, %v304_v20  ;;  %v1181_v37 = vpop.f32.mrb[6].mxu1  ;;  %v493_v38 = vpop.f32.mrb[7].mxu0 }
  0xf5   : > { %v726_v39 = vadd.f32 %v1398_v17, %v687_v33  ;;  %v708_v40 = vadd.f32 %v1398_v17, %v669_v34  ;;  %v685_v41 = vld [vmem:[#allocation2 + $0x80] sm:$0xff]  ;;  %v672_v42 = vld [vmem:[#allocation2 + $0x18] sm:$0xff]  ;;  %656 = vst.msk [vmem:[#allocation2 + $0xb0] sm:$0xff] %vm264_vm2, %v623_v27  ;;  %638 = vst.msk [vmem:[#allocation2 + $0x20] sm:$0xff] %vm264_vm2, %v605_v28  ;;  %v624_v43 = vadd.f32 %v1181_v37, %v320_v24  ;;  %v557_v45 = vpop.f32.mrb[7].mxu1 }
  0xf6   : > { %v606_v44 = vadd.f32 %v493_v38, %v302_v25  ;;  %v742_v46 = vmax.f32 %v710_v32, 0.0  ;;  %v724_v47 = vadd.f32 %v1398_v17, %v685_v41  ;;  %v711_v48 = vadd.f32 %v1398_v17, %v672_v42  ;;  %v688_v49 = vld [vmem:[#allocation2 + $0x98] sm:$0xff]  ;;  %v670_v50 = vld [vmem:[#allocation2 + $0x8] sm:$0xff]  ;;  %654 = vst.msk [vmem:[#allocation2 + $0xa0] sm:$0xff] %vm264_vm2, %v621_v35  ;;  %641 = vst.msk [vmem:[#allocation2 + $0x38] sm:$0xff] %vm264_vm2, %v608_v36 }
  0xf7   : > { %v622_v51 = vadd.f32 %v557_v45, %v318_v31  ;;  %v758_v52 = vmax.f32 %v726_v39, 0.0  ;;  %v740_v53 = vmax.f32 %v708_v40, 0.0  ;;  %v727_v54 = vadd.f32 %v1398_v17, %v688_v49  ;;  %v686_v56 = vld [vmem:[#allocation2 + $0x88] sm:$0xff]  ;;  %657 = vst.msk [vmem:[#allocation2 + $0xb8] sm:$0xff] %vm264_vm2, %v624_v43 }
  0xf8   : > { %v709_v55 = vadd.f32 %v1398_v17, %v670_v50  ;;  %639 = vst.msk [vmem:[#allocation2 + $0x28] sm:$0xff] %vm264_vm2, %v606_v44  ;;  %v1109_v58 = vpack.c.bf16 %v742_v46, %v742_v46  ;;  %v756_v59 = vmax.f32 %v724_v47, 0.0  ;;  %v743_v60 = vmax.f32 %v711_v48, 0.0  ;;  %v311_v50 = vld [vmem:[#allocation2 + $0x70] sm:$0xff] }
  0xf9   : > { %v725_v61 = vadd.f32 %v1398_v17, %v686_v56  ;;  %655 = vst.msk [vmem:[#allocation2 + $0xa8] sm:$0xff] %vm264_vm2, %v622_v51  ;;  %v1125_v0 = vpack.c.bf16 %v758_v52, %v758_v52  ;;  %v1107_v1 = vpack.c.bf16 %v740_v53, %v740_v53  ;;  %v759_v2 = vmax.f32 %v727_v54, 0.0  ;;  %v1168_v4 = vpop.f32.mrb[8].mxu0  ;;  %v309_v56 = vld [vmem:[#allocation2 + $0x60] sm:$0xff] }
  0xfa   : > { %v741_v3 = vmax.f32 %v709_v55, 0.0  ;;  %903 = vst.msk [vmem:[%s1414_s29 + $0x8] sm:$0xf] %vm900_vm4, %v1109_v58  ;;  %v1123_v7 = vpack.c.bf16 %v756_v59, %v756_v59  ;;  %v1110_v8 = vpack.c.bf16 %v743_v60, %v743_v60  ;;  %v611_v10 = vadd.f32 %v1168_v4, %v307_v57  ;;  %v1184_v11 = vpop.f32.mrb[8].mxu1  ;;  %v506_v12 = vpop.f32.mrb[9].mxu0  ;;  %v327_v55 = vld [vmem:[#allocation2 + $0xf0] sm:$0xff] }
  0xfb   : > { %v757_v9 = vmax.f32 %v725_v61, 0.0  ;;  %919 = vst.msk [vmem:[%s1414_s29 + $0x48] sm:$0xf] %vm900_vm4, %v1125_v0  ;;  %901 = vst.msk [vmem:[%s1414_s29] sm:$0xf] %vm900_vm4, %v1107_v1  ;;  %v1126_v15 = vpack.c.bf16 %v759_v2, %v759_v2  ;;  %v675_v18 = vld [vmem:[#allocation2 + $0x30] sm:$0xff]  ;;  %v627_v19 = vadd.f32 %v1184_v11, %v323_v62  ;;  %v609_v20 = vadd.f32 %v506_v12, %v305_v63 }
  0xfc   : > { %v1108_v16 = vpack.c.bf16 %v741_v3, %v741_v3  ;;  %v570_v21 = vpop.f32.mrb[9].mxu1  ;;  %v1169_v22 = vpop.f32.mrb[10].mxu0  ;;  %917 = vst.msk [vmem:[%s1414_s29 + $0x40] sm:$0xf] %vm900_vm4, %v1123_v7  ;;  %904 = vst.msk [vmem:[%s1414_s29 + $0xc] sm:$0xf] %vm900_vm4, %v1110_v8  ;;  %v714_v25 = vadd.f32 %v1398_v17, %v675_v18 }
  0xfd   : > { %v1124_v24 = vpack.c.bf16 %v757_v9, %v757_v9  ;;  %v691_v26 = vld [vmem:[#allocation2 + $0xb0] sm:$0xff]  ;;  %v673_v27 = vld [vmem:[#allocation2 + $0x20] sm:$0xff]  ;;  %644 = vst.msk [vmem:[#allocation2 + $0x50] sm:$0xff] %vm264_vm2, %v611_v10  ;;  %v625_v28 = vadd.f32 %v570_v21, %v321_v5  ;;  %v612_v29 = vadd.f32 %v1169_v22, %v308_v6  ;;  %v1185_v30 = vpop.f32.mrb[10].mxu1  ;;  %v509_v31 = vpop.f32.mrb[11].mxu0  ;;  %v676_v35 = vld [vmem:[#allocation2 + $0x38] sm:$0xff] }
  0xfe   : > { %920 = vst.msk [vmem:[%s1414_s29 + $0x4c] sm:$0xf] %vm900_vm4, %v1126_v15  ;;  %902 = vst.msk [vmem:[%s1414_s29 + $0x4] sm:$0xf] %vm900_vm4, %v1108_v16  ;;  %v730_v32 = vadd.f32 %v1398_v17, %v691_v26  ;;  %v712_v33 = vadd.f32 %v1398_v17, %v673_v27  ;;  %v689_v34 = vld [vmem:[#allocation2 + $0xa0] sm:$0xff]  ;;  %v628_v36 = vadd.f32 %v1185_v30, %v324_v13  ;;  %v573_v38 = vpop.f32.mrb[11].mxu1 }
  0xff   : > { %660 = vst.msk [vmem:[#allocation2 + $0xd0] sm:$0xff] %vm264_vm2, %v627_v19  ;;  %642 = vst.msk [vmem:[#allocation2 + $0x40] sm:$0xff] %vm264_vm2, %v609_v20  ;;  %v610_v37 = vadd.f32 %v509_v31, %v306_v14  ;;  %v746_v39 = vmax.f32 %v714_v25, 0.0  ;;  %v728_v40 = vadd.f32 %v1398_v17, %v689_v34  ;;  %v715_v41 = vadd.f32 %v1398_v17, %v676_v35  ;;  %v692_v42 = vld [vmem:[#allocation2 + $0xb8] sm:$0xff]  ;;  %v674_v43 = vld [vmem:[#allocation2 + $0x28] sm:$0xff] }
 0x100   : > { %918 = vst.msk [vmem:[%s1414_s29 + $0x44] sm:$0xf] %vm900_vm4, %v1124_v24  ;;  %v626_v44 = vadd.f32 %v573_v38, %v322_v23  ;;  %v762_v45 = vmax.f32 %v730_v32, 0.0  ;;  %v744_v46 = vmax.f32 %v712_v33, 0.0  ;;  %v731_v47 = vadd.f32 %v1398_v17, %v692_v42  ;;  %v690_v49 = vld [vmem:[#allocation2 + $0xa8] sm:$0xff]  ;;  %v325_v62 = vld [vmem:[#allocation2 + $0xe0] sm:$0xff] }
 0x101   : > { %658 = vst.msk [vmem:[#allocation2 + $0xc0] sm:$0xff] %vm264_vm2, %v625_v28  ;;  %645 = vst.msk [vmem:[#allocation2 + $0x58] sm:$0xff] %vm264_vm2, %v612_v29  ;;  %v713_v48 = vadd.f32 %v1398_v17, %v674_v43  ;;  %v1113_v51 = vpack.c.bf16 %v746_v39, %v746_v39  ;;  %v760_v52 = vmax.f32 %v728_v40, 0.0  ;;  %v747_v53 = vmax.f32 %v715_v41, 0.0  ;;  %v1172_v61 = vpop.f32.mrb[12].mxu0  ;;  %v312_v63 = vld [vmem:[#allocation2 + $0x78] sm:$0xff] }
 0x102   : > { %661 = vst.msk [vmem:[#allocation2 + $0xd8] sm:$0xff] %vm264_vm2, %v628_v36  ;;  %643 = vst.msk [vmem:[#allocation2 + $0x48] sm:$0xff] %vm264_vm2, %v610_v37  ;;  %v729_v54 = vadd.f32 %v1398_v17, %v690_v49  ;;  %v1129_v57 = vpack.c.bf16 %v762_v45, %v762_v45  ;;  %v1111_v58 = vpack.c.bf16 %v744_v46, %v744_v46  ;;  %v763_v59 = vmax.f32 %v731_v47, 0.0  ;;  %v1188_v4 = vpop.f32.mrb[12].mxu1  ;;  %v522_v5 = vpop.f32.mrb[13].mxu0  ;;  %v328_v6 = vld [vmem:[#allocation2 + $0xf8] sm:$0xff] }
 0x103   : > { %659 = vst.msk [vmem:[#allocation2 + $0xc8] sm:$0xff] %vm264_vm2, %v626_v44  ;;  %v745_v60 = vmax.f32 %v713_v48, 0.0  ;;  %v1127_v0 = vpack.c.bf16 %v760_v52, %v760_v52  ;;  %v1114_v1 = vpack.c.bf16 %v747_v53, %v747_v53  ;;  %v615_v3 = vadd.f32 %v1172_v61, %v311_v50  ;;  %v310_v7 = vld [vmem:[#allocation2 + $0x68] sm:$0xff]  ;;  %v586_v13 = vpop.f32.mrb[13].mxu1  ;;  %v1173_v14 = vpop.f32.mrb[14].mxu0 }
 0x104   : > { %907 = vst.msk [vmem:[%s1414_s29 + $0x18] sm:$0xf] %vm900_vm4, %v1113_v51  ;;  %v761_v2 = vmax.f32 %v729_v54, 0.0  ;;  %923 = vst.msk [vmem:[%s1414_s29 + $0x58] sm:$0xf] %vm900_vm4, %v1129_v57  ;;  %v1130_v8 = vpack.c.bf16 %v763_v59, %v763_v59  ;;  %v679_v10 = vld [vmem:[#allocation2 + $0x50] sm:$0xff]  ;;  %v631_v11 = vadd.f32 %v1188_v4, %v327_v55  ;;  %v613_v12 = vadd.f32 %v522_v5, %v309_v56 }
 0x105   : > { %905 = vst.msk [vmem:[%s1414_s29 + $0x10] sm:$0xf] %vm900_vm4, %v1111_v58  ;;  %v1112_v9 = vpack.c.bf16 %v745_v60, %v745_v60  ;;  %v326_v15 = vld [vmem:[#allocation2 + $0xe8] sm:$0xff]  ;;  %921 = vst.msk [vmem:[%s1414_s29 + $0x50] sm:$0xf] %vm900_vm4, %v1127_v0  ;;  %v718_v18 = vadd.f32 %v1398_v17, %v679_v10  ;;  %v629_v21 = vadd.f32 %v586_v13, %v325_v62  ;;  %v1189_v23 = vpop.f32.mrb[14].mxu1 }
 0x106   : > { %908 = vst.msk [vmem:[%s1414_s29 + $0x1c] sm:$0xf] %vm900_vm4, %v1114_v1  ;;  %v1128_v16 = vpack.c.bf16 %v761_v2, %v761_v2  ;;  %v695_v19 = vld [vmem:[#allocation2 + $0xd0] sm:$0xff]  ;;  %v677_v20 = vld [vmem:[#allocation2 + $0x40] sm:$0xff]  ;;  %v616_v22 = vadd.f32 %v1173_v14, %v312_v63  ;;  %v525_v24 = vpop.f32.mrb[15].mxu0  ;;  %v632_v29 = vadd.f32 %v1189_v23, %v328_v6  ;;  %v589_v31 = vpop.f32.mrb[15].mxu1 }
 0x107   : > { %648 = vst.msk [vmem:[#allocation2 + $0x70] sm:$0xff] %vm264_vm2, %v615_v3  ;;  %v734_v25 = vadd.f32 %v1398_v17, %v695_v19  ;;  %v716_v26 = vadd.f32 %v1398_v17, %v677_v20  ;;  %664 = vst.msk [vmem:[#allocation2 + $0xf0] sm:$0xff] %vm264_vm2, %v631_v11  ;;  %v614_v30 = vadd.f32 %v525_v24, %v310_v7  ;;  %v750_v32 = vmax.f32 %v718_v18, 0.0 }
 0x108   : > { %924 = vst.msk [vmem:[%s1414_s29 + $0x5c] sm:$0xf] %vm900_vm4, %v1130_v8  ;;  %906 = vst.msk [vmem:[%s1414_s29 + $0x14] sm:$0xf] %vm900_vm4, %v1112_v9  ;;  %v693_v27 = vld [vmem:[#allocation2 + $0xc0] sm:$0xff]  ;;  %v680_v28 = vld [vmem:[#allocation2 + $0x58] sm:$0xff]  ;;  %v630_v37 = vadd.f32 %v589_v31, %v326_v15 }
 0x109   : > { %646 = vst.msk [vmem:[#allocation2 + $0x60] sm:$0xff] %vm264_vm2, %v613_v12  ;;  %v732_v33 = vadd.f32 %v1398_v17, %v693_v27  ;;  %v719_v34 = vadd.f32 %v1398_v17, %v680_v28  ;;  %v696_v35 = vld [vmem:[#allocation2 + $0xd8] sm:$0xff]  ;;  %v678_v36 = vld [vmem:[#allocation2 + $0x48] sm:$0xff]  ;;  %662 = vst.msk [vmem:[#allocation2 + $0xe0] sm:$0xff] %vm264_vm2, %v629_v21  ;;  %v766_v38 = vmax.f32 %v734_v25, 0.0  ;;  %v748_v39 = vmax.f32 %v716_v26, 0.0 }
 0x10a   : > { %922 = vst.msk [vmem:[%s1414_s29 + $0x54] sm:$0xf] %vm900_vm4, %v1128_v16  ;;  %v735_v40 = vadd.f32 %v1398_v17, %v696_v35  ;;  %v717_v41 = vadd.f32 %v1398_v17, %v678_v36  ;;  %v694_v42 = vld [vmem:[#allocation2 + $0xc8] sm:$0xff]  ;;  %v1117_v43 = vpack.c.bf16 %v750_v32, %v750_v32 }
 0x10b   : > { %649 = vst.msk [vmem:[#allocation2 + $0x78] sm:$0xff] %vm264_vm2, %v616_v22  ;;  %665 = vst.msk [vmem:[#allocation2 + $0xf8] sm:$0xff] %vm264_vm2, %v632_v29  ;;  %v764_v44 = vmax.f32 %v732_v33, 0.0  ;;  %v751_v45 = vmax.f32 %v719_v34, 0.0  ;;  %v733_v46 = vadd.f32 %v1398_v17, %v694_v42  ;;  %v1133_v47 = vpack.c.bf16 %v766_v38, %v766_v38 }
 0x10c   : > { %647 = vst.msk [vmem:[#allocation2 + $0x68] sm:$0xff] %vm264_vm2, %v614_v30  ;;  %663 = vst.msk [vmem:[#allocation2 + $0xe8] sm:$0xff] %vm264_vm2, %v630_v37  ;;  %v1115_v48 = vpack.c.bf16 %v748_v39, %v748_v39  ;;  %v767_v49 = vmax.f32 %v735_v40, 0.0  ;;  %v749_v50 = vmax.f32 %v717_v41, 0.0 }
 0x10d   : > { %911 = vst.msk [vmem:[%s1414_s29 + $0x28] sm:$0xf] %vm900_vm4, %v1117_v43  ;;  %v1131_v51 = vpack.c.bf16 %v764_v44, %v764_v44  ;;  %v1118_v52 = vpack.c.bf16 %v751_v45, %v751_v45  ;;  %v765_v53 = vmax.f32 %v733_v46, 0.0  ;;  %927 = vst.msk [vmem:[%s1414_s29 + $0x68] sm:$0xf] %vm900_vm4, %v1133_v47 }
 0x10e   : > { %909 = vst.msk [vmem:[%s1414_s29 + $0x20] sm:$0xf] %vm900_vm4, %v1115_v48  ;;  %v1134_v54 = vpack.c.bf16 %v767_v49, %v767_v49  ;;  %v1116_v55 = vpack.c.bf16 %v749_v50, %v749_v50  ;;  %v683_v56 = vld [vmem:[#allocation2 + $0x70] sm:$0xff] }
 0x10f   : > { %925 = vst.msk [vmem:[%s1414_s29 + $0x60] sm:$0xf] %vm900_vm4, %v1131_v51  ;;  %912 = vst.msk [vmem:[%s1414_s29 + $0x2c] sm:$0xf] %vm900_vm4, %v1118_v52  ;;  %v1132_v57 = vpack.c.bf16 %v765_v53, %v765_v53  ;;  %v722_v58 = vadd.f32 %v1398_v17, %v683_v56  ;;  %v699_v59 = vld [vmem:[#allocation2 + $0xf0] sm:$0xff] }
 0x110   : > { %v681_v60 = vld [vmem:[#allocation2 + $0x60] sm:$0xff]  ;;  %928 = vst.msk [vmem:[%s1414_s29 + $0x6c] sm:$0xf] %vm900_vm4, %v1134_v54  ;;  %910 = vst.msk [vmem:[%s1414_s29 + $0x24] sm:$0xf] %vm900_vm4, %v1116_v55  ;;  %v738_v61 = vadd.f32 %v1398_v17, %v699_v59 }
 0x111   : > { %v720_v62 = vadd.f32 %v1398_v17, %v681_v60  ;;  %v697_v63 = vld [vmem:[#allocation2 + $0xe0] sm:$0xff]  ;;  %926 = vst.msk [vmem:[%s1414_s29 + $0x64] sm:$0xf] %vm900_vm4, %v1132_v57  ;;  %v754_v1 = vmax.f32 %v722_v58, 0.0 }
 0x112   : > { %v684_v0 = vld [vmem:[#allocation2 + $0x78] sm:$0xff]  ;;  %v736_v2 = vadd.f32 %v1398_v17, %v697_v63  ;;  %v770_v6 = vmax.f32 %v738_v61, 0.0 }
 0x113   : > { %v723_v3 = vadd.f32 %v1398_v17, %v684_v0  ;;  %v700_v4 = vld [vmem:[#allocation2 + $0xf8] sm:$0xff]  ;;  %v682_v5 = vld [vmem:[#allocation2 + $0x68] sm:$0xff]  ;;  %v752_v7 = vmax.f32 %v720_v62, 0.0  ;;  %v1121_v11 = vpack.c.bf16 %v754_v1, %v754_v1 }
 0x114   : > { %v739_v8 = vadd.f32 %v1398_v17, %v700_v4  ;;  %v721_v9 = vadd.f32 %v1398_v17, %v682_v5  ;;  %v698_v10 = vld [vmem:[#allocation2 + $0xe8] sm:$0xff]  ;;  %v768_v12 = vmax.f32 %v736_v2, 0.0  ;;  %v1137_v15 = vpack.c.bf16 %v770_v6, %v770_v6 }
 0x115   : > { %v755_v13 = vmax.f32 %v723_v3, 0.0  ;;  %v737_v14 = vadd.f32 %v1398_v17, %v698_v10  ;;  %v1119_v16 = vpack.c.bf16 %v752_v7, %v752_v7  ;;  %915 = vst.msk [vmem:[%s1414_s29 + $0x38] sm:$0xf] %vm900_vm4, %v1121_v11 }
 0x116   : > { %v771_v18 = vmax.f32 %v739_v8, 0.0  ;;  %v753_v19 = vmax.f32 %v721_v9, 0.0  ;;  %v1135_v20 = vpack.c.bf16 %v768_v12, %v768_v12  ;;  %931 = vst.msk [vmem:[%s1414_s29 + $0x78] sm:$0xf] %vm900_vm4, %v1137_v15 }
 0x117   : > { %v1122_v21 = vpack.c.bf16 %v755_v13, %v755_v13  ;;  %v769_v22 = vmax.f32 %v737_v14, 0.0  ;;  %913 = vst.msk [vmem:[%s1414_s29 + $0x30] sm:$0xf] %vm900_vm4, %v1119_v16 }
 0x118   : > { %v1138_v23 = vpack.c.bf16 %v771_v18, %v771_v18  ;;  %v1120_v24 = vpack.c.bf16 %v753_v19, %v753_v19  ;;  %929 = vst.msk [vmem:[%s1414_s29 + $0x70] sm:$0xf] %vm900_vm4, %v1135_v20 }
 0x119   : > { %916 = vst.msk [vmem:[%s1414_s29 + $0x3c] sm:$0xf] %vm900_vm4, %v1122_v21  ;;  %v1136_v17 = vpack.c.bf16 %v769_v22, %v769_v22 }
 0x11a   : > { %932 = vst.msk [vmem:[%s1414_s29 + $0x7c] sm:$0xf] %vm900_vm4, %v1138_v23  ;;  %914 = vst.msk [vmem:[%s1414_s29 + $0x34] sm:$0xf] %vm900_vm4, %v1120_v24 }
 0x11b   : > { %930 = vst.msk [vmem:[%s1414_s29 + $0x74] sm:$0xf] %vm900_vm4, %v1136_v17 }
 0x11c PF: > { %s13_s14 = sadd.s32 1, %s1241_s14   ;;  %s1540_s12 = smov %s1237_s13 }
 0x11d   : > { %p10_p5 = scmp.ge.s32.totalorder %s13_s14, 4   ;;  %s1541_s13 = smov %s1543_s15 }
 0x11f   :  { %12 = sbr.rel (!%p10_p5) target bundleno = 2 (0x2), region = 76 }

// kernel: encoder_forward.11
= control target key start
LH: loop header
LB: loop body
LE: loop exit
PB: predicated region body
PF: predicated region fallthrough
CT: control target
= control target key end

     0   :  { %vm19_vm0 = vcmask 261120   ;;  %v631_v31 = vmov 0.0   ;;  %vm462_vm1 = vcmask 257024   ;;  %s788_s1 = inlined_call_operand.vmem [shape: bf16[288,32], index: 1, kind: input, shape index: {}]   ;;  %s789_s0 = inlined_call_operand.vmem [shape: bf16[56,288], index: 0, kind: input, shape index: {}]   ;;  %s790_s2 = inlined_call_operand.vmem [shape: f32[1,32], index: 2, kind: input, shape index: {}]   ;;  %s791_s3 = inlined_call_operand.vmem [shape: bf16[56,32], index: 3, kind: output, shape index: {}]  }
   0x1   :  { %v598_v0 = vld [vmem:[%s788_s1 + $0x40] sm:$0xff]   ;;  %v600_v2 = vld [vmem:[%s788_s1 + $0x48] sm:$0xff]   ;;  %v602_v4 = vld [vmem:[%s788_s1 + $0x50] sm:$0xff]   ;;  %22 = vst.msk [vmem:[#allocation2 + $0x10] sm:$0xff] %vm19_vm0, %v631_v31 }
   0x2   :  { %v599_v1 = vld [vmem:[%s788_s1] sm:$0xff]   ;;  %523 = vmatprep.subr.bf16.mxu0 %v598_v0  ;;  %581 = vmatprep.subr.bf16.mxu1 %v598_v0  ;;  %v601_v3 = vld [vmem:[%s788_s1 + $0x8] sm:$0xff]   ;;  %v603_v5 = vld [vmem:[%s788_s1 + $0x10] sm:$0xff]   ;;  %20 = vst.msk [vmem:[#allocation2] sm:$0xff] %vm19_vm0, %v631_v31 }
   0x3   :  { %524 = vmatpush3.bf16.msra.mxu0 %v599_v1  ;;  %589 = vmatpush3.bf16.msra.mxu1 %v599_v1  ;;  %v604_v6 = vld [vmem:[%s788_s1 + $0x58] sm:$0xff]   ;;  %v606_v8 = vld [vmem:[%s788_s1 + $0x60] sm:$0xff]   ;;  %v608_v10 = vld [vmem:[%s788_s1 + $0x68] sm:$0xff]   ;;  %21 = vst.msk [vmem:[#allocation2 + $0x8] sm:$0xff] %vm19_vm0, %v631_v31 }
   0x4   :  { %525 = vmatprep.subr.bf16.mxu0 %v600_v2  ;;  %582 = vmatprep.subr.bf16.mxu1 %v600_v2  ;;  %v605_v7 = vld [vmem:[%s788_s1 + $0x18] sm:$0xff]   ;;  %v607_v9 = vld [vmem:[%s788_s1 + $0x20] sm:$0xff]   ;;  %v46_v12 = vld [vmem:[%s789_s0 + $0x48] sm:$0xff]  ;;  %23 = vst.msk [vmem:[#allocation2 + $0x18] sm:$0xff] %vm19_vm0, %v631_v31 }
   0x5   :  { %v616_v11 = vld [vmem:[%s789_s0 + $0x4] ss:$12 sps:$4 sm:$0xff]   ;;  %v484_v13 = vcombine.high %v46_v12, %v46_v12  ;;  %v609_v14 = vld [vmem:[%s788_s1 + $0x28] sm:$0xff]   ;;  %v612_v17 = vld [vmem:[%s788_s1 + $0x78] sm:$0xff]   ;;  %v483_v21 = vcombine.low %v46_v12, %v46_v12  ;;  %24 = vst.msk [vmem:[#allocation2 + $0x20] sm:$0xff] %vm19_vm0, %v631_v31 }
   0x6   :  { %v610_v15 = vld [vmem:[%s788_s1 + $0x70] sm:$0xff]   ;;  %292 = vmatprep.mubr.bf16.mxu0 %v616_v11  ;;  %v613_v18 = vld [vmem:[%s788_s1 + $0x38] sm:$0xff]   ;;  %v619_v19 = vld [vmem:[%s788_s1 + $0x80] sm:$0xff]   ;;  %25 = vst.msk [vmem:[#allocation2 + $0x28] sm:$0xff] %vm19_vm0, %v631_v31 }
   0x7   :  { %526 = vmatpush3.bf16.msra.mxu0 %v601_v3  ;;  %590 = vmatpush3.bf16.msra.mxu1 %v601_v3  ;;  %v611_v16 = vld [vmem:[%s788_s1 + $0x30] sm:$0xff]   ;;  %v614_v20 = vld [vmem:[%s789_s0] ss:$12 sps:$4 sm:$0xff]   ;;  %v621_v22 = vld [vmem:[%s789_s0 + $0x1c] ss:$12 sps:$4 sm:$0xff]   ;;  %26 = vst.msk [vmem:[#allocation2 + $0x30] sm:$0xff] %vm19_vm0, %v631_v31 }
   0x8   :  { %527 = vmatprep.subr.bf16.mxu0 %v602_v4  ;;  %583 = vmatprep.subr.bf16.mxu1 %v602_v4  ;;  %v620_v23 = vld [vmem:[%s788_s1 + $0x88] sm:$0xff]   ;;  %v624_v25 = vld [vmem:[%s789_s0 + $0x18] ss:$12 sps:$4 sm:$0xff]   ;;  %v626_v27 = vld [vmem:[%s789_s0 + $0x34] ss:$12 sps:$4 sm:$0xff]  }
   0x9   :  { %316 = vmatprep.mubr.bf16.mxu1 %v484_v13  ;;  %v623_v24 = vld [vmem:[%s789_s0 + $0x8] ss:$12 sps:$4 sm:$0xff]   ;;  %v625_v26 = vld [vmem:[%s789_s0 + $0x20] ss:$12 sps:$4 sm:$0xff]   ;;  %v628_v28 = vld [vmem:[%s789_s0 + $0x38] ss:$12 sps:$4 sm:$0xff]  }
   0xa   :  { %v629_v29 = vld [vmem:[%s789_s0 + $0x30] ss:$12 sps:$4 sm:$0xff]   ;;  %v27_v46 = vld [vmem:[#allocation2] sm:$0xff]  ;;  %v28_v54 = vld [vmem:[#allocation2 + $0x8] sm:$0xff] }
   0xb   :  { %528 = vmatpush3.bf16.msra.mxu0 %v603_v5  ;;  %591 = vmatpush3.bf16.msra.mxu1 %v603_v5  ;;  %v630_v30 = vld [vmem:[%s789_s0 + $0x50] ss:$0 sps:$4 sm:$0xff]   ;;  %v30_v60 = vld [vmem:[#allocation2 + $0x18] sm:$0xff] }
   0xc   :  { %529 = vmatprep.subr.bf16.mxu0 %v604_v6  ;;  %584 = vmatprep.subr.bf16.mxu1 %v604_v6  ;;  %v29_v52 = vld [vmem:[#allocation2 + $0x10] sm:$0xff]  ;;  %v31_v12 = vld [vmem:[#allocation2 + $0x20] sm:$0xff] }
   0xe   :  { %v33_v2 = vld [vmem:[#allocation2 + $0x30] sm:$0xff] }
   0xf   :  { %530 = vmatpush3.bf16.msra.mxu0 %v605_v7  ;;  %592 = vmatpush3.bf16.msra.mxu1 %v605_v7 }
  0x10   :  { %531 = vmatprep.subr.bf16.mxu0 %v606_v8  ;;  %585 = vmatprep.subr.bf16.mxu1 %v606_v8 }
  0x13   :  { %532 = vmatpush3.bf16.msra.mxu0 %v607_v9  ;;  %593 = vmatpush3.bf16.msra.mxu1 %v607_v9 }
  0x14   :  { %533 = vmatprep.subr.bf16.mxu0 %v608_v10  ;;  %586 = vmatprep.subr.bf16.mxu1 %v608_v10  ;;  %v508_v10 = vld [vmem:[%s790_s2] ss:$0 sm:$0xff] }
  0x17   :  { %534 = vmatpush3.bf16.msra.mxu0 %v609_v14  ;;  %594 = vmatpush3.bf16.msra.mxu1 %v609_v14 }
  0x18   :  { %535 = vmatprep.subr.bf16.mxu0 %v610_v15  ;;  %587 = vmatprep.subr.bf16.mxu1 %v610_v15 }
  0x1b   :  { %536 = vmatpush3.bf16.msra.mxu0 %v611_v16  ;;  %595 = vmatpush3.bf16.msra.mxu1 %v611_v16 }
  0x1c   :  { %537 = vmatprep.subr.bf16.mxu0 %v612_v17  ;;  %588 = vmatprep.subr.bf16.mxu1 %v612_v17 }
  0x1f   :  { %538 = vmatpush3.bf16.msra.mxu0 %v613_v18  ;;  %596 = vmatpush3.bf16.msra.mxu1 %v613_v18  ;;  %v32_v18 = vld [vmem:[#allocation2 + $0x28] sm:$0xff] }
  0x20   :  { %569 = vmatprep.subr.bf16.mxu1 %v619_v19 }
  0x22   :  { %293 = vmatmul.mubr.bf16.vlgmr.msra.gmra.mrb[0].mxu0 %v614_v20  ;;  %317 = vmatmul.mubr.bf16.vlgmr.msra.gmra.mrb[0].mxu1 %v483_v21 }
  0x23   :  { %570 = vmatpush3.bf16.msra.mxu1 %v619_v19  ;;  %300 = vmatprep.mubr.bf16.mxu0 %v621_v22 }
  0x24   :  { %571 = vmatprep.subr.bf16.mxu1 %v620_v23  ;;  %573 = vmatprep.mubr.msk.bf16.mxu1 %vm19_vm0, %v623_v24 }
  0x27   :  { %572 = vmatpush3.bf16.msra.mxu1 %v620_v23 }
  0x2a   :  { %301 = vmatmul.mubr.bf16.gmra.mrb[4].mxu0 %v624_v25  ;;  %574 = vmatmul.mubr.msk.bf16.vlgmr.msra.gmra.mrb[4].mxu1 %vm19_vm0, %v625_v26 }
  0x2b   :  { %308 = vmatprep.mubr.bf16.mxu0 %v626_v27  ;;  %577 = vmatprep.mubr.msk.bf16.mxu1 %vm19_vm0, %v628_v28 }
  0x32   :  { %309 = vmatmul.mubr.bf16.gmra.mrb[8].mxu0 %v629_v29  ;;  %578 = vmatmul.mubr.msk.bf16.gmra.mrb[8].mxu1 %vm19_vm0, %v630_v30 }
  0xf5   :  { %v539_v32 = vpop.f32.mrb[0].mxu0  ;;  %v557_v33 = vpop.f32.mrb[0].mxu1 }
  0xf6   :  { %v540_v34 = vpop.f32.mrb[1].mxu0  ;;  %v558_v35 = vpop.f32.mrb[1].mxu1 }
  0xf7   :  { %v541_v36 = vadd.f32 %v540_v34, %v539_v32  ;;  %v559_v37 = vadd.f32 %v558_v35, %v557_v33  ;;  %v542_v38 = vpop.f32.mrb[2].mxu0  ;;  %v560_v39 = vpop.f32.mrb[2].mxu1 }
  0xf8   :  { %v543_v40 = vpop.f32.mrb[3].mxu0  ;;  %v561_v41 = vpop.f32.mrb[3].mxu1 }
  0xf9   :  { %v544_v42 = vadd.f32 %v543_v40, %v542_v38 }
  0xfd   :  { %v545_v43 = vpop.f32.mrb[4].mxu0  ;;  %v575_v44 = vpop.f32.mrb[4].mxu1 }
  0xfe   :  { %v546_v45 = vpop.f32.mrb[5].mxu0  ;;  %v358_v47 = vpop.f32.mrb[5].mxu1 }
  0xff   :  { %v547_v48 = vadd.f32 %v546_v45, %v545_v43  ;;  %v359_v49 = vadd.f32 %v541_v36, %v358_v47  ;;  %v548_v50 = vpop.f32.mrb[6].mxu0  ;;  %v576_v51 = vpop.f32.mrb[6].mxu1 }
 0x100   :  { %v549_v53 = vpop.f32.mrb[7].mxu0  ;;  %v361_v55 = vpop.f32.mrb[7].mxu1 }
 0x101   :  { %v367_v56 = vadd.f32 %v575_v44, %v547_v48  ;;  %v388_v57 = vadd.f32 %v359_v49, %v27_v46  ;;  %v550_v58 = vadd.f32 %v549_v53, %v548_v50  ;;  %v362_v59 = vadd.f32 %v544_v42, %v361_v55 }
 0x103   :  { %v390_v61 = vadd.f32 %v367_v56, %v29_v52  ;;  %395 = vst.msk [vmem:[#allocation2] sm:$0xff] %vm19_vm0, %v388_v57  ;;  %v370_v62 = vadd.f32 %v576_v51, %v550_v58  ;;  %v389_v63 = vadd.f32 %v362_v59, %v28_v54 }
 0x105   :  { %397 = vst.msk [vmem:[#allocation2 + $0x10] sm:$0xff] %vm19_vm0, %v390_v61  ;;  %v391_v0 = vadd.f32 %v370_v62, %v30_v60  ;;  %396 = vst.msk [vmem:[#allocation2 + $0x8] sm:$0xff] %vm19_vm0, %v389_v63  ;;  %v551_v1 = vpop.f32.mrb[8].mxu0  ;;  %v579_v3 = vpop.f32.mrb[8].mxu1 }
 0x106   :  { %v383_v4 = vadd.f32 %v579_v3, %v559_v37  ;;  %v552_v5 = vpop.f32.mrb[9].mxu0  ;;  %v374_v6 = vpop.f32.mrb[9].mxu1 }
 0x107   :  { %398 = vst.msk [vmem:[#allocation2 + $0x18] sm:$0xff] %vm19_vm0, %v391_v0  ;;  %v553_v7 = vadd.f32 %v552_v5, %v551_v1  ;;  %v554_v8 = vpop.f32.mrb[10].mxu0  ;;  %v580_v9 = vpop.f32.mrb[10].mxu1 }
 0x108   :  { %v394_v11 = vadd.f32 %v383_v4, %v33_v2  ;;  %v555_v13 = vpop.f32.mrb[11].mxu0  ;;  %v377_v14 = vpop.f32.mrb[11].mxu1 }
 0x109   :  { %v375_v15 = vadd.f32 %v553_v7, %v374_v6  ;;  %v556_v16 = vadd.f32 %v555_v13, %v554_v8 }
 0x10a   :  { %v405_v17 = vld [vmem:[#allocation2] sm:$0xff]  ;;  %401 = vst.msk [vmem:[#allocation2 + $0x30] sm:$0xff] %vm19_vm0, %v394_v11 }
 0x10b   :  { %v419_v19 = vadd.f32 %v508_v10, %v405_v17  ;;  %v392_v20 = vadd.f32 %v375_v15, %v31_v12  ;;  %v378_v21 = vadd.f32 %v556_v16, %v377_v14 }
 0x10c   :  { %v407_v22 = vld [vmem:[#allocation2 + $0x10] sm:$0xff]  ;;  %v406_v23 = vld [vmem:[#allocation2 + $0x8] sm:$0xff] }
 0x10d   :  { %v421_v24 = vadd.f32 %v508_v10, %v407_v22  ;;  %v426_v25 = vmax.f32 %v419_v19, 0.0  ;;  %v420_v26 = vadd.f32 %v508_v10, %v406_v23  ;;  %399 = vst.msk [vmem:[#allocation2 + $0x20] sm:$0xff] %vm19_vm0, %v392_v20  ;;  %v393_v27 = vadd.f32 %v378_v21, %v32_v18 }
 0x10e   :  { %v408_v28 = vld [vmem:[#allocation2 + $0x18] sm:$0xff] }
 0x10f   :  { %v428_v29 = vmax.f32 %v421_v24, 0.0  ;;  %v516_v30 = vpack.c.bf16 %v426_v25, %v426_v25  ;;  %v422_v31 = vadd.f32 %v508_v10, %v408_v28  ;;  %v427_v32 = vmax.f32 %v420_v26, 0.0  ;;  %400 = vst.msk [vmem:[#allocation2 + $0x28] sm:$0xff] %vm19_vm0, %v393_v27 }
 0x111   :  { %v518_v33 = vpack.c.bf16 %v428_v29, %v428_v29  ;;  %463 = vst.msk [vmem:[%s791_s3] sm:$0xf] %vm462_vm1, %v516_v30  ;;  %v429_v34 = vmax.f32 %v422_v31, 0.0  ;;  %v517_v35 = vpack.c.bf16 %v427_v32, %v427_v32  ;;  %v411_v36 = vld [vmem:[#allocation2 + $0x30] sm:$0xff] }
 0x112   :  { %v425_v37 = vadd.f32 %v508_v10, %v411_v36 }
 0x113   :  { %465 = vst.msk [vmem:[%s791_s3 + $0x8] sm:$0xf] %vm462_vm1, %v518_v33  ;;  %v519_v38 = vpack.c.bf16 %v429_v34, %v429_v34  ;;  %464 = vst.msk [vmem:[%s791_s3 + $0x4] sm:$0xf] %vm462_vm1, %v517_v35 }
 0x114   :  { %v432_v39 = vmax.f32 %v425_v37, 0.0  ;;  %v409_v40 = vld [vmem:[#allocation2 + $0x20] sm:$0xff] }
 0x115   :  { %466 = vst.msk [vmem:[%s791_s3 + $0xc] sm:$0xf] %vm462_vm1, %v519_v38  ;;  %v423_v41 = vadd.f32 %v508_v10, %v409_v40 }
 0x116   :  { %v522_v42 = vpack.c.bf16 %v432_v39, %v432_v39  ;;  %v410_v43 = vld [vmem:[#allocation2 + $0x28] sm:$0xff] }
 0x117   :  { %v430_v44 = vmax.f32 %v423_v41, 0.0  ;;  %v424_v45 = vadd.f32 %v508_v10, %v410_v43 }
 0x118   :  { %469 = vst.msk [vmem:[%s791_s3 + $0x18] sm:$0xf] %vm462_vm1, %v522_v42 }
 0x119   :  { %v520_v46 = vpack.c.bf16 %v430_v44, %v430_v44  ;;  %v431_v47 = vmax.f32 %v424_v45, 0.0 }
 0x11b   :  { %467 = vst.msk [vmem:[%s791_s3 + $0x10] sm:$0xf] %vm462_vm1, %v520_v46  ;;  %v521_v48 = vpack.c.bf16 %v431_v47, %v431_v47 }
 0x11d   :  { %468 = vst.msk [vmem:[%s791_s3 + $0x14] sm:$0xf] %vm462_vm1, %v521_v48 }

// kernel: encoder_forward.13
= control target key start
LH: loop header
LB: loop body
LE: loop exit
PB: predicated region body
PF: predicated region fallthrough
CT: control target
= control target key end

     0   :  { %vm28_vm0 = vcmask 261120   ;;  %vm32_vm1 = vcmask 259072   ;;  %v214_v17 = vmov 0.0   ;;  %vm215_vm2 = vmmov 0   ;;  %s306_s0 = inlined_call_operand.vmem [shape: bf16[14,32], index: 0, kind: input, shape index: {}]   ;;  %s307_s3 = inlined_call_operand.vmem [shape: bf16[32,96], index: 3, kind: input, shape index: {}]   ;;  %s308_s1 = inlined_call_operand.vmem [shape: f32[1,32], index: 1, kind: input, shape index: {}]   ;;  %s309_s2 = inlined_call_operand.vmem [shape: f32[1,32], index: 2, kind: input, shape index: {}]   ;;  %s310_s4 = inlined_call_operand.vmem [shape: f32[1,96], index: 4, kind: input, shape index: {}]   ;;  %s311_s5 = inlined_call_operand.vmem [shape: bf16[14,32], index: 5, kind: output, shape index: {0}]   ;;  %s312_s7 = inlined_call_operand.vmem [shape: bf16[14,32], index: 7, kind: output, shape index: {2}]   ;;  %s313_s6 = inlined_call_operand.vmem [shape: bf16[14,32], index: 6, kind: output, shape index: {1}]  }
   0x1   :  { %v24_v0 = vld [vmem:[%s306_s0] sm:$0xf]  ;;  %v25_v1 = vld [vmem:[%s306_s0 + $0x4] sm:$0x7]  ;;  %196 = vmatprep.subr.bf16.mxu0 %v214_v17  ;;  %v209_v18 = vld [vmem:[%s307_s3 + $0x8] sm:$0xff]   ;;  %200 = vmatprep.mubr.msk.bf16.mxu0 %vm215_vm2, %v214_v17  ;;  %vm151_vm3 = vcmask 257024  }
   0x2   :  { %v26_v2 = vunpack.c.l.bf16 %v24_v0  ;;  %v27_v3 = vunpack.c.l.bf16 %v25_v1  ;;  %v208_v16 = vld [vmem:[%s307_s3] sm:$0xff]   ;;  %vm153_vm4 = vcmask 256000  }
   0x3   :  { %197 = vmatpush3.bf16.msra.mxu0 %v208_v16  ;;  %v183_v27 = vld [vmem:[%s308_s1] ss:$0 sm:$0xff]  ;;  %s216_s1 = smov 64  }
   0x4   :  { %v29_v4 = vsel %vm28_vm0, %v26_v2, 0.0  ;;  %v33_v5 = vsel %vm32_vm1, %v27_v3, 0.0  ;;  %198 = vmatprep.subr.bf16.mxu0 %v214_v17  ;;  %v184_v31 = vld [vmem:[%s309_s2] ss:$0 sm:$0xff]  ;;  %s217_s2 = smov 96  }
   0x5   :  { %30 = vadd.xlane.f32.xlu0 %v29_v4  ;;  %v185_v36 = vld [vmem:[%s310_s4] ss:$0 sm:$0xff] }
   0x7   :  { %199 = vmatpush3.bf16.msra.mxu0 %v209_v18 }
   0x9   :  { %34 = vadd.xlane.f32.xlu0 %v33_v5 }
  0x92   :  { %v31_v6 = vpop.xlane.xlu0 %30 }
  0x93   :  { %v37_v7 = vmul.f32 0.03125, %v31_v6 }
  0x95   :  { %v39_v8 = vsub.f32 %v26_v2, %v37_v7 }
  0x96   :  { %v35_v9 = vpop.xlane.xlu0 %34 }
  0x97   :  { %v38_v10 = vmul.f32 0.03125, %v35_v9  ;;  %v41_v11 = vmul.f32 %v39_v8, %v39_v8 }
  0x99   :  { %v40_v12 = vsub.f32 %v27_v3, %v38_v10  ;;  %v43_v13 = vsel %vm28_vm0, %v41_v11, 0.0 }
  0x9a   :  { %44 = vadd.xlane.f32.xlu1 %v43_v13 }
  0x9b   :  { %v42_v14 = vmul.f32 %v40_v12, %v40_v12 }
  0x9d   :  { %v46_v15 = vsel %vm32_vm1, %v42_v14, 0.0 }
  0x9e   :  { %47 = vadd.xlane.f32.xlu1 %v46_v15 }
 0x127   :  { %v45_v19 = vpop.xlane.xlu1 %44 }
 0x128   :  { %v49_v20 = vmul.f32 0.03125, %v45_v19 }
 0x12a   :  { %v51_v21 = vadd.f32 1e-12, %v49_v20 }
 0x12b   :  { %v48_v22 = vpop.xlane.xlu1 %47 }
 0x12c   :  { %210 = vrsqrt.f32 %v51_v21  ;;  %v50_v23 = vmul.f32 0.03125, %v48_v22 }
 0x12e   :  { %v52_v24 = vadd.f32 1e-12, %v50_v23 }
 0x130   :  { %212 = vrsqrt.f32 %v52_v24 }
 0x136   :  { %v211_v25 = vpop.eup %210 }
 0x137   :  { %v55_v26 = vmul.f32 %v211_v25, %v39_v8 }
 0x139   :  { %v64_v30 = vmul.f32 %v183_v27, %v55_v26 }
 0x13a   :  { %v213_v28 = vpop.eup %212 }
 0x13b   :  { %v56_v29 = vmul.f32 %v213_v28, %v40_v12  ;;  %v73_v33 = vadd.f32 %v184_v31, %v64_v30 }
 0x13d   :  { %v65_v32 = vmul.f32 %v183_v27, %v56_v29 }
 0x13f   :  { %v74_v34 = vadd.f32 %v184_v31, %v65_v32 }
 0x141   :  { %v75_v35 = vpack.c.bf16 %v74_v34, %v73_v33 }
 0x143   :  { %201 = vmatmul.mubr.msk.bf16.vlgmr.msra.gmra.mrb[0].mxu0 %vm28_vm0, %v75_v35 }
 0x216   :  { %v136_v37 = vpop.f32.mrb[0].mxu0 }
 0x217   :  { %v137_v38 = vadd.f32 %v185_v36, %v136_v37  ;;  %v202_v39 = vpop.f32.mrb[1].mxu0 }
 0x218   :  { %v139_v40 = vpop.f32.mrb[2].mxu0 }
 0x219   :  { %v191_v41 = vpack.c.bf16 %v137_v38, %v137_v38  ;;  %v140_v42 = vadd.f32 %v185_v36, %v139_v40  ;;  %v203_v43 = vpop.f32.mrb[3].mxu0 }
 0x21b   :  { %v192_v44 = vpack.c.bf16 %v140_v42, %v140_v42  ;;  %163 = vrot.lane.b32.xlu1 %v191_v41, %s216_s1  ;;  %155 = vrot.lane.b32.xlu0 %v191_v41, %s217_s2  ;;  %152 = vst.msk [vmem:[%s311_s5] sm:$0xf] %vm151_vm3, %v191_v41 }
 0x21d   :  { %154 = vst.msk [vmem:[%s311_s5 + $0x4] sm:$0x7] %vm153_vm4, %v192_v44 }
 0x21f   :  { %157 = vrot.lane.b32.xlu1 %v192_v44, %s217_s2 }
 0x223   :  { %165 = vrot.lane.b32.xlu1 %v192_v44, %s216_s1 }
 0x28d   :  { %v164_v45 = vpop.permute.xlu1 %163  ;;  %v156_v46 = vpop.permute.xlu0 %155 }
 0x28e   :  { %169 = vst.msk [vmem:[%s312_s7] sm:$0xf] %vm151_vm3, %v164_v45  ;;  %161 = vst.msk [vmem:[%s313_s6] sm:$0xf] %vm151_vm3, %v156_v46 }
 0x291   :  { %v158_v47 = vpop.permute.xlu1 %157 }
 0x292   :  { %162 = vst.msk [vmem:[%s313_s6 + $0x4] sm:$0x7] %vm153_vm4, %v158_v47 }
 0x295   :  { %v166_v48 = vpop.permute.xlu1 %165 }
 0x296   :  { %170 = vst.msk [vmem:[%s312_s7 + $0x4] sm:$0x7] %vm153_vm4, %v166_v48 }

// kernel: encoder_forward.12
= control target key start
LH: loop header
LB: loop body
LE: loop exit
PB: predicated region body
PF: predicated region fallthrough
CT: control target
= control target key end

     0   :  { %vm22_vm0 = vcmask 261120   ;;  %v237_v0 = vmov 0.0   ;;  %vm238_vm1 = vmmov 0   ;;  %vm24_vm2 = vcmask 259072   ;;  %s308_s1 = inlined_call_operand.vmem [shape: bf16[128,32], index: 1, kind: input, shape index: {}]   ;;  %s309_s0 = inlined_call_operand.vmem [shape: bf16[14,128], index: 0, kind: input, shape index: {}]   ;;  %s310_s2 = inlined_call_operand.vmem [shape: f32[1,32], index: 2, kind: input, shape index: {}]   ;;  %s311_s3 = inlined_call_operand.vmem [shape: f32[14,32], index: 3, kind: input, shape index: {}]   ;;  %s312_s4 = inlined_call_operand.vmem [shape: bf16[14,32], index: 4, kind: output, shape index: {}]  }
   0x1   :  { %206 = vmatprep.subr.bf16.mxu0 %v237_v0  ;;  %v228_v1 = vld [vmem:[%s308_s1] sm:$0xff]   ;;  %222 = vmatprep.mubr.msk.bf16.mxu0 %vm238_vm1, %v237_v0  ;;  %23 = vst.msk [vmem:[#allocation2] sm:$0xff] %vm22_vm0, %v237_v0  ;;  %v229_v2 = vld [vmem:[%s308_s1 + $0x8] sm:$0xff]   ;;  %v230_v3 = vld [vmem:[%s308_s1 + $0x10] sm:$0xff]   ;;  %vm175_vm3 = vcmask 257024   ;;  %vm177_vm4 = vcmask 256000  }
   0x2   :  { %207 = vmatpush3.bf16.msra.mxu0 %v228_v1  ;;  %v231_v4 = vld [vmem:[%s308_s1 + $0x18] sm:$0xff]   ;;  %v232_v5 = vld [vmem:[%s308_s1 + $0x20] sm:$0xff]   ;;  %v233_v6 = vld [vmem:[%s308_s1 + $0x28] sm:$0xff]   ;;  %25 = vst.msk [vmem:[#allocation2 + $0x8] sm:$0x3f] %vm24_vm2, %v237_v0 }
   0x3   :  { %208 = vmatprep.subr.bf16.mxu0 %v237_v0  ;;  %v234_v7 = vld [vmem:[%s308_s1 + $0x30] sm:$0xff]   ;;  %v235_v8 = vld [vmem:[%s308_s1 + $0x38] sm:$0xff]   ;;  %v236_v9 = vld [vmem:[%s309_s0] sm:$0x7f]  }
   0x4   :  { %v192_v18 = vld [vmem:[%s310_s2] ss:$0 sm:$0xff]  ;;  %v164_v25 = vld [vmem:[%s311_s3 + $0x8] sm:$0x3f] }
   0x5   :  { %v163_v21 = vld [vmem:[%s311_s3] sm:$0xff] }
   0x6   :  { %209 = vmatpush3.bf16.msra.mxu0 %v229_v2 }
   0x7   :  { %210 = vmatprep.subr.bf16.mxu0 %v237_v0 }
   0x8   :  { %v26_v10 = vld [vmem:[#allocation2] sm:$0xff] }
   0x9   :  { %v27_v12 = vld [vmem:[#allocation2 + $0x8] sm:$0x3f] }
   0xa   :  { %211 = vmatpush3.bf16.msra.mxu0 %v230_v3 }
   0xb   :  { %212 = vmatprep.subr.bf16.mxu0 %v237_v0 }
   0xe   :  { %213 = vmatpush3.bf16.msra.mxu0 %v231_v4 }
   0xf   :  { %214 = vmatprep.subr.bf16.mxu0 %v237_v0 }
  0x12   :  { %215 = vmatpush3.bf16.msra.mxu0 %v232_v5 }
  0x13   :  { %216 = vmatprep.subr.bf16.mxu0 %v237_v0 }
  0x16   :  { %217 = vmatpush3.bf16.msra.mxu0 %v233_v6 }
  0x17   :  { %218 = vmatprep.subr.bf16.mxu0 %v237_v0 }
  0x1a   :  { %219 = vmatpush3.bf16.msra.mxu0 %v234_v7 }
  0x1b   :  { %220 = vmatprep.subr.bf16.mxu0 %v237_v0 }
  0x1e   :  { %221 = vmatpush3.bf16.msra.mxu0 %v235_v8 }
  0x21   :  { %223 = vmatmul.mubr.bf16.vlgmr.msra.gmra.mrb[0].mxu0 %v236_v9 }
  0xf4   :  { %v134_v11 = vpop.f32.mrb[0].mxu0 }
  0xf5   :  { %v141_v13 = vadd.f32 %v134_v11, %v26_v10  ;;  %v224_v14 = vpop.f32.mrb[1].mxu0 }
  0xf6   :  { %v137_v15 = vpop.f32.mrb[2].mxu0 }
  0xf7   :  { %144 = vst.msk [vmem:[#allocation2] sm:$0xff] %vm22_vm0, %v141_v13  ;;  %v142_v16 = vadd.f32 %v137_v15, %v27_v12  ;;  %v225_v17 = vpop.f32.mrb[3].mxu0 }
  0xf9   :  { %146 = vst.msk [vmem:[#allocation2 + $0x8] sm:$0x3f] %vm24_vm2, %v142_v16 }
  0xfe   :  { %v150_v19 = vld [vmem:[#allocation2] sm:$0xff] }
  0xff   :  { %v159_v20 = vadd.f32 %v192_v18, %v150_v19 }
 0x100   :  { %v151_v22 = vld [vmem:[#allocation2 + $0x8] sm:$0x3f] }
 0x101   :  { %v161_v23 = vmul.f32 5.656854, %v159_v20  ;;  %v160_v24 = vadd.f32 %v192_v18, %v151_v22 }
 0x103   :  { %v165_v26 = vadd.f32 %v163_v21, %v161_v23  ;;  %v162_v27 = vmul.f32 5.656854, %v160_v24 }
 0x105   :  { %v195_v28 = vpack.c.bf16 %v165_v26, %v165_v26  ;;  %v166_v29 = vadd.f32 %v164_v25, %v162_v27 }
 0x107   :  { %176 = vst.msk [vmem:[%s312_s4] sm:$0xf] %vm175_vm3, %v195_v28  ;;  %v196_v30 = vpack.c.bf16 %v166_v29, %v166_v29 }
 0x109   :  { %178 = vst.msk [vmem:[%s312_s4 + $0x4] sm:$0x7] %vm177_vm4, %v196_v30 }

// kernel: encoder_forward.14
= control target key start
LH: loop header
LB: loop body
LE: loop exit
PB: predicated region body
PF: predicated region fallthrough
CT: control target
= control target key end

     0   :  { %s1518_s24 = smov 0   ;;  %s1520_s25 = smov 0   ;;  %s1718_s0 = inlined_call_operand.vmem [shape: bf16[2,7,32], index: 0, kind: input, shape index: {}]   ;;  %s1719_s1 = inlined_call_operand.vmem [shape: bf16[2,7,32], index: 1, kind: input, shape index: {}]   ;;  %s1720_s2 = inlined_call_operand.vmem [shape: bf16[2,7,32], index: 2, kind: input, shape index: {}]   ;;  %s1721_s3 = inlined_call_operand.vmem [shape: f32[2,1,7], index: 3, kind: input, shape index: {}]   ;;  %s1722_s4 = inlined_call_operand.vmem [shape: bf16[2,7,32], index: 4, kind: input, shape index: {}]   ;;  %s1723_s5 = inlined_call_operand.vmem [shape: bf16[32,32], index: 5, kind: input, shape index: {}]   ;;  %s1724_s6 = inlined_call_operand.vmem [shape: f32[1,32], index: 6, kind: input, shape index: {}]   ;;  %s1725_s7 = inlined_call_operand.vmem [shape: bf16[2,7,32], index: 7, kind: output, shape index: {}]  }
   0x1   :  { %s1522_s26 = smov 0  }
   0x2 LB: > { %s36_s27 = sadd.s32 1, %s1461_s25  ;;  %p1279_p0 = scmp.ge.s32.totalorder %s1465_s26, 1  ;;  %s1465_s26 = sphi %s1522_s26, %s17_s26   ;;  %s1461_s25 = sphi %s1520_s25, %s1727_s25   ;;  %s1457_s24 = sphi %s1518_s24, %s1726_s24  }
   0x3   : > { %p38_p1 = scmp.ge.s32.totalorder %s36_s27, 2  ;;  %p317_p2 = scmp.lt.s32.totalorder %s1465_s26, 3 }
   0x5   : > { %s1729_s27 = smov (%p38_p1, %s36_s27), 0  ;;  %p318_p3 = pnand %p1279_p0, %p317_p2 }
   0x6   : > { %p380_p4 = scmp.lt.s32.totalorder (!%p318_p3), %s1457_s24, 1  ;;  %v1467_v0 = vmov (!%p318_p3), 0.0   ;;  %vm1468_vm0 = vmmov (!%p318_p3), 0   ;;  %vm444_vm1 = vcmask (!%p318_p3), 64512   ;;  %vm426_vm2 = vcmask (!%p318_p3), 6144   ;;  %s1471_s15 = smov (!%p318_p3), 120  }
   0x7   : > { %321 = sbr.rel (%p318_p3) target bundleno = 1692 (0x69c), region = 48  ;;  %1322 = vmatprep.subr.bf16.mxu0 (!%p318_p3), %v1467_v0  ;;  %1324 = vmatprep.mubr.msk.bf16.mxu0 (!%p318_p3), %vm1468_vm0, %v1467_v0  ;;  %v1469_v4 = vmov (!%p318_p3), -1e+30   ;;  %431 = vst.msk [vmem:[#allocation4] sm:$0x7f] (!%p318_p3), %vm426_vm2, %v1467_v0  ;;  %vm500_vm3 = vcmask (!%p318_p3), 55296  }
   0x8   : > { %1328 = vmatprep.subr.bf16.mxu1 (!%p318_p3), %v1467_v0  ;;  %1330 = vmatprep.mubr.msk.bf16.mxu1 (!%p318_p3), %vm1468_vm0, %v1467_v0  ;;  %427 = vst.msk [vmem:[#allocation3] sm:$0x7f] (!%p318_p3), %vm426_vm2, %v1469_v4  ;;  %428 = vst.msk [vmem:[#allocation3 + $0x8] sm:$0x7f] (!%p318_p3), %vm426_vm2, %v1469_v4  ;;  %v1470_v13 = vmov (!%p318_p3), 0   ;;  %s1472_s16 = smov (!%p318_p3), 112  }
   0x9   : > { %429 = vst.msk [vmem:[#allocation3 + $0x10] sm:$0x7f] (!%p318_p3), %vm426_vm2, %v1469_v4  ;;  %430 = vst.msk [vmem:[#allocation3 + $0x18] sm:$0x7f] (!%p318_p3), %vm426_vm2, %v1469_v4  ;;  %1413 = vset.pattern.permute.xlu0 (!%p318_p3), %v1470_v13  ;;  %1414 = vset.pattern.permute.xlu1 (!%p318_p3), %v1470_v13  ;;  %s1473_s17 = smov (!%p318_p3), 104   ;;  %vm521_vm4 = vcmask (!%p318_p3), 1042432  }
   0xa   : > { %432 = vst.msk [vmem:[#allocation4 + $0x8] sm:$0x7f] (!%p318_p3), %vm426_vm2, %v1467_v0  ;;  %433 = vst.msk [vmem:[#allocation4 + $0x10] sm:$0x7f] (!%p318_p3), %vm426_vm2, %v1467_v0  ;;  %vm522_vm5 = vcmask (!%p318_p3), 1043456   ;;  %v1474_v21 = vmov (!%p318_p3), 65535  }
   0xb   : > { %434 = vst.msk [vmem:[#allocation4 + $0x18] sm:$0x7f] (!%p318_p3), %vm426_vm2, %v1467_v0  ;;  %v523_v22 = vsel (!%p318_p3), %vm521_vm4, 4294967295, %v1474_v21  ;;  %vm517_vm6 = vcmask (!%p318_p3), 56320   ;;  %vm435_vm7 = vcmask (!%p318_p3), 63488   ;;  %s1475_s29 = smov (!%p318_p3), 8  }
   0xc   : > { %v1598_v23 = vsel (!%p318_p3), %vm522_vm5, %v523_v22, 0  ;;  %438 = vst.msk [vmem:[#allocation2 + $0x10] sm:$0x7f] (!%p318_p3), %vm435_vm7, %v1467_v0  ;;  %436 = vst.msk [vmem:[#allocation2] sm:$0x7f] (!%p318_p3), %vm435_vm7, %v1467_v0  ;;  %s1476_s30 = smov (!%p318_p3), 16  }
   0xd   : > { %437 = vst.msk [vmem:[#allocation2 + $0x8] sm:$0x7f] (!%p318_p3), %vm435_vm7, %v1467_v0  ;;  %439 = vst.msk [vmem:[#allocation2 + $0x18] sm:$0x7f] (!%p318_p3), %vm435_vm7, %v1467_v0  ;;  %vm1059_vm8 = vcmask (!%p318_p3), 130048   ;;  %vm1061_vm9 = vcmask (!%p318_p3), 195584  }
   0xe   : > { %s1731_s24 = smov (!%p380_p4, %s1457_s24), 1  ;;  %vm1087_vm10 = vcmask 261120   ;;  %vm1135_vm11 = vcmask 257024   ;;  %vm1136_vm12 = vsmask.f32 3328 }
   0xf   : > { %s1542_s28 = sshll.u32 %s1731_s24, 2  ;;  %s406_s14 = scalar_lea.vmem %s1721_s3, %s1731_s24  ;;  %v1582_v16 = vld [vmem:[#allocation3] sm:$0x7f]  ;;  %vm1137_vm13 = vmand %vm1135_vm11, %vm1136_vm12 }
  0x10   : > { %s393_s8 = scalar_lea.vmem %s1719_s1, %s1542_s28  ;;  %s386_s11 = scalar_lea.vmem %s1718_s0, %s1542_s28  ;;  %v1572_v6 = vld [vmem:[%s406_s14] ss:$0 sm:$0xff] }
  0x11   : > { %v441_v1 = vld [vmem:[%s393_s8] sm:$0xf]  ;;  %s400_s20 = scalar_lea.vmem %s1720_s2, %s1542_s28  ;;  %s1477_s8 = smov 24  }
  0x12   : > { %v449_v2 = vsel %vm444_vm1, %v441_v1, 0  ;;  %v440_v3 = vld [vmem:[%s386_s11] sm:$0xf]  ;;  %v1289_v14 = vcombine.low %v441_v1, %v441_v1  ;;  %v1633_v1 = vld [vmem:[#allocation3 + $0x8] sm:$0x7f]  ;;  %s413_s11 = scalar_lea.vmem %s1722_s4, %s1542_s28 }
  0x13   : > { %1323 = vmatpush3.bf16.xpose.msra.mxu0 %v449_v2  ;;  %v1288_v15 = vcombine.low %v440_v3, %v440_v3  ;;  %v1596_v20 = vld [vmem:[%s400_s20] sm:$0xf] }
  0x14   : > { %1340 = vmatprep.subr.bf16.mxu0 %v1467_v0  ;;  %595 = vrot.lane.b32.xlu1 %v1289_v14, %s1471_s15  ;;  %v526_v24 = vand.u32 %v1598_v23, %v1596_v20 }
  0x16   : > { %1329 = vmatpush3.bf16.msra.mxu1 %v526_v24 }
  0x17   : > { %1334 = vmatprep.subr.bf16.mxu1 %v1467_v0 }
  0x18   : > { %590 = vrot.lane.b32.xlu1 %v1288_v15, %s1471_s15 }
  0x1a   : > { %1325 = vmatmul.mubr.msk.bf16.vlgmr.msra.gmra.mrb[0].mxu0 %vm444_vm1, %v440_v3 }
  0x1b   : > { %1342 = vmatprep.mubr.msk.bf16.mxu0 %vm1468_vm0, %v1467_v0 }
  0x1c   : > { %735 = vrot.lane.b32.xlu1 %v1289_v14, %s1472_s16 }
  0x20   : > { %733 = vrot.lane.b32.xlu1 %v1288_v15, %s1472_s16 }
  0x24   : > { %872 = vrot.lane.b32.xlu1 %v1289_v14, %s1473_s17 }
  0x28   : > { %870 = vrot.lane.b32.xlu1 %v1288_v15, %s1473_s17 }
  0x86   : > { %v596_v28 = vpop.permute.xlu1 %595 }
  0x87   : > { %v601_v31 = vsel %vm444_vm1, %v596_v28, 0 }
  0x8a   : > { %v591_v29 = vpop.permute.xlu1 %590 }
  0x8e   : > { %v736_v33 = vpop.permute.xlu1 %735 }
  0x8f   : > { %v741_v35 = vsel %vm444_vm1, %v736_v33, 0 }
  0x92   : > { %v734_v34 = vpop.permute.xlu1 %733 }
  0x96   : > { %v873_v36 = vpop.permute.xlu1 %872 }
  0x97   : > { %v878_v37 = vsel %vm444_vm1, %v873_v36, 0 }
  0x9a   : > { %v871_v38 = vpop.permute.xlu1 %870 }
  0xed   : > { %v485_v5 = vpop.f32.mrb[0].mxu0 }
  0xee   : > { %v491_v7 = vmul.f32 0.35355338, %v485_v5  ;;  %v1326_v8 = vpop.f32.mrb[1].mxu0  ;;  %v786_v5 = vld [vmem:[#allocation3 + $0x10] sm:$0x7f] }
  0xef   : > { %v488_v9 = vpop.f32.mrb[2].mxu0 }
  0xf0   : > { %v1327_v10 = vpop.f32.mrb[3].mxu0  ;;  %v498_v11 = vadd.f32 %v1572_v6, %v491_v7  ;;  %v923_v9 = vld [vmem:[#allocation3 + $0x18] sm:$0x7f] }
  0xf2   : > { %v501_v12 = vsel %vm500_vm3, %v498_v11, -inf }
  0xf3   : > { %502 = vmax.xlane.f32.xlu0 %v501_v12  ;;  %v1291_v12 = vcombine.low %v1596_v20, %v1596_v20 }
 0x180   : > { %v503_v17 = vpop.xlane.xlu0 %502 }
 0x181   : > { %v1585_v18 = vmax.f32 %v1582_v16, %v503_v17 }
 0x183   : > { %v505_v19 = vsub.f32 %v1582_v16, %v1585_v18  ;;  %586 = vst.msk [vmem:[#allocation3] sm:$0x7f] %vm426_vm2, %v1585_v18  ;;  %510 = vperm.xlu0 %1413, %v1585_v18   ;;  %v999_v18 = vld [vmem:[#allocation4 + $0x18] sm:$0x7f] }
 0x202   : > { %v511_v25 = vpop.permute.xlu0 %510 }
 0x203   : > { %v513_v26 = vsub.f32 %v498_v11, %v511_v25 }
 0x205   : > { %v514_v27 = vmul.f32 1.442695, %v513_v26 }
 0x207   : > { %1419 = vpow2.f32 %v514_v27 }
 0x211   : > { %v1603_v30 = vpop.eup %1419 }
 0x212   : > { %v516_v32 = vpack.c.bf16 %v1603_v30, %v1603_v30 }
 0x214   : > { %1331 = vmatmul.mubr.msk.bf16.vlgmr.msra.gmra.mrb[0].mxu1 %vm517_vm6, %v516_v32 }
 0x215   : > { %1335 = vmatpush3.bf16.xpose.msra.mxu1 %v601_v31  ;;  %1336 = vmatprep.mubr.msk.bf16.mxu1 %vm1468_vm0, %v1467_v0  ;;  %v580_v31 = vsel %vm500_vm3, %v1603_v30, 0.0 }
 0x216   : > { %1346 = vmatprep.subr.bf16.mxu1 %v1467_v0 }
 0x21c   : > { %1337 = vmatmul.mubr.msk.bf16.vlgmr.msra.gmra.mrb[4].mxu1 %vm444_vm1, %v591_v29 }
 0x21d   : > { %1347 = vmatpush3.bf16.xpose.msra.mxu1 %v741_v35  ;;  %1348 = vmatprep.mubr.msk.bf16.mxu1 %vm1468_vm0, %v1467_v0 }
 0x21e   : > { %1358 = vmatprep.subr.bf16.mxu1 %v1467_v0 }
 0x224   : > { %1349 = vmatmul.mubr.msk.bf16.vlgmr.msra.gmra.mrb[8].mxu1 %vm444_vm1, %v734_v34 }
 0x225   : > { %1359 = vmatpush3.bf16.xpose.msra.mxu1 %v878_v37  ;;  %1360 = vmatprep.mubr.msk.bf16.mxu1 %vm1468_vm0, %v1467_v0 }
 0x226   : > { %1370 = vmatprep.subr.bf16.mxu1 %v1467_v0 }
 0x22c   : > { %1361 = vmatmul.mubr.msk.bf16.vlgmr.msra.gmra.mrb[12].mxu1 %vm444_vm1, %v871_v38 }
 0x22d   : > { %1374 = vmatprep.mubr.msk.bf16.mxu1 %vm1468_vm0, %v1467_v0 }
 0x2e7   : > { %v1625_v39 = vpop.f32.mrb[0].mxu1 }
 0x2e8   : > { %v1332_v40 = vpop.f32.mrb[1].mxu1 }
 0x2e9   : > { %v565_v41 = vpop.f32.mrb[2].mxu1 }
 0x2ea   : > { %v1333_v42 = vpop.f32.mrb[3].mxu1 }
 0x2ef   : > { %v637_v43 = vpop.f32.mrb[4].mxu1 }
 0x2f0   : > { %v643_v44 = vmul.f32 0.35355338, %v637_v43  ;;  %v1338_v45 = vpop.f32.mrb[5].mxu1 }
 0x2f1   : > { %v640_v46 = vpop.f32.mrb[6].mxu1 }
 0x2f2   : > { %v1339_v47 = vpop.f32.mrb[7].mxu1  ;;  %v644_v48 = vadd.f32 %v1572_v6, %v643_v44 }
 0x2f4   : > { %v647_v49 = vsel %vm500_vm3, %v644_v48, -inf }
 0x2f5   : > { %648 = vmax.xlane.f32.xlu1 %v647_v49  ;;  %v506_v49 = vmul.f32 1.442695, %v505_v19 }
 0x2f7   : > { %v777_v50 = vpop.f32.mrb[8].mxu1 }
 0x2f8   : > { %v783_v51 = vmul.f32 0.35355338, %v777_v50  ;;  %v1350_v52 = vpop.f32.mrb[9].mxu1  ;;  %v725_v50 = vld [vmem:[#allocation4 + $0x8] sm:$0x7f] }
 0x2f9   : > { %v780_v53 = vpop.f32.mrb[10].mxu1 }
 0x2fa   : > { %v1351_v54 = vpop.f32.mrb[11].mxu1  ;;  %v784_v55 = vadd.f32 %v1572_v6, %v783_v51 }
 0x2fb   : > { %v578_v54 = vld [vmem:[#allocation4] sm:$0x7f] }
 0x2fc   : > { %v787_v56 = vsel %vm500_vm3, %v784_v55, -inf }
 0x2fd   : > { %788 = vmax.xlane.f32.xlu0 %v787_v56 }
 0x2ff   : > { %v914_v57 = vpop.f32.mrb[12].mxu1 }
 0x300   : > { %v920_v58 = vmul.f32 0.35355338, %v914_v57  ;;  %v1362_v59 = vpop.f32.mrb[13].mxu1 }
 0x301   : > { %v917_v60 = vpop.f32.mrb[14].mxu1 }
 0x302   : > { %v1363_v61 = vpop.f32.mrb[15].mxu1  ;;  %v921_v62 = vadd.f32 %v1572_v6, %v920_v58  ;;  %v862_v58 = vld [vmem:[#allocation4 + $0x10] sm:$0x7f] }
 0x304   : > { %v924_v63 = vsel %vm500_vm3, %v921_v62, -inf }
 0x305   : > { %925 = vmax.xlane.f32.xlu1 %v924_v63 }
 0x382   : > { %v649_v2 = vpop.xlane.xlu1 %648 }
 0x383   : > { %v1636_v3 = vmax.f32 %v1633_v1, %v649_v2 }
 0x385   : > { %v651_v4 = vsub.f32 %v1633_v1, %v1636_v3  ;;  %732 = vst.msk [vmem:[#allocation3 + $0x8] sm:$0x7f] %vm426_vm2, %v1636_v3  ;;  %656 = vperm.xlu1 %1414, %v1636_v3  }
 0x387   : > { %v652_v45 = vmul.f32 1.442695, %v651_v4 }
 0x38a   : > { %v789_v7 = vpop.xlane.xlu0 %788 }
 0x38b   : > { %v790_v6 = vmax.f32 %v786_v5, %v789_v7 }
 0x38d   : > { %v791_v8 = vsub.f32 %v786_v5, %v790_v6  ;;  %869 = vst.msk [vmem:[#allocation3 + $0x10] sm:$0x7f] %vm426_vm2, %v790_v6  ;;  %796 = vperm.xlu0 %1413, %v790_v6  }
 0x38f   : > { %v792_v34 = vmul.f32 1.442695, %v791_v8 }
 0x392   : > { %v926_v10 = vpop.xlane.xlu1 %925 }
 0x393   : > { %v927_v11 = vmax.f32 %v923_v9, %v926_v10 }
 0x395   : > { %v928_v13 = vsub.f32 %v923_v9, %v927_v11  ;;  %1006 = vst.msk [vmem:[#allocation3 + $0x18] sm:$0x7f] %vm426_vm2, %v927_v11  ;;  %933 = vperm.xlu1 %1414, %v927_v11   ;;  %v715_v9 = vld [vmem:[#allocation2 + $0x8] sm:$0x7f] }
 0x397   : > { %v929_v30 = vmul.f32 1.442695, %v928_v13 }
 0x399   : > { %666 = vrot.lane.b32.xlu1 %v1291_v12, %s1471_s15 }
 0x39d   : > { %803 = vrot.lane.b32.xlu1 %v1291_v12, %s1472_s16  ;;  %s420_s16 = scalar_lea.vmem %s1725_s7, %s1542_s28 }
 0x3a1   : > { %940 = vrot.lane.b32.xlu1 %v1291_v12, %s1473_s17 }
 0x404   : > { %v657_v14 = vpop.permute.xlu1 %656 }
 0x405   : > { %v659_v15 = vsub.f32 %v644_v48, %v657_v14 }
 0x407   : > { %v660_v17 = vmul.f32 1.442695, %v659_v15 }
 0x409   : > { %1421 = vpow2.f32 %v660_v17 }
 0x40c   : > { %v797_v21 = vpop.permute.xlu0 %796 }
 0x40d   : > { %v799_v22 = vsub.f32 %v784_v55, %v797_v21  ;;  %v852_v21 = vld [vmem:[#allocation2 + $0x10] sm:$0x7f] }
 0x40f   : > { %v800_v24 = vmul.f32 1.442695, %v799_v22 }
 0x411   : > { %1423 = vpow2.f32 %v800_v24 }
 0x413   : > { %v1422_v25 = vpop.eup %1421 }
 0x414   : > { %v934_v20 = vpop.permute.xlu1 %933  ;;  %v727_v26 = vsel %vm500_vm3, %v1422_v25, 0.0  ;;  %v662_v36 = vpack.c.bf16 %v1422_v25, %v1422_v25 }
 0x415   : > { %v936_v27 = vsub.f32 %v921_v62, %v934_v20  ;;  %728 = vadd.xlane.f32.xlu1 %v727_v26 }
 0x417   : > { %v937_v28 = vmul.f32 1.442695, %v936_v27 }
 0x418   : > { %v667_v29 = vpop.permute.xlu1 %666 }
 0x419   : > { %1425 = vpow2.f32 %v937_v28  ;;  %v672_v32 = vand.u32 %v667_v29, %v1598_v23  ;;  %581 = vadd.xlane.f32.xlu1 %v580_v31  ;;  %v989_v29 = vld [vmem:[#allocation2 + $0x18] sm:$0x7f] }
 0x41a   : > { %1427 = vpow2.f32 %v792_v34 }
 0x41b   : > { %v1424_v33 = vpop.eup %1423  ;;  %1341 = vmatpush3.bf16.msra.mxu0 %v672_v32  ;;  %1429 = vpow2.f32 %v929_v30 }
 0x41c   : > { %v864_v35 = vsel %vm500_vm3, %v1424_v33, 0.0  ;;  %v804_v37 = vpop.permute.xlu1 %803  ;;  %1352 = vmatprep.subr.bf16.mxu0 %v1467_v0  ;;  %v802_v44 = vpack.c.bf16 %v1424_v33, %v1424_v33  ;;  %1431 = vpow2.f32 %v652_v45  ;;  %v568_v45 = vld [vmem:[#allocation2] sm:$0x7f] }
 0x41d   : > { %865 = vadd.xlane.f32.xlu0 %v864_v35  ;;  %v809_v38 = vand.u32 %v804_v37, %v1598_v23  ;;  %1433 = vpow2.f32 %v506_v49 }
 0x41e   : > { %1343 = vmatmul.mubr.msk.bf16.vlgmr.msra.gmra.mrb[4].mxu0 %vm517_vm6, %v662_v36 }
 0x41f   : > { %1353 = vmatpush3.bf16.msra.mxu0 %v809_v38  ;;  %1354 = vmatprep.mubr.msk.bf16.mxu0 %vm1468_vm0, %v1467_v0  ;;  %v1417_v38 = vld [vmem:[%s1723_s5] sm:$0xff]  }
 0x420   : > { %v941_v40 = vpop.permute.xlu1 %940  ;;  %1364 = vmatprep.subr.bf16.mxu0 %v1467_v0  ;;  %1371 = vmatpush3.bf16.msra.mxu1 %v1417_v38 }
 0x421   : > { %v946_v42 = vand.u32 %v941_v40, %v1598_v23  ;;  %1372 = vmatprep.subr.bf16.mxu1 %v1467_v0 }
 0x423   : > { %v1426_v41 = vpop.eup %1425 }
 0x424   : > { %v1001_v43 = vsel %vm500_vm3, %v1426_v41, 0.0  ;;  %v1428_v23 = vpop.eup %1427  ;;  %v939_v46 = vpack.c.bf16 %v1426_v41, %v1426_v41  ;;  %v1418_v41 = vld [vmem:[%s1723_s5 + $0x8] sm:$0xff]  }
 0x425   : > { %1002 = vadd.xlane.f32.xlu0 %v1001_v43  ;;  %v1430_v47 = vpop.eup %1429  ;;  %v863_v60 = vmul.f32 %v1428_v23, %v862_v58  ;;  %1373 = vmatpush3.bf16.msra.mxu1 %v1418_v41 }
 0x426   : > { %1355 = vmatmul.mubr.msk.bf16.vlgmr.msra.gmra.mrb[8].mxu0 %vm517_vm6, %v802_v44  ;;  %v1432_v48 = vpop.eup %1431  ;;  %v1000_v19 = vmul.f32 %v1430_v47, %v999_v18 }
 0x427   : > { %1365 = vmatpush3.bf16.msra.mxu0 %v946_v42  ;;  %1366 = vmatprep.mubr.msk.bf16.mxu0 %vm1468_vm0, %v1467_v0  ;;  %v726_v51 = vmul.f32 %v1432_v48, %v725_v50  ;;  %v1434_v52 = vpop.eup %1433 }
 0x428   : > { %v579_v56 = vmul.f32 %v1434_v52, %v578_v54 }
 0x42a   : > { %855 = vperm.xlu1 %1414, %v1428_v23  }
 0x42e   : > { %992 = vperm.xlu1 %1414, %v1430_v47   ;;  %1367 = vmatmul.mubr.msk.bf16.vlgmr.msra.gmra.mrb[12].mxu0 %vm517_vm6, %v939_v46 }
 0x43b   : > { %718 = vperm.xlu0 %1413, %v1432_v48  }
 0x4a2   : > { %v729_v53 = vpop.xlane.xlu1 %728 }
 0x4a3   : > { %v730_v55 = vadd.f32 %v729_v53, %v726_v51 }
 0x4a5   : > { %731 = vst.msk [vmem:[#allocation4 + $0x8] sm:$0x7f] %vm426_vm2, %v730_v55 }
 0x4a6   : > { %v582_v57 = vpop.xlane.xlu1 %581 }
 0x4a7   : > { %v583_v59 = vadd.f32 %v582_v57, %v579_v56 }
 0x4a9   : > { %585 = vst.msk [vmem:[#allocation4] sm:$0x7f] %vm426_vm2, %v583_v59 }
 0x4aa   : > { %v866_v61 = vpop.xlane.xlu0 %865  ;;  %v856_v22 = vpop.permute.xlu1 %855 }
 0x4ab   : > { %v867_v62 = vadd.f32 %v866_v61, %v863_v60  ;;  %v858_v24 = vmul.f32 %v856_v22, %v852_v21  ;;  %v1131_v60 = vld [vmem:[%s413_s11] sm:$0xf] }
 0x4ac   : > { %v1020_v16 = vld [vmem:[#allocation4 + $0x8] sm:$0x7f]  ;;  %v1297_v61 = vld [vmem:[%s1724_s6] ss:$0 sm:$0xff] }
 0x4ad   : > { %868 = vst.msk [vmem:[#allocation4 + $0x10] sm:$0x7f] %vm426_vm2, %v867_v62  ;;  %1435 = vrcp.f32 %v1020_v16  ;;  %v1132_v62 = vunpack.c.l.bf16 %v1131_v60 }
 0x4ae   : > { %v993_v31 = vpop.permute.xlu1 %992 }
 0x4af   : > { %v995_v32 = vmul.f32 %v993_v31, %v989_v29 }
 0x4b0   : > { %v1011_v5 = vld [vmem:[#allocation4] sm:$0x7f] }
 0x4b2   : > { %v1003_v63 = vpop.xlane.xlu0 %1002 }
 0x4b3   : > { %v1004_v1 = vadd.f32 %v1003_v63, %v1000_v19 }
 0x4b4   : > { %v1029_v2 = vld [vmem:[#allocation4 + $0x10] sm:$0x7f] }
 0x4b5   : > { %1005 = vst.msk [vmem:[#allocation4 + $0x18] sm:$0x7f] %vm426_vm2, %v1004_v1  ;;  %1437 = vrcp.f32 %v1029_v2 }
 0x4b7   : > { %v1436_v3 = vpop.eup %1435 }
 0x4b8   : > { %1024 = vperm.xlu0 %1413, %v1436_v3   ;;  %v1138_v3 = vld [vmem:[%s420_s16] sm:$0xf] }
 0x4ba   : > { %v719_v10 = vpop.permute.xlu0 %718 }
 0x4bb   : > { %v721_v11 = vmul.f32 %v719_v10, %v715_v9 }
 0x4bc   : > { %v1038_v4 = vld [vmem:[#allocation4 + $0x18] sm:$0x7f] }
 0x4bd   : > { %1439 = vrcp.f32 %v1038_v4 }
 0x4be   : > { %1441 = vrcp.f32 %v1011_v5 }
 0x4bf   : > { %v1438_v7 = vpop.eup %1437 }
 0x4c0   : > { %1033 = vperm.xlu1 %1414, %v1438_v7  }
 0x4c4   : > { %571 = vperm.xlu1 %1414, %v1434_v52  }
 0x4c7   : > { %v1440_v6 = vpop.eup %1439 }
 0x4c8   : > { %1042 = vperm.xlu0 %1413, %v1440_v6   ;;  %v1442_v8 = vpop.eup %1441 }
 0x4cc   : > { %1015 = vperm.xlu0 %1413, %v1442_v8  }
 0x4f1   : > { %v708_v12 = vpop.f32.mrb[4].mxu0 }
 0x4f2   : > { %v722_v13 = vadd.f32 %v721_v11, %v708_v12  ;;  %v1344_v14 = vpop.f32.mrb[5].mxu0 }
 0x4f3   : > { %v711_v15 = vpop.f32.mrb[6].mxu0 }
 0x4f4   : > { %723 = vst.msk [vmem:[#allocation2 + $0x8] sm:$0x7f] %vm435_vm7, %v722_v13  ;;  %v1345_v17 = vpop.f32.mrb[7].mxu0 }
 0x4f9   : > { %v845_v25 = vpop.f32.mrb[8].mxu0 }
 0x4fa   : > { %v859_v20 = vadd.f32 %v858_v24, %v845_v25  ;;  %v1356_v26 = vpop.f32.mrb[9].mxu0 }
 0x4fb   : > { %v848_v27 = vpop.f32.mrb[10].mxu0  ;;  %v1019_v40 = vld [vmem:[#allocation2 + $0x8] sm:$0x7f] }
 0x4fc   : > { %860 = vst.msk [vmem:[#allocation2 + $0x10] sm:$0x7f] %vm435_vm7, %v859_v20  ;;  %v1357_v28 = vpop.f32.mrb[11].mxu0 }
 0x501   : > { %v982_v33 = vpop.f32.mrb[12].mxu0 }
 0x502   : > { %v996_v34 = vadd.f32 %v995_v32, %v982_v33  ;;  %v1368_v35 = vpop.f32.mrb[13].mxu0 }
 0x503   : > { %v985_v36 = vpop.f32.mrb[14].mxu0  ;;  %v1028_v44 = vld [vmem:[#allocation2 + $0x10] sm:$0x7f] }
 0x504   : > { %997 = vst.msk [vmem:[#allocation2 + $0x18] sm:$0x7f] %vm435_vm7, %v996_v34  ;;  %v1369_v37 = vpop.f32.mrb[15].mxu0 }
 0x50b   : > { %v1037_v50 = vld [vmem:[#allocation2 + $0x18] sm:$0x7f] }
 0x537   : > { %v1025_v30 = vpop.permute.xlu0 %1024 }
 0x538   : > { %v1027_v42 = vmul.f32 %v1025_v30, %v1019_v40 }
 0x53a   : > { %1047 = vrot.lane.b32.xlu1 %v1027_v42, %s1475_s29 }
 0x53f   : > { %v1034_v43 = vpop.permute.xlu1 %1033 }
 0x540   : > { %v1036_v23 = vmul.f32 %v1034_v43, %v1028_v44 }
 0x542   : > { %1051 = vrot.lane.b32.xlu0 %v1036_v23, %s1476_s30 }
 0x543   : > { %v572_v46 = vpop.permute.xlu1 %571 }
 0x544   : > { %v574_v47 = vmul.f32 %v572_v46, %v568_v45 }
 0x546   : > { %v575_v48 = vadd.f32 %v574_v47, %v1625_v39 }
 0x547   : > { %v1043_v49 = vpop.permute.xlu0 %1042 }
 0x548   : > { %577 = vst.msk [vmem:[#allocation2] sm:$0x7f] %vm435_vm7, %v575_v48  ;;  %v1045_v51 = vmul.f32 %v1043_v49, %v1037_v50 }
 0x54a   : > { %1055 = vrot.lane.b32.xlu1 %v1045_v51, %s1477_s8 }
 0x54b   : > { %v1016_v0 = vpop.permute.xlu0 %1015 }
 0x54f   : > { %v1010_v52 = vld [vmem:[#allocation2] sm:$0x7f] }
 0x550   : > { %v1018_v54 = vmul.f32 %v1016_v0, %v1010_v52 }
 0x5ac   : > { %v1048_v53 = vpop.permute.xlu1 %1047 }
 0x5ad   : > { %v1058_v56 = vsel %vm444_vm1, %v1018_v54, %v1048_v53 }
 0x5b4   : > { %v1052_v55 = vpop.permute.xlu0 %1051 }
 0x5b5   : > { %v1060_v57 = vsel %vm1059_vm8, %v1058_v56, %v1052_v55 }
 0x5bc   : > { %v1056_v39 = vpop.permute.xlu1 %1055 }
 0x5bd   : > { %v1062_v58 = vsel %vm1061_vm9, %v1060_v57, %v1056_v39 }
 0x5be   : > { %v1063_v59 = vpack.c.bf16 %v1062_v58, %v1062_v58 }
 0x5c0   : > { %1375 = vmatmul.mubr.msk.bf16.vlgmr.msra.gmra.mrb[16].mxu1 %vm1087_vm10, %v1063_v59 }
 0x693   : > { %v1125_v16 = vpop.f32.mrb[16].mxu1 }
 0x694   : > { %v1126_v18 = vadd.f32 %v1297_v61, %v1125_v16  ;;  %v1376_v19 = vpop.f32.mrb[17].mxu1 }
 0x695   : > { %v1128_v63 = vpop.f32.mrb[18].mxu1 }
 0x696   : > { %v1133_v1 = vadd.f32 %v1132_v62, %v1126_v18  ;;  %v1377_v2 = vpop.f32.mrb[19].mxu1 }
 0x698   : > { %v1134_v4 = vpack.c.bf16 %v1133_v1, %v1133_v1 }
 0x69a   : > { %v1139_v5 = vsel %vm1137_vm13, %v1134_v4, %v1138_v3 }
 0x69b   : > { %1140 = vst [vmem:[%s420_s16] sm:$0xf] %v1139_v5 }
 0x69c PF: > { %s17_s26 = sadd.s32 1, %s1465_s26   ;;  %s1726_s24 = smov %s1461_s25 }
 0x69d   : > { %p14_p5 = scmp.ge.s32.totalorder %s17_s26, 4   ;;  %s1727_s25 = smov %s1729_s27 }
 0x69f   :  { %16 = sbr.rel (!%p14_p5) target bundleno = 2 (0x2), region = 107 }

// kernel: encoder_forward.19
= control target key start
LH: loop header
LB: loop body
LE: loop exit
PB: predicated region body
PF: predicated region fallthrough
CT: control target
= control target key end

     0   :  { %vm18_vm0 = vcmask 261120   ;;  %vm22_vm1 = vcmask 259072   ;;  %s121_s0 = inlined_call_operand.vmem [shape: bf16[14,32], index: 0, kind: input, shape index: {}]   ;;  %s122_s1 = inlined_call_operand.vmem [shape: f32[1,32], index: 1, kind: input, shape index: {}]   ;;  %s123_s2 = inlined_call_operand.vmem [shape: f32[1,32], index: 2, kind: input, shape index: {}]   ;;  %s124_s3 = inlined_call_operand.vmem [shape: f32[14,32], index: 3, kind: output, shape index: {}]  }
   0x1   :  { %v14_v0 = vld [vmem:[%s121_s0] sm:$0xf]  ;;  %v15_v1 = vld [vmem:[%s121_s0 + $0x4] sm:$0x7] }
   0x2   :  { %v16_v2 = vunpack.c.l.bf16 %v14_v0  ;;  %v17_v3 = vunpack.c.l.bf16 %v15_v1  ;;  %v71_v23 = vld [vmem:[%s122_s1] ss:$0 sm:$0xff] }
   0x3   :  { %v72_v25 = vld [vmem:[%s123_s2] ss:$0 sm:$0xff] }
   0x4   :  { %v19_v4 = vsel %vm18_vm0, %v16_v2, 0.0  ;;  %v23_v5 = vsel %vm22_vm1, %v17_v3, 0.0 }
   0x5   :  { %20 = vadd.xlane.f32.xlu0 %v19_v4 }
   0x9   :  { %24 = vadd.xlane.f32.xlu0 %v23_v5 }
  0x92   :  { %v21_v6 = vpop.xlane.xlu0 %20 }
  0x93   :  { %v27_v7 = vmul.f32 0.03125, %v21_v6 }
  0x95   :  { %v29_v8 = vsub.f32 %v16_v2, %v27_v7 }
  0x96   :  { %v25_v9 = vpop.xlane.xlu0 %24 }
  0x97   :  { %v28_v10 = vmul.f32 0.03125, %v25_v9  ;;  %v31_v11 = vmul.f32 %v29_v8, %v29_v8 }
  0x99   :  { %v30_v12 = vsub.f32 %v17_v3, %v28_v10  ;;  %v33_v13 = vsel %vm18_vm0, %v31_v11, 0.0 }
  0x9a   :  { %34 = vadd.xlane.f32.xlu1 %v33_v13 }
  0x9b   :  { %v32_v14 = vmul.f32 %v30_v12, %v30_v12 }
  0x9d   :  { %v36_v15 = vsel %vm22_vm1, %v32_v14, 0.0 }
  0x9e   :  { %37 = vadd.xlane.f32.xlu1 %v36_v15 }
 0x127   :  { %v35_v16 = vpop.xlane.xlu1 %34 }
 0x128   :  { %v39_v17 = vmul.f32 0.03125, %v35_v16 }
 0x12a   :  { %v41_v18 = vadd.f32 1e-12, %v39_v17 }
 0x12b   :  { %v38_v19 = vpop.xlane.xlu1 %37 }
 0x12c   :  { %73 = vrsqrt.f32 %v41_v18  ;;  %v40_v20 = vmul.f32 0.03125, %v38_v19 }
 0x12e   :  { %v42_v21 = vadd.f32 1e-12, %v40_v20 }
 0x130   :  { %75 = vrsqrt.f32 %v42_v21 }
 0x136   :  { %v74_v22 = vpop.eup %73 }
 0x137   :  { %v45_v24 = vmul.f32 %v74_v22, %v29_v8 }
 0x139   :  { %v54_v26 = vmul.f32 %v71_v23, %v45_v24 }
 0x13a   :  { %v76_v27 = vpop.eup %75 }
 0x13b   :  { %v63_v28 = vadd.f32 %v72_v25, %v54_v26  ;;  %v46_v29 = vmul.f32 %v76_v27, %v30_v12 }
 0x13d   :  { %65 = vst.msk [vmem:[%s124_s3] sm:$0xff] %vm18_vm0, %v63_v28  ;;  %v55_v30 = vmul.f32 %v71_v23, %v46_v29 }
 0x13f   :  { %v64_v31 = vadd.f32 %v72_v25, %v55_v30 }
 0x141   :  { %66 = vst.msk [vmem:[%s124_s3 + $0x8] sm:$0x3f] %vm22_vm1, %v64_v31 }

// kernel: encoder_forward.15
= control target key start
LH: loop header
LB: loop body
LE: loop exit
PB: predicated region body
PF: predicated region fallthrough
CT: control target
= control target key end

     0   :  { %vm31_vm0 = vcmask 261120   ;;  %vm35_vm1 = vcmask 259072   ;;  %v307_v17 = vmov 0.0   ;;  %vm308_vm2 = vmmov 0   ;;  %s404_s0 = inlined_call_operand.vmem [shape: bf16[14,32], index: 0, kind: input, shape index: {}]   ;;  %s405_s3 = inlined_call_operand.vmem [shape: bf16[32,64], index: 3, kind: input, shape index: {}]   ;;  %s406_s5 = inlined_call_operand.vmem [shape: bf16[64,32], index: 5, kind: input, shape index: {}]   ;;  %s407_s1 = inlined_call_operand.vmem [shape: f32[1,32], index: 1, kind: input, shape index: {}]   ;;  %s408_s2 = inlined_call_operand.vmem [shape: f32[1,32], index: 2, kind: input, shape index: {}]   ;;  %s409_s4 = inlined_call_operand.vmem [shape: f32[1,64], index: 4, kind: input, shape index: {}]   ;;  %s410_s6 = inlined_call_operand.vmem [shape: f32[1,32], index: 6, kind: input, shape index: {}]   ;;  %s411_s7 = inlined_call_operand.vmem [shape: bf16[14,32], index: 7, kind: output, shape index: {}]  }
   0x1   :  { %v27_v0 = vld [vmem:[%s404_s0] sm:$0xf]  ;;  %v28_v1 = vld [vmem:[%s404_s0 + $0x4] sm:$0x7]  ;;  %275 = vmatprep.subr.bf16.mxu0 %v307_v17  ;;  %283 = vmatprep.subr.bf16.mxu1 %v307_v17  ;;  %v298_v18 = vld [vmem:[%s405_s3 + $0x8] sm:$0xff]   ;;  %vm188_vm3 = vcmask 523264  }
   0x2   :  { %v355_v2 = vunpack.c.l.bf16 %v27_v0  ;;  %v357_v3 = vunpack.c.l.bf16 %v28_v1  ;;  %v297_v16 = vld [vmem:[%s405_s3] sm:$0xff]   ;;  %279 = vmatprep.mubr.msk.bf16.mxu0 %vm308_vm2, %v307_v17  ;;  %291 = vmatprep.mubr.msk.bf16.mxu1 %vm308_vm2, %v307_v17  ;;  %v300_v20 = vld [vmem:[%s406_s5 + $0x8] sm:$0xff]   ;;  %v301_v38 = vld [vmem:[%s406_s5 + $0x10] sm:$0xff]   ;;  %vm243_vm4 = vcmask 257024   ;;  %vm245_vm5 = vcmask 256000  }
   0x3   :  { %276 = vmatpush3.bf16.msra.mxu0 %v297_v16  ;;  %v299_v19 = vld [vmem:[%s406_s5] sm:$0xff]   ;;  %v302_v39 = vld [vmem:[%s406_s5 + $0x18] sm:$0xff]  }
   0x4   :  { %v32_v4 = vsel %vm31_vm0, %v355_v2, 0.0  ;;  %v36_v5 = vsel %vm35_vm1, %v357_v3, 0.0  ;;  %277 = vmatprep.subr.bf16.mxu0 %v307_v17  ;;  %284 = vmatpush3.bf16.msra.mxu1 %v299_v19  ;;  %v251_v29 = vld [vmem:[%s407_s1] ss:$0 sm:$0xff] }
   0x5   :  { %33 = vadd.xlane.f32.xlu0 %v32_v4  ;;  %285 = vmatprep.subr.bf16.mxu1 %v307_v17  ;;  %v252_v33 = vld [vmem:[%s408_s2] ss:$0 sm:$0xff] }
   0x6   :  { %v253_v40 = vld [vmem:[%s409_s4] ss:$0 sm:$0xff] }
   0x7   :  { %278 = vmatpush3.bf16.msra.mxu0 %v298_v18  ;;  %v257_v50 = vld [vmem:[%s410_s6] ss:$0 sm:$0xff] }
   0x8   :  { %286 = vmatpush3.bf16.msra.mxu1 %v300_v20 }
   0x9   :  { %37 = vadd.xlane.f32.xlu0 %v36_v5  ;;  %287 = vmatprep.subr.bf16.mxu1 %v307_v17 }
   0xc   :  { %288 = vmatpush3.bf16.msra.mxu1 %v301_v38 }
   0xd   :  { %289 = vmatprep.subr.bf16.mxu1 %v307_v17 }
  0x10   :  { %290 = vmatpush3.bf16.msra.mxu1 %v302_v39 }
  0x92   :  { %v34_v6 = vpop.xlane.xlu0 %33 }
  0x93   :  { %v40_v7 = vmul.f32 0.03125, %v34_v6 }
  0x95   :  { %v42_v8 = vsub.f32 %v355_v2, %v40_v7 }
  0x96   :  { %v38_v9 = vpop.xlane.xlu0 %37 }
  0x97   :  { %v41_v10 = vmul.f32 0.03125, %v38_v9  ;;  %v44_v11 = vmul.f32 %v42_v8, %v42_v8 }
  0x99   :  { %v43_v12 = vsub.f32 %v357_v3, %v41_v10  ;;  %v46_v13 = vsel %vm31_vm0, %v44_v11, 0.0 }
  0x9a   :  { %47 = vadd.xlane.f32.xlu1 %v46_v13 }
  0x9b   :  { %v45_v14 = vmul.f32 %v43_v12, %v43_v12 }
  0x9d   :  { %v49_v15 = vsel %vm35_vm1, %v45_v14, 0.0 }
  0x9e   :  { %50 = vadd.xlane.f32.xlu1 %v49_v15 }
 0x127   :  { %v48_v21 = vpop.xlane.xlu1 %47 }
 0x128   :  { %v52_v22 = vmul.f32 0.03125, %v48_v21 }
 0x12a   :  { %v54_v23 = vadd.f32 1e-12, %v52_v22 }
 0x12b   :  { %v51_v24 = vpop.xlane.xlu1 %50 }
 0x12c   :  { %303 = vrsqrt.f32 %v54_v23  ;;  %v53_v25 = vmul.f32 0.03125, %v51_v24 }
 0x12e   :  { %v55_v26 = vadd.f32 1e-12, %v53_v25 }
 0x130   :  { %305 = vrsqrt.f32 %v55_v26 }
 0x136   :  { %v304_v27 = vpop.eup %303 }
 0x137   :  { %v58_v28 = vmul.f32 %v304_v27, %v42_v8 }
 0x139   :  { %v67_v32 = vmul.f32 %v251_v29, %v58_v28 }
 0x13a   :  { %v306_v30 = vpop.eup %305 }
 0x13b   :  { %v59_v31 = vmul.f32 %v306_v30, %v43_v12  ;;  %v76_v35 = vadd.f32 %v252_v33, %v67_v32 }
 0x13d   :  { %v68_v34 = vmul.f32 %v251_v29, %v59_v31 }
 0x13f   :  { %v77_v36 = vadd.f32 %v252_v33, %v68_v34 }
 0x141   :  { %v78_v37 = vpack.c.bf16 %v77_v36, %v76_v35 }
 0x143   :  { %280 = vmatmul.mubr.msk.bf16.vlgmr.msra.gmra.mrb[0].mxu0 %vm31_vm0, %v78_v37 }
 0x216   :  { %v139_v41 = vpop.f32.mrb[0].mxu0 }
 0x217   :  { %v140_v42 = vadd.f32 %v253_v40, %v139_v41  ;;  %v281_v43 = vpop.f32.mrb[1].mxu0 }
 0x218   :  { %v142_v44 = vpop.f32.mrb[2].mxu0 }
 0x219   :  { %v143_v45 = vadd.f32 %v253_v40, %v142_v44  ;;  %v282_v46 = vpop.f32.mrb[3].mxu0  ;;  %v146_v47 = vmax.f32 %v140_v42, 0.0 }
 0x21b   :  { %v147_v48 = vmax.f32 %v143_v45, 0.0 }
 0x21d   :  { %v148_v49 = vpack.c.bf16 %v147_v48, %v146_v47 }
 0x21f   :  { %292 = vmatmul.mubr.msk.bf16.vlgmr.msra.gmra.mrb[0].mxu1 %vm188_vm3, %v148_v49 }
 0x2f2   :  { %v226_v51 = vpop.f32.mrb[0].mxu1 }
 0x2f3   :  { %v227_v52 = vadd.f32 %v257_v50, %v226_v51  ;;  %v293_v53 = vpop.f32.mrb[1].mxu1 }
 0x2f4   :  { %v229_v54 = vpop.f32.mrb[2].mxu1 }
 0x2f5   :  { %v233_v55 = vadd.f32 %v227_v52, %v355_v2  ;;  %v230_v56 = vadd.f32 %v257_v50, %v229_v54  ;;  %v294_v57 = vpop.f32.mrb[3].mxu1 }
 0x2f7   :  { %v265_v58 = vpack.c.bf16 %v233_v55, %v233_v55  ;;  %v234_v59 = vadd.f32 %v230_v56, %v357_v3 }
 0x2f9   :  { %244 = vst.msk [vmem:[%s411_s7] sm:$0xf] %vm243_vm4, %v265_v58  ;;  %v266_v60 = vpack.c.bf16 %v234_v59, %v234_v59 }
 0x2fb   :  { %246 = vst.msk [vmem:[%s411_s7 + $0x4] sm:$0x7] %vm245_vm5, %v266_v60 }

</bundles_post_ra>
